<compile_context>
chip_gen: v7x
topology: tpu7x:2x2x1
jax: 0.10.0
libtpu: 0.0.40
codegen_flags: <defaults>
</compile_context>

<pallas_src>
import jax
import jax.numpy as jnp
from jax.experimental import pallas as pl
from jax.experimental.pallas import tpu as pltpu


def _round_up(n, m):
    return ((n + m - 1) // m) * m


def lstm_fc_kernel(ids_ref, eproj_ref, whh_ref, wfc_ref, bfc_ref, out_ref, xproj_sc):
    """Single-invocation kernel: in-kernel embedding/x-proj gather + LSTM recurrence + FC.

    ids_ref:  (T, Bp)      int32 token ids (SMEM, scalar-prefetched)
    eproj_ref:(Vp, 4*Hp)   per-token fused (emb @ W_ih + bias) gate pre-activations (f32)
    whh_ref:  (Hp, 4*Hp)   hidden->gates weights (bf16)
    wfc_ref:  (Hp, Op)     final projection (bf16)
    bfc_ref:  (1, Op)      final bias (f32)
    out_ref:  (Bp, Op)     f32 output
    xproj_sc: (T, Bp, 4*Hp) f32 VMEM scratch holding the gathered input projections
    """
    T, Bp, G = xproj_sc.shape
    Hp = G // 4

    # ---- Phase 1: gather fused embedding+input-projection rows for all timesteps ----
    # ids come from SMEM (scalars); each row is one dynamic sublane slice of eproj.
    for t in range(T):
        rows = [eproj_ref[pl.ds(ids_ref[t, b], 1), :] for b in range(Bp)]
        xproj_sc[t] = jnp.concatenate(rows, axis=0)            # (Bp, 4*Hp)

    w_hh = whh_ref[...]                                        # bf16, hoisted out of loop

    # ---- Phase 2: serial recurrence, one bf16-operand MXU matmul per step ----
    def step(t, carry):
        h, c = carry                                           # f32 (Bp, Hp)
        gates = xproj_sc[t] + jnp.dot(h.astype(jnp.bfloat16), w_hh,
                                      preferred_element_type=jnp.float32)
        # Hp is a multiple of 128 -> every gate slice is lane-register aligned.
        i_g = jax.nn.sigmoid(gates[:, 0 * Hp:1 * Hp])
        f_g = jax.nn.sigmoid(gates[:, 1 * Hp:2 * Hp])
        g_g = jnp.tanh(gates[:, 2 * Hp:3 * Hp])
        o_g = jax.nn.sigmoid(gates[:, 3 * Hp:4 * Hp])
        c_new = f_g * c + i_g * g_g
        h_new = o_g * jnp.tanh(c_new)
        return h_new, c_new

    init = (jnp.zeros((Bp, Hp), jnp.float32),
            jnp.zeros((Bp, Hp), jnp.float32))
    h_last, _ = jax.lax.fori_loop(0, T, step, init, unroll=True)

    # ---- Phase 3: final FC on the last hidden state (bf16 operands, f32 accumulate) ----
    out_ref[...] = (jnp.dot(h_last.astype(jnp.bfloat16), wfc_ref[...],
                            preferred_element_type=jnp.float32)
                    + bfc_ref[...]).astype(out_ref.dtype)


def prepare_params(params, *, lane=128, sub=8):
    """One-time padding / fusion / casting of parameters (do NOT re-run per forward)."""
    emb = params["embedding"]            # (V, H)
    w_ih = params["w_ih"]                # (H, 4H)  (transposed PyTorch weight_ih_l0)
    w_hh = params["w_hh"]                # (H, 4H)
    bias = params["bias"]                # (1, 4H)  = b_ih + b_hh
    w_fc = params["w_fc"]                # (H, O)
    b_fc = params["b_fc"]                # (1, O)

    V, H = emb.shape
    O = w_fc.shape[1]
    Hp = _round_up(H, lane)              # lane-aligned hidden
    Op = _round_up(O, lane)              # lane-dense output store
    Vp = _round_up(V, sub)               # sublane-aligned token table

    def pad_gate_weights(w):             # (H, 4H) -> (Hp, 4Hp), per-gate blocks aligned
        w4 = w.reshape(H, 4, H)
        w4 = jnp.pad(w4, ((0, Hp - H), (0, 0), (0, Hp - H)))
        return w4.reshape(Hp, 4 * Hp)

    w_ih_p = pad_gate_weights(w_ih)
    w_hh_p = pad_gate_weights(w_hh)
    bias_p = jnp.pad(bias.reshape(1, 4, H),
                     ((0, 0), (0, 0), (0, Hp - H))).reshape(1, 4 * Hp)
    emb_p = jnp.pad(emb, ((0, Vp - V), (0, Hp - H)))
    w_fc_p = jnp.pad(w_fc, ((0, Hp - H), (0, Op - O)))
    b_fc_p = jnp.pad(b_fc, ((0, 0), (0, Op - O)))

    # Fuse Embedding + input projection + bias into one per-token table (exact, f32).
    eproj = jnp.dot(emb_p, w_ih_p,
                    precision=jax.lax.Precision.HIGHEST) + bias_p   # (Vp, 4*Hp)

    return {
        "eproj": eproj.astype(jnp.float32),
        "w_hh": w_hh_p.astype(jnp.bfloat16),     # bf16 MXU operand (recurrent crit path)
        "w_fc": w_fc_p.astype(jnp.bfloat16),     # bf16 MXU operand
        "b_fc": b_fc_p.astype(jnp.float32),
    }


def lstm_model_forward(x_ids, prep, *, output_dim):
    """x_ids: (B, T) int32 token ids. Returns (B, output_dim) float32."""
    eproj = prep["eproj"]                # (Vp, 4*Hp) f32
    w_hh = prep["w_hh"]                  # (Hp, 4*Hp) bf16
    w_fc = prep["w_fc"]                  # (Hp, Op)   bf16
    b_fc = prep["b_fc"]                  # (1, Op)    f32

    B, T = x_ids.shape
    Vp, G = eproj.shape
    Hp = G // 4
    Op = w_fc.shape[1]
    SUB = 8
    Bp = _round_up(B, SUB)               # fill f32 sublane tile

    # Only the tiny int32 id matrix is padded/transposed per call (padded rows -> token 0;
    # their batch rows are independent and sliced off below).
    ids_tb = jnp.pad(x_ids, ((0, Bp - B), (0, 0))).T.astype(jnp.int32)   # (T, Bp)

    out = pl.pallas_call(
        lstm_fc_kernel,
        out_shape=jax.ShapeDtypeStruct((Bp, Op), jnp.float32),
        grid_spec=pltpu.PrefetchScalarGridSpec(
            num_scalar_prefetch=1,                       # ids -> SMEM
            grid=(1,),                                   # whole recurrence in one step
            in_specs=[
                pl.BlockSpec((Vp, G), lambda i, ids: (0, 0)),      # eproj table
                pl.BlockSpec((Hp, G), lambda i, ids: (0, 0)),      # W_hh (bf16)
                pl.BlockSpec((Hp, Op), lambda i, ids: (0, 0)),     # W_fc (bf16)
                pl.BlockSpec((1, Op), lambda i, ids: (0, 0)),      # b_fc
            ],
            out_specs=pl.BlockSpec((Bp, Op), lambda i, ids: (0, 0)),
            scratch_shapes=[
                pltpu.VMEM((T, Bp, G), jnp.float32),               # gathered x-projection
            ],
        ),
        compiler_params=pltpu.CompilerParams(
            dimension_semantics=("arbitrary",)),
    )(ids_tb, eproj, w_hh, w_fc, b_fc)

    return out[:B, :output_dim]


def init_params(key, input_dim=10, hidden_dim=64, output_dim=9):
    """Deterministic synthetic params mirroring nn.Embedding / nn.LSTM / nn.Linear shapes."""
    ks = jax.random.split(key, 7)
    H, V, O = hidden_dim, input_dim, output_dim
    bound = 1.0 / jnp.sqrt(H)
    emb = jax.random.normal(ks[0], (V, H), jnp.float32)
    w_ih = jax.random.uniform(ks[1], (H, 4 * H), jnp.float32, -bound, bound)
    w_hh = jax.random.uniform(ks[2], (H, 4 * H), jnp.float32, -bound, bound)
    b_ih = jax.random.uniform(ks[3], (4 * H,), jnp.float32, -bound, bound)
    b_hh = jax.random.uniform(ks[4], (4 * H,), jnp.float32, -bound, bound)
    w_fc = jax.random.uniform(ks[5], (H, O), jnp.float32, -bound, bound)
    b_fc = jax.random.uniform(ks[6], (1, O), jnp.float32, -bound, bound)
    return {
        "embedding": emb,
        "w_ih": w_ih,
        "w_hh": w_hh,
        "bias": (b_ih + b_hh).reshape(1, 4 * H),
        "w_fc": w_fc,
        "b_fc": b_fc,
    }


def reference_forward(x_ids, params):
    """Pure-JAX reference (lax.scan LSTM, f32) for correctness check."""
    emb = jnp.take(params["embedding"], x_ids, axis=0)   # (B, T, H)
    B, T, H = emb.shape

    def step(carry, x_t):
        h, c = carry
        gates = (x_t @ params["w_ih"] + h @ params["w_hh"] + params["bias"])
        i = jax.nn.sigmoid(gates[:, 0 * H:1 * H])
        f = jax.nn.sigmoid(gates[:, 1 * H:2 * H])
        g = jnp.tanh(gates[:, 2 * H:3 * H])
        o = jax.nn.sigmoid(gates[:, 3 * H:4 * H])
        c = f * c + i * g
        h = o * jnp.tanh(c)
        return (h, c), None

    h0 = jnp.zeros((B, H), jnp.float32)
    c0 = jnp.zeros((B, H), jnp.float32)
    (h_last, _), _ = jax.lax.scan(step, (h0, c0), jnp.transpose(emb, (1, 0, 2)))
    return h_last @ params["w_fc"] + params["b_fc"]


if __name__ == "__main__":
    key = jax.random.PRNGKey(0)
    k_param, k_data = jax.random.split(key)

    B, T = 2, 8
    INPUT_DIM, HIDDEN_DIM, OUTPUT_DIM = 10, 64, 9

    params = init_params(k_param, INPUT_DIM, HIDDEN_DIM, OUTPUT_DIM)
    prep = prepare_params(params)                      # one-time pad / fuse / bf16 cast

    x_ids = jax.random.randint(k_data, (B, T), 0, INPUT_DIM, dtype=jnp.int32)

    fwd = jax.jit(lstm_model_forward, static_argnames=("output_dim",))
    out = fwd(x_ids, prep, output_dim=OUTPUT_DIM)
    out = jax.block_until_ready(out)

    ref = reference_forward(x_ids, params)
    assert out.shape == (B, OUTPUT_DIM)
    # bf16 MXU operands in the recurrence / FC -> looser tolerance than pure f32.
    assert jnp.allclose(out, ref, atol=2e-2, rtol=2e-2), "mismatch vs JAX reference"

    print("KERNEL_OK")
</pallas_src>

<mosaic_0001>
module attributes {stable_mosaic.version = 11 : i64} {
  func.func @lstm_fc_kernel(%arg0: i32, %arg1: memref<8x8xi32, #tpu.memory_space<smem>>, %arg2: memref<16x512xf32, #tpu.memory_space<vmem>>, %arg3: memref<128x512xbf16, #tpu.memory_space<vmem>>, %arg4: memref<128x128xbf16, #tpu.memory_space<vmem>>, %arg5: memref<1x128xf32, #tpu.memory_space<vmem>>, %arg6: memref<8x128xf32, #tpu.memory_space<vmem>>, %arg7: memref<8x8x512xf32, #tpu.memory_space<vmem>>) attributes {dimension_semantics = [#tpu.dimension_semantics<arbitrary>], iteration_bounds = array<i64: 1>, scalar_prefetch = 1 : i64, scratch_operands = 1 : i64, tpu.core_type = #tpu.core_type<tc>, window_params = [{pipeline_mode = #tpu.pipeline_mode<synchronous>, transform_indices = @transform_0, window_bounds = array<i64: 16, 512>}, {pipeline_mode = #tpu.pipeline_mode<synchronous>, transform_indices = @transform_1, window_bounds = array<i64: 128, 512>}, {pipeline_mode = #tpu.pipeline_mode<synchronous>, transform_indices = @transform_2, window_bounds = array<i64: 128, 128>}, {pipeline_mode = #tpu.pipeline_mode<synchronous>, transform_indices = @transform_3, window_bounds = array<i64: 1, 128>}, {pipeline_mode = #tpu.pipeline_mode<synchronous>, transform_indices = @transform_4, window_bounds = array<i64: 8, 128>}]} {
    %c0 = arith.constant 0 : index
    %c0_0 = arith.constant 0 : index
    %0 = memref.load %arg1[%c0, %c0_0] : memref<8x8xi32, #tpu.memory_space<smem>>
    %1 = arith.index_cast %0 : i32 to index
    %c0_1 = arith.constant 0 : index
    %2 = vector.load %arg2[%1, %c0_1] : memref<16x512xf32, #tpu.memory_space<vmem>>, vector<1x512xf32>
    %c0_2 = arith.constant 0 : index
    %c1 = arith.constant 1 : index
    %3 = memref.load %arg1[%c0_2, %c1] : memref<8x8xi32, #tpu.memory_space<smem>>
    %4 = arith.index_cast %3 : i32 to index
    %c0_3 = arith.constant 0 : index
    %5 = vector.load %arg2[%4, %c0_3] : memref<16x512xf32, #tpu.memory_space<vmem>>, vector<1x512xf32>
    %c0_4 = arith.constant 0 : index
    %c2 = arith.constant 2 : index
    %6 = memref.load %arg1[%c0_4, %c2] : memref<8x8xi32, #tpu.memory_space<smem>>
    %7 = arith.index_cast %6 : i32 to index
    %c0_5 = arith.constant 0 : index
    %8 = vector.load %arg2[%7, %c0_5] : memref<16x512xf32, #tpu.memory_space<vmem>>, vector<1x512xf32>
    %c0_6 = arith.constant 0 : index
    %c3 = arith.constant 3 : index
    %9 = memref.load %arg1[%c0_6, %c3] : memref<8x8xi32, #tpu.memory_space<smem>>
    %10 = arith.index_cast %9 : i32 to index
    %c0_7 = arith.constant 0 : index
    %11 = vector.load %arg2[%10, %c0_7] : memref<16x512xf32, #tpu.memory_space<vmem>>, vector<1x512xf32>
    %c0_8 = arith.constant 0 : index
    %c4 = arith.constant 4 : index
    %12 = memref.load %arg1[%c0_8, %c4] : memref<8x8xi32, #tpu.memory_space<smem>>
    %13 = arith.index_cast %12 : i32 to index
    %c0_9 = arith.constant 0 : index
    %14 = vector.load %arg2[%13, %c0_9] : memref<16x512xf32, #tpu.memory_space<vmem>>, vector<1x512xf32>
    %c0_10 = arith.constant 0 : index
    %c5 = arith.constant 5 : index
    %15 = memref.load %arg1[%c0_10, %c5] : memref<8x8xi32, #tpu.memory_space<smem>>
    %16 = arith.index_cast %15 : i32 to index
    %c0_11 = arith.constant 0 : index
    %17 = vector.load %arg2[%16, %c0_11] : memref<16x512xf32, #tpu.memory_space<vmem>>, vector<1x512xf32>
    %c0_12 = arith.constant 0 : index
    %c6 = arith.constant 6 : index
    %18 = memref.load %arg1[%c0_12, %c6] : memref<8x8xi32, #tpu.memory_space<smem>>
    %19 = arith.index_cast %18 : i32 to index
    %c0_13 = arith.constant 0 : index
    %20 = vector.load %arg2[%19, %c0_13] : memref<16x512xf32, #tpu.memory_space<vmem>>, vector<1x512xf32>
    %c0_14 = arith.constant 0 : index
    %c7 = arith.constant 7 : index
    %21 = memref.load %arg1[%c0_14, %c7] : memref<8x8xi32, #tpu.memory_space<smem>>
    %22 = arith.index_cast %21 : i32 to index
    %c0_15 = arith.constant 0 : index
    %23 = vector.load %arg2[%22, %c0_15] : memref<16x512xf32, #tpu.memory_space<vmem>>, vector<1x512xf32>
    %24 = tpu.concatenate %2, %5, %8, %11, %14, %17, %20, %23 in 0 : vector<1x512xf32>, vector<1x512xf32>, vector<1x512xf32>, vector<1x512xf32>, vector<1x512xf32>, vector<1x512xf32>, vector<1x512xf32>, vector<1x512xf32> -> vector<8x512xf32>
    %c0_16 = arith.constant 0 : index
    %c0_17 = arith.constant 0 : index
    %c0_18 = arith.constant 0 : index
    %25 = vector.load %arg7[%c0_16, %c0_17, %c0_18] : memref<8x8x512xf32, #tpu.memory_space<vmem>>, vector<1x8x512xf32>
    %26 = vector.shape_cast %25 : vector<1x8x512xf32> to vector<8x512xf32>
    %27 = vector.shape_cast %24 : vector<8x512xf32> to vector<1x8x512xf32>
    tpu.vector_store %arg7[%c0_16, %c0_17, %c0_18], %27 {strides = array<i32>} : memref<8x8x512xf32, #tpu.memory_space<vmem>>, vector<1x8x512xf32>,
    %c1_19 = arith.constant 1 : index
    %c0_20 = arith.constant 0 : index
    %28 = memref.load %arg1[%c1_19, %c0_20] : memref<8x8xi32, #tpu.memory_space<smem>>
    %29 = arith.index_cast %28 : i32 to index
    %c0_21 = arith.constant 0 : index
    %30 = vector.load %arg2[%29, %c0_21] : memref<16x512xf32, #tpu.memory_space<vmem>>, vector<1x512xf32>
    %c1_22 = arith.constant 1 : index
    %c1_23 = arith.constant 1 : index
    %31 = memref.load %arg1[%c1_22, %c1_23] : memref<8x8xi32, #tpu.memory_space<smem>>
    %32 = arith.index_cast %31 : i32 to index
    %c0_24 = arith.constant 0 : index
    %33 = vector.load %arg2[%32, %c0_24] : memref<16x512xf32, #tpu.memory_space<vmem>>, vector<1x512xf32>
    %c1_25 = arith.constant 1 : index
    %c2_26 = arith.constant 2 : index
    %34 = memref.load %arg1[%c1_25, %c2_26] : memref<8x8xi32, #tpu.memory_space<smem>>
    %35 = arith.index_cast %34 : i32 to index
    %c0_27 = arith.constant 0 : index
    %36 = vector.load %arg2[%35, %c0_27] : memref<16x512xf32, #tpu.memory_space<vmem>>, vector<1x512xf32>
    %c1_28 = arith.constant 1 : index
    %c3_29 = arith.constant 3 : index
    %37 = memref.load %arg1[%c1_28, %c3_29] : memref<8x8xi32, #tpu.memory_space<smem>>
    %38 = arith.index_cast %37 : i32 to index
    %c0_30 = arith.constant 0 : index
    %39 = vector.load %arg2[%38, %c0_30] : memref<16x512xf32, #tpu.memory_space<vmem>>, vector<1x512xf32>
    %c1_31 = arith.constant 1 : index
    %c4_32 = arith.constant 4 : index
    %40 = memref.load %arg1[%c1_31, %c4_32] : memref<8x8xi32, #tpu.memory_space<smem>>
    %41 = arith.index_cast %40 : i32 to index
    %c0_33 = arith.constant 0 : index
    %42 = vector.load %arg2[%41, %c0_33] : memref<16x512xf32, #tpu.memory_space<vmem>>, vector<1x512xf32>
    %c1_34 = arith.constant 1 : index
    %c5_35 = arith.constant 5 : index
    %43 = memref.load %arg1[%c1_34, %c5_35] : memref<8x8xi32, #tpu.memory_space<smem>>
    %44 = arith.index_cast %43 : i32 to index
    %c0_36 = arith.constant 0 : index
    %45 = vector.load %arg2[%44, %c0_36] : memref<16x512xf32, #tpu.memory_space<vmem>>, vector<1x512xf32>
    %c1_37 = arith.constant 1 : index
    %c6_38 = arith.constant 6 : index
    %46 = memref.load %arg1[%c1_37, %c6_38] : memref<8x8xi32, #tpu.memory_space<smem>>
    %47 = arith.index_cast %46 : i32 to index
    %c0_39 = arith.constant 0 : index
    %48 = vector.load %arg2[%47, %c0_39] : memref<16x512xf32, #tpu.memory_space<vmem>>, vector<1x512xf32>
    %c1_40 = arith.constant 1 : index
    %c7_41 = arith.constant 7 : index
    %49 = memref.load %arg1[%c1_40, %c7_41] : memref<8x8xi32, #tpu.memory_space<smem>>
    %50 = arith.index_cast %49 : i32 to index
    %c0_42 = arith.constant 0 : index
    %51 = vector.load %arg2[%50, %c0_42] : memref<16x512xf32, #tpu.memory_space<vmem>>, vector<1x512xf32>
    %52 = tpu.concatenate %30, %33, %36, %39, %42, %45, %48, %51 in 0 : vector<1x512xf32>, vector<1x512xf32>, vector<1x512xf32>, vector<1x512xf32>, vector<1x512xf32>, vector<1x512xf32>, vector<1x512xf32>, vector<1x512xf32> -> vector<8x512xf32>
    %c1_43 = arith.constant 1 : index
    %c0_44 = arith.constant 0 : index
    %c0_45 = arith.constant 0 : index
    %53 = vector.load %arg7[%c1_43, %c0_44, %c0_45] : memref<8x8x512xf32, #tpu.memory_space<vmem>>, vector<1x8x512xf32>
    %54 = vector.shape_cast %53 : vector<1x8x512xf32> to vector<8x512xf32>
    %55 = vector.shape_cast %52 : vector<8x512xf32> to vector<1x8x512xf32>
    tpu.vector_store %arg7[%c1_43, %c0_44, %c0_45], %55 {strides = array<i32>} : memref<8x8x512xf32, #tpu.memory_space<vmem>>, vector<1x8x512xf32>,
    %c2_46 = arith.constant 2 : index
    %c0_47 = arith.constant 0 : index
    %56 = memref.load %arg1[%c2_46, %c0_47] : memref<8x8xi32, #tpu.memory_space<smem>>
    %57 = arith.index_cast %56 : i32 to index
    %c0_48 = arith.constant 0 : index
    %58 = vector.load %arg2[%57, %c0_48] : memref<16x512xf32, #tpu.memory_space<vmem>>, vector<1x512xf32>
    %c2_49 = arith.constant 2 : index
    %c1_50 = arith.constant 1 : index
    %59 = memref.load %arg1[%c2_49, %c1_50] : memref<8x8xi32, #tpu.memory_space<smem>>
    %60 = arith.index_cast %59 : i32 to index
    %c0_51 = arith.constant 0 : index
    %61 = vector.load %arg2[%60, %c0_51] : memref<16x512xf32, #tpu.memory_space<vmem>>, vector<1x512xf32>
    %c2_52 = arith.constant 2 : index
    %c2_53 = arith.constant 2 : index
    %62 = memref.load %arg1[%c2_52, %c2_53] : memref<8x8xi32, #tpu.memory_space<smem>>
    %63 = arith.index_cast %62 : i32 to index
    %c0_54 = arith.constant 0 : index
    %64 = vector.load %arg2[%63, %c0_54] : memref<16x512xf32, #tpu.memory_space<vmem>>, vector<1x512xf32>
    %c2_55 = arith.constant 2 : index
    %c3_56 = arith.constant 3 : index
    %65 = memref.load %arg1[%c2_55, %c3_56] : memref<8x8xi32, #tpu.memory_space<smem>>
    %66 = arith.index_cast %65 : i32 to index
    %c0_57 = arith.constant 0 : index
    %67 = vector.load %arg2[%66, %c0_57] : memref<16x512xf32, #tpu.memory_space<vmem>>, vector<1x512xf32>
    %c2_58 = arith.constant 2 : index
    %c4_59 = arith.constant 4 : index
    %68 = memref.load %arg1[%c2_58, %c4_59] : memref<8x8xi32, #tpu.memory_space<smem>>
    %69 = arith.index_cast %68 : i32 to index
    %c0_60 = arith.constant 0 : index
    %70 = vector.load %arg2[%69, %c0_60] : memref<16x512xf32, #tpu.memory_space<vmem>>, vector<1x512xf32>
    %c2_61 = arith.constant 2 : index
    %c5_62 = arith.constant 5 : index
    %71 = memref.load %arg1[%c2_61, %c5_62] : memref<8x8xi32, #tpu.memory_space<smem>>
    %72 = arith.index_cast %71 : i32 to index
    %c0_63 = arith.constant 0 : index
    %73 = vector.load %arg2[%72, %c0_63] : memref<16x512xf32, #tpu.memory_space<vmem>>, vector<1x512xf32>
    %c2_64 = arith.constant 2 : index
    %c6_65 = arith.constant 6 : index
    %74 = memref.load %arg1[%c2_64, %c6_65] : memref<8x8xi32, #tpu.memory_space<smem>>
    %75 = arith.index_cast %74 : i32 to index
    %c0_66 = arith.constant 0 : index
    %76 = vector.load %arg2[%75, %c0_66] : memref<16x512xf32, #tpu.memory_space<vmem>>, vector<1x512xf32>
    %c2_67 = arith.constant 2 : index
    %c7_68 = arith.constant 7 : index
    %77 = memref.load %arg1[%c2_67, %c7_68] : memref<8x8xi32, #tpu.memory_space<smem>>
    %78 = arith.index_cast %77 : i32 to index
    %c0_69 = arith.constant 0 : index
    %79 = vector.load %arg2[%78, %c0_69] : memref<16x512xf32, #tpu.memory_space<vmem>>, vector<1x512xf32>
    %80 = tpu.concatenate %58, %61, %64, %67, %70, %73, %76, %79 in 0 : vector<1x512xf32>, vector<1x512xf32>, vector<1x512xf32>, vector<1x512xf32>, vector<1x512xf32>, vector<1x512xf32>, vector<1x512xf32>, vector<1x512xf32> -> vector<8x512xf32>
    %c2_70 = arith.constant 2 : index
    %c0_71 = arith.constant 0 : index
    %c0_72 = arith.constant 0 : index
    %81 = vector.load %arg7[%c2_70, %c0_71, %c0_72] : memref<8x8x512xf32, #tpu.memory_space<vmem>>, vector<1x8x512xf32>
    %82 = vector.shape_cast %81 : vector<1x8x512xf32> to vector<8x512xf32>
    %83 = vector.shape_cast %80 : vector<8x512xf32> to vector<1x8x512xf32>
    tpu.vector_store %arg7[%c2_70, %c0_71, %c0_72], %83 {strides = array<i32>} : memref<8x8x512xf32, #tpu.memory_space<vmem>>, vector<1x8x512xf32>,
    %c3_73 = arith.constant 3 : index
    %c0_74 = arith.constant 0 : index
    %84 = memref.load %arg1[%c3_73, %c0_74] : memref<8x8xi32, #tpu.memory_space<smem>>
    %85 = arith.index_cast %84 : i32 to index
    %c0_75 = arith.constant 0 : index
    %86 = vector.load %arg2[%85, %c0_75] : memref<16x512xf32, #tpu.memory_space<vmem>>, vector<1x512xf32>
    %c3_76 = arith.constant 3 : index
    %c1_77 = arith.constant 1 : index
    %87 = memref.load %arg1[%c3_76, %c1_77] : memref<8x8xi32, #tpu.memory_space<smem>>
    %88 = arith.index_cast %87 : i32 to index
    %c0_78 = arith.constant 0 : index
    %89 = vector.load %arg2[%88, %c0_78] : memref<16x512xf32, #tpu.memory_space<vmem>>, vector<1x512xf32>
    %c3_79 = arith.constant 3 : index
    %c2_80 = arith.constant 2 : index
    %90 = memref.load %arg1[%c3_79, %c2_80] : memref<8x8xi32, #tpu.memory_space<smem>>
    %91 = arith.index_cast %90 : i32 to index
    %c0_81 = arith.constant 0 : index
    %92 = vector.load %arg2[%91, %c0_81] : memref<16x512xf32, #tpu.memory_space<vmem>>, vector<1x512xf32>
    %c3_82 = arith.constant 3 : index
    %c3_83 = arith.constant 3 : index
    %93 = memref.load %arg1[%c3_82, %c3_83] : memref<8x8xi32, #tpu.memory_space<smem>>
    %94 = arith.index_cast %93 : i32 to index
    %c0_84 = arith.constant 0 : index
    %95 = vector.load %arg2[%94, %c0_84] : memref<16x512xf32, #tpu.memory_space<vmem>>, vector<1x512xf32>
    %c3_85 = arith.constant 3 : index
    %c4_86 = arith.constant 4 : index
    %96 = memref.load %arg1[%c3_85, %c4_86] : memref<8x8xi32, #tpu.memory_space<smem>>
    %97 = arith.index_cast %96 : i32 to index
    %c0_87 = arith.constant 0 : index
    %98 = vector.load %arg2[%97, %c0_87] : memref<16x512xf32, #tpu.memory_space<vmem>>, vector<1x512xf32>
    %c3_88 = arith.constant 3 : index
    %c5_89 = arith.constant 5 : index
    %99 = memref.load %arg1[%c3_88, %c5_89] : memref<8x8xi32, #tpu.memory_space<smem>>
    %100 = arith.index_cast %99 : i32 to index
    %c0_90 = arith.constant 0 : index
    %101 = vector.load %arg2[%100, %c0_90] : memref<16x512xf32, #tpu.memory_space<vmem>>, vector<1x512xf32>
    %c3_91 = arith.constant 3 : index
    %c6_92 = arith.constant 6 : index
    %102 = memref.load %arg1[%c3_91, %c6_92] : memref<8x8xi32, #tpu.memory_space<smem>>
    %103 = arith.index_cast %102 : i32 to index
    %c0_93 = arith.constant 0 : index
    %104 = vector.load %arg2[%103, %c0_93] : memref<16x512xf32, #tpu.memory_space<vmem>>, vector<1x512xf32>
    %c3_94 = arith.constant 3 : index
    %c7_95 = arith.constant 7 : index
    %105 = memref.load %arg1[%c3_94, %c7_95] : memref<8x8xi32, #tpu.memory_space<smem>>
    %106 = arith.index_cast %105 : i32 to index
    %c0_96 = arith.constant 0 : index
    %107 = vector.load %arg2[%106, %c0_96] : memref<16x512xf32, #tpu.memory_space<vmem>>, vector<1x512xf32>
    %108 = tpu.concatenate %86, %89, %92, %95, %98, %101, %104, %107 in 0 : vector<1x512xf32>, vector<1x512xf32>, vector<1x512xf32>, vector<1x512xf32>, vector<1x512xf32>, vector<1x512xf32>, vector<1x512xf32>, vector<1x512xf32> -> vector<8x512xf32>
    %c3_97 = arith.constant 3 : index
    %c0_98 = arith.constant 0 : index
    %c0_99 = arith.constant 0 : index
    %109 = vector.load %arg7[%c3_97, %c0_98, %c0_99] : memref<8x8x512xf32, #tpu.memory_space<vmem>>, vector<1x8x512xf32>
    %110 = vector.shape_cast %109 : vector<1x8x512xf32> to vector<8x512xf32>
    %111 = vector.shape_cast %108 : vector<8x512xf32> to vector<1x8x512xf32>
    tpu.vector_store %arg7[%c3_97, %c0_98, %c0_99], %111 {strides = array<i32>} : memref<8x8x512xf32, #tpu.memory_space<vmem>>, vector<1x8x512xf32>,
    %c4_100 = arith.constant 4 : index
    %c0_101 = arith.constant 0 : index
    %112 = memref.load %arg1[%c4_100, %c0_101] : memref<8x8xi32, #tpu.memory_space<smem>>
    %113 = arith.index_cast %112 : i32 to index
    %c0_102 = arith.constant 0 : index
    %114 = vector.load %arg2[%113, %c0_102] : memref<16x512xf32, #tpu.memory_space<vmem>>, vector<1x512xf32>
    %c4_103 = arith.constant 4 : index
    %c1_104 = arith.constant 1 : index
    %115 = memref.load %arg1[%c4_103, %c1_104] : memref<8x8xi32, #tpu.memory_space<smem>>
    %116 = arith.index_cast %115 : i32 to index
    %c0_105 = arith.constant 0 : index
    %117 = vector.load %arg2[%116, %c0_105] : memref<16x512xf32, #tpu.memory_space<vmem>>, vector<1x512xf32>
    %c4_106 = arith.constant 4 : index
    %c2_107 = arith.constant 2 : index
    %118 = memref.load %arg1[%c4_106, %c2_107] : memref<8x8xi32, #tpu.memory_space<smem>>
    %119 = arith.index_cast %118 : i32 to index
    %c0_108 = arith.constant 0 : index
    %120 = vector.load %arg2[%119, %c0_108] : memref<16x512xf32, #tpu.memory_space<vmem>>, vector<1x512xf32>
    %c4_109 = arith.constant 4 : index
    %c3_110 = arith.constant 3 : index
    %121 = memref.load %arg1[%c4_109, %c3_110] : memref<8x8xi32, #tpu.memory_space<smem>>
    %122 = arith.index_cast %121 : i32 to index
    %c0_111 = arith.constant 0 : index
    %123 = vector.load %arg2[%122, %c0_111] : memref<16x512xf32, #tpu.memory_space<vmem>>, vector<1x512xf32>
    %c4_112 = arith.constant 4 : index
    %c4_113 = arith.constant 4 : index
    %124 = memref.load %arg1[%c4_112, %c4_113] : memref<8x8xi32, #tpu.memory_space<smem>>
    %125 = arith.index_cast %124 : i32 to index
    %c0_114 = arith.constant 0 : index
    %126 = vector.load %arg2[%125, %c0_114] : memref<16x512xf32, #tpu.memory_space<vmem>>, vector<1x512xf32>
    %c4_115 = arith.constant 4 : index
    %c5_116 = arith.constant 5 : index
    %127 = memref.load %arg1[%c4_115, %c5_116] : memref<8x8xi32, #tpu.memory_space<smem>>
    %128 = arith.index_cast %127 : i32 to index
    %c0_117 = arith.constant 0 : index
    %129 = vector.load %arg2[%128, %c0_117] : memref<16x512xf32, #tpu.memory_space<vmem>>, vector<1x512xf32>
    %c4_118 = arith.constant 4 : index
    %c6_119 = arith.constant 6 : index
    %130 = memref.load %arg1[%c4_118, %c6_119] : memref<8x8xi32, #tpu.memory_space<smem>>
    %131 = arith.index_cast %130 : i32 to index
    %c0_120 = arith.constant 0 : index
    %132 = vector.load %arg2[%131, %c0_120] : memref<16x512xf32, #tpu.memory_space<vmem>>, vector<1x512xf32>
    %c4_121 = arith.constant 4 : index
    %c7_122 = arith.constant 7 : index
    %133 = memref.load %arg1[%c4_121, %c7_122] : memref<8x8xi32, #tpu.memory_space<smem>>
    %134 = arith.index_cast %133 : i32 to index
    %c0_123 = arith.constant 0 : index
    %135 = vector.load %arg2[%134, %c0_123] : memref<16x512xf32, #tpu.memory_space<vmem>>, vector<1x512xf32>
    %136 = tpu.concatenate %114, %117, %120, %123, %126, %129, %132, %135 in 0 : vector<1x512xf32>, vector<1x512xf32>, vector<1x512xf32>, vector<1x512xf32>, vector<1x512xf32>, vector<1x512xf32>, vector<1x512xf32>, vector<1x512xf32> -> vector<8x512xf32>
    %c4_124 = arith.constant 4 : index
    %c0_125 = arith.constant 0 : index
    %c0_126 = arith.constant 0 : index
    %137 = vector.load %arg7[%c4_124, %c0_125, %c0_126] : memref<8x8x512xf32, #tpu.memory_space<vmem>>, vector<1x8x512xf32>
    %138 = vector.shape_cast %137 : vector<1x8x512xf32> to vector<8x512xf32>
    %139 = vector.shape_cast %136 : vector<8x512xf32> to vector<1x8x512xf32>
    tpu.vector_store %arg7[%c4_124, %c0_125, %c0_126], %139 {strides = array<i32>} : memref<8x8x512xf32, #tpu.memory_space<vmem>>, vector<1x8x512xf32>,
    %c5_127 = arith.constant 5 : index
    %c0_128 = arith.constant 0 : index
    %140 = memref.load %arg1[%c5_127, %c0_128] : memref<8x8xi32, #tpu.memory_space<smem>>
    %141 = arith.index_cast %140 : i32 to index
    %c0_129 = arith.constant 0 : index
    %142 = vector.load %arg2[%141, %c0_129] : memref<16x512xf32, #tpu.memory_space<vmem>>, vector<1x512xf32>
    %c5_130 = arith.constant 5 : index
    %c1_131 = arith.constant 1 : index
    %143 = memref.load %arg1[%c5_130, %c1_131] : memref<8x8xi32, #tpu.memory_space<smem>>
    %144 = arith.index_cast %143 : i32 to index
    %c0_132 = arith.constant 0 : index
    %145 = vector.load %arg2[%144, %c0_132] : memref<16x512xf32, #tpu.memory_space<vmem>>, vector<1x512xf32>
    %c5_133 = arith.constant 5 : index
    %c2_134 = arith.constant 2 : index
    %146 = memref.load %arg1[%c5_133, %c2_134] : memref<8x8xi32, #tpu.memory_space<smem>>
    %147 = arith.index_cast %146 : i32 to index
    %c0_135 = arith.constant 0 : index
    %148 = vector.load %arg2[%147, %c0_135] : memref<16x512xf32, #tpu.memory_space<vmem>>, vector<1x512xf32>
    %c5_136 = arith.constant 5 : index
    %c3_137 = arith.constant 3 : index
    %149 = memref.load %arg1[%c5_136, %c3_137] : memref<8x8xi32, #tpu.memory_space<smem>>
    %150 = arith.index_cast %149 : i32 to index
    %c0_138 = arith.constant 0 : index
    %151 = vector.load %arg2[%150, %c0_138] : memref<16x512xf32, #tpu.memory_space<vmem>>, vector<1x512xf32>
    %c5_139 = arith.constant 5 : index
    %c4_140 = arith.constant 4 : index
    %152 = memref.load %arg1[%c5_139, %c4_140] : memref<8x8xi32, #tpu.memory_space<smem>>
    %153 = arith.index_cast %152 : i32 to index
    %c0_141 = arith.constant 0 : index
    %154 = vector.load %arg2[%153, %c0_141] : memref<16x512xf32, #tpu.memory_space<vmem>>, vector<1x512xf32>
    %c5_142 = arith.constant 5 : index
    %c5_143 = arith.constant 5 : index
    %155 = memref.load %arg1[%c5_142, %c5_143] : memref<8x8xi32, #tpu.memory_space<smem>>
    %156 = arith.index_cast %155 : i32 to index
    %c0_144 = arith.constant 0 : index
    %157 = vector.load %arg2[%156, %c0_144] : memref<16x512xf32, #tpu.memory_space<vmem>>, vector<1x512xf32>
    %c5_145 = arith.constant 5 : index
    %c6_146 = arith.constant 6 : index
    %158 = memref.load %arg1[%c5_145, %c6_146] : memref<8x8xi32, #tpu.memory_space<smem>>
    %159 = arith.index_cast %158 : i32 to index
    %c0_147 = arith.constant 0 : index
    %160 = vector.load %arg2[%159, %c0_147] : memref<16x512xf32, #tpu.memory_space<vmem>>, vector<1x512xf32>
    %c5_148 = arith.constant 5 : index
    %c7_149 = arith.constant 7 : index
    %161 = memref.load %arg1[%c5_148, %c7_149] : memref<8x8xi32, #tpu.memory_space<smem>>
    %162 = arith.index_cast %161 : i32 to index
    %c0_150 = arith.constant 0 : index
    %163 = vector.load %arg2[%162, %c0_150] : memref<16x512xf32, #tpu.memory_space<vmem>>, vector<1x512xf32>
    %164 = tpu.concatenate %142, %145, %148, %151, %154, %157, %160, %163 in 0 : vector<1x512xf32>, vector<1x512xf32>, vector<1x512xf32>, vector<1x512xf32>, vector<1x512xf32>, vector<1x512xf32>, vector<1x512xf32>, vector<1x512xf32> -> vector<8x512xf32>
    %c5_151 = arith.constant 5 : index
    %c0_152 = arith.constant 0 : index
    %c0_153 = arith.constant 0 : index
    %165 = vector.load %arg7[%c5_151, %c0_152, %c0_153] : memref<8x8x512xf32, #tpu.memory_space<vmem>>, vector<1x8x512xf32>
    %166 = vector.shape_cast %165 : vector<1x8x512xf32> to vector<8x512xf32>
    %167 = vector.shape_cast %164 : vector<8x512xf32> to vector<1x8x512xf32>
    tpu.vector_store %arg7[%c5_151, %c0_152, %c0_153], %167 {strides = array<i32>} : memref<8x8x512xf32, #tpu.memory_space<vmem>>, vector<1x8x512xf32>,
    %c6_154 = arith.constant 6 : index
    %c0_155 = arith.constant 0 : index
    %168 = memref.load %arg1[%c6_154, %c0_155] : memref<8x8xi32, #tpu.memory_space<smem>>
    %169 = arith.index_cast %168 : i32 to index
    %c0_156 = arith.constant 0 : index
    %170 = vector.load %arg2[%169, %c0_156] : memref<16x512xf32, #tpu.memory_space<vmem>>, vector<1x512xf32>
    %c6_157 = arith.constant 6 : index
    %c1_158 = arith.constant 1 : index
    %171 = memref.load %arg1[%c6_157, %c1_158] : memref<8x8xi32, #tpu.memory_space<smem>>
    %172 = arith.index_cast %171 : i32 to index
    %c0_159 = arith.constant 0 : index
    %173 = vector.load %arg2[%172, %c0_159] : memref<16x512xf32, #tpu.memory_space<vmem>>, vector<1x512xf32>
    %c6_160 = arith.constant 6 : index
    %c2_161 = arith.constant 2 : index
    %174 = memref.load %arg1[%c6_160, %c2_161] : memref<8x8xi32, #tpu.memory_space<smem>>
    %175 = arith.index_cast %174 : i32 to index
    %c0_162 = arith.constant 0 : index
    %176 = vector.load %arg2[%175, %c0_162] : memref<16x512xf32, #tpu.memory_space<vmem>>, vector<1x512xf32>
    %c6_163 = arith.constant 6 : index
    %c3_164 = arith.constant 3 : index
    %177 = memref.load %arg1[%c6_163, %c3_164] : memref<8x8xi32, #tpu.memory_space<smem>>
    %178 = arith.index_cast %177 : i32 to index
    %c0_165 = arith.constant 0 : index
    %179 = vector.load %arg2[%178, %c0_165] : memref<16x512xf32, #tpu.memory_space<vmem>>, vector<1x512xf32>
    %c6_166 = arith.constant 6 : index
    %c4_167 = arith.constant 4 : index
    %180 = memref.load %arg1[%c6_166, %c4_167] : memref<8x8xi32, #tpu.memory_space<smem>>
    %181 = arith.index_cast %180 : i32 to index
    %c0_168 = arith.constant 0 : index
    %182 = vector.load %arg2[%181, %c0_168] : memref<16x512xf32, #tpu.memory_space<vmem>>, vector<1x512xf32>
    %c6_169 = arith.constant 6 : index
    %c5_170 = arith.constant 5 : index
    %183 = memref.load %arg1[%c6_169, %c5_170] : memref<8x8xi32, #tpu.memory_space<smem>>
    %184 = arith.index_cast %183 : i32 to index
    %c0_171 = arith.constant 0 : index
    %185 = vector.load %arg2[%184, %c0_171] : memref<16x512xf32, #tpu.memory_space<vmem>>, vector<1x512xf32>
    %c6_172 = arith.constant 6 : index
    %c6_173 = arith.constant 6 : index
    %186 = memref.load %arg1[%c6_172, %c6_173] : memref<8x8xi32, #tpu.memory_space<smem>>
    %187 = arith.index_cast %186 : i32 to index
    %c0_174 = arith.constant 0 : index
    %188 = vector.load %arg2[%187, %c0_174] : memref<16x512xf32, #tpu.memory_space<vmem>>, vector<1x512xf32>
    %c6_175 = arith.constant 6 : index
    %c7_176 = arith.constant 7 : index
    %189 = memref.load %arg1[%c6_175, %c7_176] : memref<8x8xi32, #tpu.memory_space<smem>>
    %190 = arith.index_cast %189 : i32 to index
    %c0_177 = arith.constant 0 : index
    %191 = vector.load %arg2[%190, %c0_177] : memref<16x512xf32, #tpu.memory_space<vmem>>, vector<1x512xf32>
    %192 = tpu.concatenate %170, %173, %176, %179, %182, %185, %188, %191 in 0 : vector<1x512xf32>, vector<1x512xf32>, vector<1x512xf32>, vector<1x512xf32>, vector<1x512xf32>, vector<1x512xf32>, vector<1x512xf32>, vector<1x512xf32> -> vector<8x512xf32>
    %c6_178 = arith.constant 6 : index
    %c0_179 = arith.constant 0 : index
    %c0_180 = arith.constant 0 : index
    %193 = vector.load %arg7[%c6_178, %c0_179, %c0_180] : memref<8x8x512xf32, #tpu.memory_space<vmem>>, vector<1x8x512xf32>
    %194 = vector.shape_cast %193 : vector<1x8x512xf32> to vector<8x512xf32>
    %195 = vector.shape_cast %192 : vector<8x512xf32> to vector<1x8x512xf32>
    tpu.vector_store %arg7[%c6_178, %c0_179, %c0_180], %195 {strides = array<i32>} : memref<8x8x512xf32, #tpu.memory_space<vmem>>, vector<1x8x512xf32>,
    %c7_181 = arith.constant 7 : index
    %c0_182 = arith.constant 0 : index
    %196 = memref.load %arg1[%c7_181, %c0_182] : memref<8x8xi32, #tpu.memory_space<smem>>
    %197 = arith.index_cast %196 : i32 to index
    %c0_183 = arith.constant 0 : index
    %198 = vector.load %arg2[%197, %c0_183] : memref<16x512xf32, #tpu.memory_space<vmem>>, vector<1x512xf32>
    %c7_184 = arith.constant 7 : index
    %c1_185 = arith.constant 1 : index
    %199 = memref.load %arg1[%c7_184, %c1_185] : memref<8x8xi32, #tpu.memory_space<smem>>
    %200 = arith.index_cast %199 : i32 to index
    %c0_186 = arith.constant 0 : index
    %201 = vector.load %arg2[%200, %c0_186] : memref<16x512xf32, #tpu.memory_space<vmem>>, vector<1x512xf32>
    %c7_187 = arith.constant 7 : index
    %c2_188 = arith.constant 2 : index
    %202 = memref.load %arg1[%c7_187, %c2_188] : memref<8x8xi32, #tpu.memory_space<smem>>
    %203 = arith.index_cast %202 : i32 to index
    %c0_189 = arith.constant 0 : index
    %204 = vector.load %arg2[%203, %c0_189] : memref<16x512xf32, #tpu.memory_space<vmem>>, vector<1x512xf32>
    %c7_190 = arith.constant 7 : index
    %c3_191 = arith.constant 3 : index
    %205 = memref.load %arg1[%c7_190, %c3_191] : memref<8x8xi32, #tpu.memory_space<smem>>
    %206 = arith.index_cast %205 : i32 to index
    %c0_192 = arith.constant 0 : index
    %207 = vector.load %arg2[%206, %c0_192] : memref<16x512xf32, #tpu.memory_space<vmem>>, vector<1x512xf32>
    %c7_193 = arith.constant 7 : index
    %c4_194 = arith.constant 4 : index
    %208 = memref.load %arg1[%c7_193, %c4_194] : memref<8x8xi32, #tpu.memory_space<smem>>
    %209 = arith.index_cast %208 : i32 to index
    %c0_195 = arith.constant 0 : index
    %210 = vector.load %arg2[%209, %c0_195] : memref<16x512xf32, #tpu.memory_space<vmem>>, vector<1x512xf32>
    %c7_196 = arith.constant 7 : index
    %c5_197 = arith.constant 5 : index
    %211 = memref.load %arg1[%c7_196, %c5_197] : memref<8x8xi32, #tpu.memory_space<smem>>
    %212 = arith.index_cast %211 : i32 to index
    %c0_198 = arith.constant 0 : index
    %213 = vector.load %arg2[%212, %c0_198] : memref<16x512xf32, #tpu.memory_space<vmem>>, vector<1x512xf32>
    %c7_199 = arith.constant 7 : index
    %c6_200 = arith.constant 6 : index
    %214 = memref.load %arg1[%c7_199, %c6_200] : memref<8x8xi32, #tpu.memory_space<smem>>
    %215 = arith.index_cast %214 : i32 to index
    %c0_201 = arith.constant 0 : index
    %216 = vector.load %arg2[%215, %c0_201] : memref<16x512xf32, #tpu.memory_space<vmem>>, vector<1x512xf32>
    %c7_202 = arith.constant 7 : index
    %c7_203 = arith.constant 7 : index
    %217 = memref.load %arg1[%c7_202, %c7_203] : memref<8x8xi32, #tpu.memory_space<smem>>
    %218 = arith.index_cast %217 : i32 to index
    %c0_204 = arith.constant 0 : index
    %219 = vector.load %arg2[%218, %c0_204] : memref<16x512xf32, #tpu.memory_space<vmem>>, vector<1x512xf32>
    %220 = tpu.concatenate %198, %201, %204, %207, %210, %213, %216, %219 in 0 : vector<1x512xf32>, vector<1x512xf32>, vector<1x512xf32>, vector<1x512xf32>, vector<1x512xf32>, vector<1x512xf32>, vector<1x512xf32>, vector<1x512xf32> -> vector<8x512xf32>
    %c7_205 = arith.constant 7 : index
    %c0_206 = arith.constant 0 : index
    %c0_207 = arith.constant 0 : index
    %221 = vector.load %arg7[%c7_205, %c0_206, %c0_207] : memref<8x8x512xf32, #tpu.memory_space<vmem>>, vector<1x8x512xf32>
    %222 = vector.shape_cast %221 : vector<1x8x512xf32> to vector<8x512xf32>
    %223 = vector.shape_cast %220 : vector<8x512xf32> to vector<1x8x512xf32>
    tpu.vector_store %arg7[%c7_205, %c0_206, %c0_207], %223 {strides = array<i32>} : memref<8x8x512xf32, #tpu.memory_space<vmem>>, vector<1x8x512xf32>,
    %c0_208 = arith.constant 0 : index
    %c0_209 = arith.constant 0 : index
    %224 = vector.load %arg3[%c0_208, %c0_209] : memref<128x512xbf16, #tpu.memory_space<vmem>>, vector<128x512xbf16>
    %cst = arith.constant 0.000000e+00 : f32
    %225 = vector.broadcast %cst : f32 to vector<8x128xf32>
    %cst_210 = arith.constant 0.000000e+00 : f32
    %226 = vector.broadcast %cst_210 : f32 to vector<8x128xf32>
    %c0_i32 = arith.constant 0 : i32
    %227 = arith.index_cast %c0_i32 : i32 to index
    %c0_211 = arith.constant 0 : index
    %c0_212 = arith.constant 0 : index
    %228 = vector.load %arg7[%227, %c0_211, %c0_212] : memref<8x8x512xf32, #tpu.memory_space<vmem>>, vector<1x8x512xf32>
    %229 = vector.shape_cast %228 : vector<1x8x512xf32> to vector<8x512xf32>
    %230 = arith.truncf %225 : vector<8x128xf32> to vector<8x128xbf16>
    %cst_213 = arith.constant dense<0.000000e+00> : vector<8x512xf32>
    %231 = tpu.matmul %230, %224, %cst_213 {dimension_numbers = #tpu.dot_dimension_numbers<[1], [0], [0], [1], [0, 0, 1, 1], [], []>} : vector<8x128xbf16>, vector<128x512xbf16>, vector<8x512xf32> -> vector<8x512xf32>
    %232 = arith.addf %229, %231 : vector<8x512xf32>
    %233 = vector.extract_strided_slice %232 {offsets = [0, 0], sizes = [8, 128], strides = [1, 1]} : vector<8x512xf32> to vector<8x128xf32>
    %234 = arith.negf %233 : vector<8x128xf32>
    %235 = math.exp %234 : vector<8x128xf32>
    %cst_214 = arith.constant 1.000000e+00 : f32
    %236 = vector.broadcast %cst_214 : f32 to vector<8x128xf32>
    %237 = arith.addf %236, %235 : vector<8x128xf32>
    %238 = arith.divf %236, %237 : vector<8x128xf32>
    %239 = vector.extract_strided_slice %232 {offsets = [0, 128], sizes = [8, 128], strides = [1, 1]} : vector<8x512xf32> to vector<8x128xf32>
    %240 = arith.negf %239 : vector<8x128xf32>
    %241 = math.exp %240 : vector<8x128xf32>
    %cst_215 = arith.constant 1.000000e+00 : f32
    %242 = vector.broadcast %cst_215 : f32 to vector<8x128xf32>
    %243 = arith.addf %242, %241 : vector<8x128xf32>
    %244 = arith.divf %242, %243 : vector<8x128xf32>
    %245 = vector.extract_strided_slice %232 {offsets = [0, 256], sizes = [8, 128], strides = [1, 1]} : vector<8x512xf32> to vector<8x128xf32>
    %246 = math.tanh %245 : vector<8x128xf32>
    %247 = vector.extract_strided_slice %232 {offsets = [0, 384], sizes = [8, 128], strides = [1, 1]} : vector<8x512xf32> to vector<8x128xf32>
    %248 = arith.negf %247 : vector<8x128xf32>
    %249 = math.exp %248 : vector<8x128xf32>
    %cst_216 = arith.constant 1.000000e+00 : f32
    %250 = vector.broadcast %cst_216 : f32 to vector<8x128xf32>
    %251 = arith.addf %250, %249 : vector<8x128xf32>
    %252 = arith.divf %250, %251 : vector<8x128xf32>
    %253 = arith.mulf %244, %226 : vector<8x128xf32>
    %254 = arith.mulf %238, %246 : vector<8x128xf32>
    %255 = arith.addf %253, %254 : vector<8x128xf32>
    %256 = math.tanh %255 : vector<8x128xf32>
    %257 = arith.mulf %252, %256 : vector<8x128xf32>
    %c1_i32 = arith.constant 1 : i32
    %258 = arith.index_cast %c1_i32 : i32 to index
    %c0_217 = arith.constant 0 : index
    %c0_218 = arith.constant 0 : index
    %259 = vector.load %arg7[%258, %c0_217, %c0_218] : memref<8x8x512xf32, #tpu.memory_space<vmem>>, vector<1x8x512xf32>
    %260 = vector.shape_cast %259 : vector<1x8x512xf32> to vector<8x512xf32>
    %261 = arith.truncf %257 : vector<8x128xf32> to vector<8x128xbf16>
    %cst_219 = arith.constant dense<0.000000e+00> : vector<8x512xf32>
    %262 = tpu.matmul %261, %224, %cst_219 {dimension_numbers = #tpu.dot_dimension_numbers<[1], [0], [0], [1], [0, 0, 1, 1], [], []>} : vector<8x128xbf16>, vector<128x512xbf16>, vector<8x512xf32> -> vector<8x512xf32>
    %263 = arith.addf %260, %262 : vector<8x512xf32>
    %264 = vector.extract_strided_slice %263 {offsets = [0, 0], sizes = [8, 128], strides = [1, 1]} : vector<8x512xf32> to vector<8x128xf32>
    %265 = arith.negf %264 : vector<8x128xf32>
    %266 = math.exp %265 : vector<8x128xf32>
    %cst_220 = arith.constant 1.000000e+00 : f32
    %267 = vector.broadcast %cst_220 : f32 to vector<8x128xf32>
    %268 = arith.addf %267, %266 : vector<8x128xf32>
    %269 = arith.divf %267, %268 : vector<8x128xf32>
    %270 = vector.extract_strided_slice %263 {offsets = [0, 128], sizes = [8, 128], strides = [1, 1]} : vector<8x512xf32> to vector<8x128xf32>
    %271 = arith.negf %270 : vector<8x128xf32>
    %272 = math.exp %271 : vector<8x128xf32>
    %cst_221 = arith.constant 1.000000e+00 : f32
    %273 = vector.broadcast %cst_221 : f32 to vector<8x128xf32>
    %274 = arith.addf %273, %272 : vector<8x128xf32>
    %275 = arith.divf %273, %274 : vector<8x128xf32>
    %276 = vector.extract_strided_slice %263 {offsets = [0, 256], sizes = [8, 128], strides = [1, 1]} : vector<8x512xf32> to vector<8x128xf32>
    %277 = math.tanh %276 : vector<8x128xf32>
    %278 = vector.extract_strided_slice %263 {offsets = [0, 384], sizes = [8, 128], strides = [1, 1]} : vector<8x512xf32> to vector<8x128xf32>
    %279 = arith.negf %278 : vector<8x128xf32>
    %280 = math.exp %279 : vector<8x128xf32>
    %cst_222 = arith.constant 1.000000e+00 : f32
    %281 = vector.broadcast %cst_222 : f32 to vector<8x128xf32>
    %282 = arith.addf %281, %280 : vector<8x128xf32>
    %283 = arith.divf %281, %282 : vector<8x128xf32>
    %284 = arith.mulf %275, %255 : vector<8x128xf32>
    %285 = arith.mulf %269, %277 : vector<8x128xf32>
    %286 = arith.addf %284, %285 : vector<8x128xf32>
    %287 = math.tanh %286 : vector<8x128xf32>
    %288 = arith.mulf %283, %287 : vector<8x128xf32>
    %c2_i32 = arith.constant 2 : i32
    %289 = arith.index_cast %c2_i32 : i32 to index
    %c0_223 = arith.constant 0 : index
    %c0_224 = arith.constant 0 : index
    %290 = vector.load %arg7[%289, %c0_223, %c0_224] : memref<8x8x512xf32, #tpu.memory_space<vmem>>, vector<1x8x512xf32>
    %291 = vector.shape_cast %290 : vector<1x8x512xf32> to vector<8x512xf32>
    %292 = arith.truncf %288 : vector<8x128xf32> to vector<8x128xbf16>
    %cst_225 = arith.constant dense<0.000000e+00> : vector<8x512xf32>
    %293 = tpu.matmul %292, %224, %cst_225 {dimension_numbers = #tpu.dot_dimension_numbers<[1], [0], [0], [1], [0, 0, 1, 1], [], []>} : vector<8x128xbf16>, vector<128x512xbf16>, vector<8x512xf32> -> vector<8x512xf32>
    %294 = arith.addf %291, %293 : vector<8x512xf32>
    %295 = vector.extract_strided_slice %294 {offsets = [0, 0], sizes = [8, 128], strides = [1, 1]} : vector<8x512xf32> to vector<8x128xf32>
    %296 = arith.negf %295 : vector<8x128xf32>
    %297 = math.exp %296 : vector<8x128xf32>
    %cst_226 = arith.constant 1.000000e+00 : f32
    %298 = vector.broadcast %cst_226 : f32 to vector<8x128xf32>
    %299 = arith.addf %298, %297 : vector<8x128xf32>
    %300 = arith.divf %298, %299 : vector<8x128xf32>
    %301 = vector.extract_strided_slice %294 {offsets = [0, 128], sizes = [8, 128], strides = [1, 1]} : vector<8x512xf32> to vector<8x128xf32>
    %302 = arith.negf %301 : vector<8x128xf32>
    %303 = math.exp %302 : vector<8x128xf32>
    %cst_227 = arith.constant 1.000000e+00 : f32
    %304 = vector.broadcast %cst_227 : f32 to vector<8x128xf32>
    %305 = arith.addf %304, %303 : vector<8x128xf32>
    %306 = arith.divf %304, %305 : vector<8x128xf32>
    %307 = vector.extract_strided_slice %294 {offsets = [0, 256], sizes = [8, 128], strides = [1, 1]} : vector<8x512xf32> to vector<8x128xf32>
    %308 = math.tanh %307 : vector<8x128xf32>
    %309 = vector.extract_strided_slice %294 {offsets = [0, 384], sizes = [8, 128], strides = [1, 1]} : vector<8x512xf32> to vector<8x128xf32>
    %310 = arith.negf %309 : vector<8x128xf32>
    %311 = math.exp %310 : vector<8x128xf32>
    %cst_228 = arith.constant 1.000000e+00 : f32
    %312 = vector.broadcast %cst_228 : f32 to vector<8x128xf32>
    %313 = arith.addf %312, %311 : vector<8x128xf32>
    %314 = arith.divf %312, %313 : vector<8x128xf32>
    %315 = arith.mulf %306, %286 : vector<8x128xf32>
    %316 = arith.mulf %300, %308 : vector<8x128xf32>
    %317 = arith.addf %315, %316 : vector<8x128xf32>
    %318 = math.tanh %317 : vector<8x128xf32>
    %319 = arith.mulf %314, %318 : vector<8x128xf32>
    %c3_i32 = arith.constant 3 : i32
    %320 = arith.index_cast %c3_i32 : i32 to index
    %c0_229 = arith.constant 0 : index
    %c0_230 = arith.constant 0 : index
    %321 = vector.load %arg7[%320, %c0_229, %c0_230] : memref<8x8x512xf32, #tpu.memory_space<vmem>>, vector<1x8x512xf32>
    %322 = vector.shape_cast %321 : vector<1x8x512xf32> to vector<8x512xf32>
    %323 = arith.truncf %319 : vector<8x128xf32> to vector<8x128xbf16>
    %cst_231 = arith.constant dense<0.000000e+00> : vector<8x512xf32>
    %324 = tpu.matmul %323, %224, %cst_231 {dimension_numbers = #tpu.dot_dimension_numbers<[1], [0], [0], [1], [0, 0, 1, 1], [], []>} : vector<8x128xbf16>, vector<128x512xbf16>, vector<8x512xf32> -> vector<8x512xf32>
    %325 = arith.addf %322, %324 : vector<8x512xf32>
    %326 = vector.extract_strided_slice %325 {offsets = [0, 0], sizes = [8, 128], strides = [1, 1]} : vector<8x512xf32> to vector<8x128xf32>
    %327 = arith.negf %326 : vector<8x128xf32>
    %328 = math.exp %327 : vector<8x128xf32>
    %cst_232 = arith.constant 1.000000e+00 : f32
    %329 = vector.broadcast %cst_232 : f32 to vector<8x128xf32>
    %330 = arith.addf %329, %328 : vector<8x128xf32>
    %331 = arith.divf %329, %330 : vector<8x128xf32>
    %332 = vector.extract_strided_slice %325 {offsets = [0, 128], sizes = [8, 128], strides = [1, 1]} : vector<8x512xf32> to vector<8x128xf32>
    %333 = arith.negf %332 : vector<8x128xf32>
    %334 = math.exp %333 : vector<8x128xf32>
    %cst_233 = arith.constant 1.000000e+00 : f32
    %335 = vector.broadcast %cst_233 : f32 to vector<8x128xf32>
    %336 = arith.addf %335, %334 : vector<8x128xf32>
    %337 = arith.divf %335, %336 : vector<8x128xf32>
    %338 = vector.extract_strided_slice %325 {offsets = [0, 256], sizes = [8, 128], strides = [1, 1]} : vector<8x512xf32> to vector<8x128xf32>
    %339 = math.tanh %338 : vector<8x128xf32>
    %340 = vector.extract_strided_slice %325 {offsets = [0, 384], sizes = [8, 128], strides = [1, 1]} : vector<8x512xf32> to vector<8x128xf32>
    %341 = arith.negf %340 : vector<8x128xf32>
    %342 = math.exp %341 : vector<8x128xf32>
    %cst_234 = arith.constant 1.000000e+00 : f32
    %343 = vector.broadcast %cst_234 : f32 to vector<8x128xf32>
    %344 = arith.addf %343, %342 : vector<8x128xf32>
    %345 = arith.divf %343, %344 : vector<8x128xf32>
    %346 = arith.mulf %337, %317 : vector<8x128xf32>
    %347 = arith.mulf %331, %339 : vector<8x128xf32>
    %348 = arith.addf %346, %347 : vector<8x128xf32>
    %349 = math.tanh %348 : vector<8x128xf32>
    %350 = arith.mulf %345, %349 : vector<8x128xf32>
    %c4_i32 = arith.constant 4 : i32
    %351 = arith.index_cast %c4_i32 : i32 to index
    %c0_235 = arith.constant 0 : index
    %c0_236 = arith.constant 0 : index
    %352 = vector.load %arg7[%351, %c0_235, %c0_236] : memref<8x8x512xf32, #tpu.memory_space<vmem>>, vector<1x8x512xf32>
    %353 = vector.shape_cast %352 : vector<1x8x512xf32> to vector<8x512xf32>
    %354 = arith.truncf %350 : vector<8x128xf32> to vector<8x128xbf16>
    %cst_237 = arith.constant dense<0.000000e+00> : vector<8x512xf32>
    %355 = tpu.matmul %354, %224, %cst_237 {dimension_numbers = #tpu.dot_dimension_numbers<[1], [0], [0], [1], [0, 0, 1, 1], [], []>} : vector<8x128xbf16>, vector<128x512xbf16>, vector<8x512xf32> -> vector<8x512xf32>
    %356 = arith.addf %353, %355 : vector<8x512xf32>
    %357 = vector.extract_strided_slice %356 {offsets = [0, 0], sizes = [8, 128], strides = [1, 1]} : vector<8x512xf32> to vector<8x128xf32>
    %358 = arith.negf %357 : vector<8x128xf32>
    %359 = math.exp %358 : vector<8x128xf32>
    %cst_238 = arith.constant 1.000000e+00 : f32
    %360 = vector.broadcast %cst_238 : f32 to vector<8x128xf32>
    %361 = arith.addf %360, %359 : vector<8x128xf32>
    %362 = arith.divf %360, %361 : vector<8x128xf32>
    %363 = vector.extract_strided_slice %356 {offsets = [0, 128], sizes = [8, 128], strides = [1, 1]} : vector<8x512xf32> to vector<8x128xf32>
    %364 = arith.negf %363 : vector<8x128xf32>
    %365 = math.exp %364 : vector<8x128xf32>
    %cst_239 = arith.constant 1.000000e+00 : f32
    %366 = vector.broadcast %cst_239 : f32 to vector<8x128xf32>
    %367 = arith.addf %366, %365 : vector<8x128xf32>
    %368 = arith.divf %366, %367 : vector<8x128xf32>
    %369 = vector.extract_strided_slice %356 {offsets = [0, 256], sizes = [8, 128], strides = [1, 1]} : vector<8x512xf32> to vector<8x128xf32>
    %370 = math.tanh %369 : vector<8x128xf32>
    %371 = vector.extract_strided_slice %356 {offsets = [0, 384], sizes = [8, 128], strides = [1, 1]} : vector<8x512xf32> to vector<8x128xf32>
    %372 = arith.negf %371 : vector<8x128xf32>
    %373 = math.exp %372 : vector<8x128xf32>
    %cst_240 = arith.constant 1.000000e+00 : f32
    %374 = vector.broadcast %cst_240 : f32 to vector<8x128xf32>
    %375 = arith.addf %374, %373 : vector<8x128xf32>
    %376 = arith.divf %374, %375 : vector<8x128xf32>
    %377 = arith.mulf %368, %348 : vector<8x128xf32>
    %378 = arith.mulf %362, %370 : vector<8x128xf32>
    %379 = arith.addf %377, %378 : vector<8x128xf32>
    %380 = math.tanh %379 : vector<8x128xf32>
    %381 = arith.mulf %376, %380 : vector<8x128xf32>
    %c5_i32 = arith.constant 5 : i32
    %382 = arith.index_cast %c5_i32 : i32 to index
    %c0_241 = arith.constant 0 : index
    %c0_242 = arith.constant 0 : index
    %383 = vector.load %arg7[%382, %c0_241, %c0_242] : memref<8x8x512xf32, #tpu.memory_space<vmem>>, vector<1x8x512xf32>
    %384 = vector.shape_cast %383 : vector<1x8x512xf32> to vector<8x512xf32>
    %385 = arith.truncf %381 : vector<8x128xf32> to vector<8x128xbf16>
    %cst_243 = arith.constant dense<0.000000e+00> : vector<8x512xf32>
    %386 = tpu.matmul %385, %224, %cst_243 {dimension_numbers = #tpu.dot_dimension_numbers<[1], [0], [0], [1], [0, 0, 1, 1], [], []>} : vector<8x128xbf16>, vector<128x512xbf16>, vector<8x512xf32> -> vector<8x512xf32>
    %387 = arith.addf %384, %386 : vector<8x512xf32>
    %388 = vector.extract_strided_slice %387 {offsets = [0, 0], sizes = [8, 128], strides = [1, 1]} : vector<8x512xf32> to vector<8x128xf32>
    %389 = arith.negf %388 : vector<8x128xf32>
    %390 = math.exp %389 : vector<8x128xf32>
    %cst_244 = arith.constant 1.000000e+00 : f32
    %391 = vector.broadcast %cst_244 : f32 to vector<8x128xf32>
    %392 = arith.addf %391, %390 : vector<8x128xf32>
    %393 = arith.divf %391, %392 : vector<8x128xf32>
    %394 = vector.extract_strided_slice %387 {offsets = [0, 128], sizes = [8, 128], strides = [1, 1]} : vector<8x512xf32> to vector<8x128xf32>
    %395 = arith.negf %394 : vector<8x128xf32>
    %396 = math.exp %395 : vector<8x128xf32>
    %cst_245 = arith.constant 1.000000e+00 : f32
    %397 = vector.broadcast %cst_245 : f32 to vector<8x128xf32>
    %398 = arith.addf %397, %396 : vector<8x128xf32>
    %399 = arith.divf %397, %398 : vector<8x128xf32>
    %400 = vector.extract_strided_slice %387 {offsets = [0, 256], sizes = [8, 128], strides = [1, 1]} : vector<8x512xf32> to vector<8x128xf32>
    %401 = math.tanh %400 : vector<8x128xf32>
    %402 = vector.extract_strided_slice %387 {offsets = [0, 384], sizes = [8, 128], strides = [1, 1]} : vector<8x512xf32> to vector<8x128xf32>
    %403 = arith.negf %402 : vector<8x128xf32>
    %404 = math.exp %403 : vector<8x128xf32>
    %cst_246 = arith.constant 1.000000e+00 : f32
    %405 = vector.broadcast %cst_246 : f32 to vector<8x128xf32>
    %406 = arith.addf %405, %404 : vector<8x128xf32>
    %407 = arith.divf %405, %406 : vector<8x128xf32>
    %408 = arith.mulf %399, %379 : vector<8x128xf32>
    %409 = arith.mulf %393, %401 : vector<8x128xf32>
    %410 = arith.addf %408, %409 : vector<8x128xf32>
    %411 = math.tanh %410 : vector<8x128xf32>
    %412 = arith.mulf %407, %411 : vector<8x128xf32>
    %c6_i32 = arith.constant 6 : i32
    %413 = arith.index_cast %c6_i32 : i32 to index
    %c0_247 = arith.constant 0 : index
    %c0_248 = arith.constant 0 : index
    %414 = vector.load %arg7[%413, %c0_247, %c0_248] : memref<8x8x512xf32, #tpu.memory_space<vmem>>, vector<1x8x512xf32>
    %415 = vector.shape_cast %414 : vector<1x8x512xf32> to vector<8x512xf32>
    %416 = arith.truncf %412 : vector<8x128xf32> to vector<8x128xbf16>
    %cst_249 = arith.constant dense<0.000000e+00> : vector<8x512xf32>
    %417 = tpu.matmul %416, %224, %cst_249 {dimension_numbers = #tpu.dot_dimension_numbers<[1], [0], [0], [1], [0, 0, 1, 1], [], []>} : vector<8x128xbf16>, vector<128x512xbf16>, vector<8x512xf32> -> vector<8x512xf32>
    %418 = arith.addf %415, %417 : vector<8x512xf32>
    %419 = vector.extract_strided_slice %418 {offsets = [0, 0], sizes = [8, 128], strides = [1, 1]} : vector<8x512xf32> to vector<8x128xf32>
    %420 = arith.negf %419 : vector<8x128xf32>
    %421 = math.exp %420 : vector<8x128xf32>
    %cst_250 = arith.constant 1.000000e+00 : f32
    %422 = vector.broadcast %cst_250 : f32 to vector<8x128xf32>
    %423 = arith.addf %422, %421 : vector<8x128xf32>
    %424 = arith.divf %422, %423 : vector<8x128xf32>
    %425 = vector.extract_strided_slice %418 {offsets = [0, 128], sizes = [8, 128], strides = [1, 1]} : vector<8x512xf32> to vector<8x128xf32>
    %426 = arith.negf %425 : vector<8x128xf32>
    %427 = math.exp %426 : vector<8x128xf32>
    %cst_251 = arith.constant 1.000000e+00 : f32
    %428 = vector.broadcast %cst_251 : f32 to vector<8x128xf32>
    %429 = arith.addf %428, %427 : vector<8x128xf32>
    %430 = arith.divf %428, %429 : vector<8x128xf32>
    %431 = vector.extract_strided_slice %418 {offsets = [0, 256], sizes = [8, 128], strides = [1, 1]} : vector<8x512xf32> to vector<8x128xf32>
    %432 = math.tanh %431 : vector<8x128xf32>
    %433 = vector.extract_strided_slice %418 {offsets = [0, 384], sizes = [8, 128], strides = [1, 1]} : vector<8x512xf32> to vector<8x128xf32>
    %434 = arith.negf %433 : vector<8x128xf32>
    %435 = math.exp %434 : vector<8x128xf32>
    %cst_252 = arith.constant 1.000000e+00 : f32
    %436 = vector.broadcast %cst_252 : f32 to vector<8x128xf32>
    %437 = arith.addf %436, %435 : vector<8x128xf32>
    %438 = arith.divf %436, %437 : vector<8x128xf32>
    %439 = arith.mulf %430, %410 : vector<8x128xf32>
    %440 = arith.mulf %424, %432 : vector<8x128xf32>
    %441 = arith.addf %439, %440 : vector<8x128xf32>
    %442 = math.tanh %441 : vector<8x128xf32>
    %443 = arith.mulf %438, %442 : vector<8x128xf32>
    %c7_i32 = arith.constant 7 : i32
    %444 = arith.index_cast %c7_i32 : i32 to index
    %c0_253 = arith.constant 0 : index
    %c0_254 = arith.constant 0 : index
    %445 = vector.load %arg7[%444, %c0_253, %c0_254] : memref<8x8x512xf32, #tpu.memory_space<vmem>>, vector<1x8x512xf32>
    %446 = vector.shape_cast %445 : vector<1x8x512xf32> to vector<8x512xf32>
    %447 = arith.truncf %443 : vector<8x128xf32> to vector<8x128xbf16>
    %cst_255 = arith.constant dense<0.000000e+00> : vector<8x512xf32>
    %448 = tpu.matmul %447, %224, %cst_255 {dimension_numbers = #tpu.dot_dimension_numbers<[1], [0], [0], [1], [0, 0, 1, 1], [], []>} : vector<8x128xbf16>, vector<128x512xbf16>, vector<8x512xf32> -> vector<8x512xf32>
    %449 = arith.addf %446, %448 : vector<8x512xf32>
    %450 = vector.extract_strided_slice %449 {offsets = [0, 0], sizes = [8, 128], strides = [1, 1]} : vector<8x512xf32> to vector<8x128xf32>
    %451 = arith.negf %450 : vector<8x128xf32>
    %452 = math.exp %451 : vector<8x128xf32>
    %cst_256 = arith.constant 1.000000e+00 : f32
    %453 = vector.broadcast %cst_256 : f32 to vector<8x128xf32>
    %454 = arith.addf %453, %452 : vector<8x128xf32>
    %455 = arith.divf %453, %454 : vector<8x128xf32>
    %456 = vector.extract_strided_slice %449 {offsets = [0, 128], sizes = [8, 128], strides = [1, 1]} : vector<8x512xf32> to vector<8x128xf32>
    %457 = arith.negf %456 : vector<8x128xf32>
    %458 = math.exp %457 : vector<8x128xf32>
    %cst_257 = arith.constant 1.000000e+00 : f32
    %459 = vector.broadcast %cst_257 : f32 to vector<8x128xf32>
    %460 = arith.addf %459, %458 : vector<8x128xf32>
    %461 = arith.divf %459, %460 : vector<8x128xf32>
    %462 = vector.extract_strided_slice %449 {offsets = [0, 256], sizes = [8, 128], strides = [1, 1]} : vector<8x512xf32> to vector<8x128xf32>
    %463 = math.tanh %462 : vector<8x128xf32>
    %464 = vector.extract_strided_slice %449 {offsets = [0, 384], sizes = [8, 128], strides = [1, 1]} : vector<8x512xf32> to vector<8x128xf32>
    %465 = arith.negf %464 : vector<8x128xf32>
    %466 = math.exp %465 : vector<8x128xf32>
    %cst_258 = arith.constant 1.000000e+00 : f32
    %467 = vector.broadcast %cst_258 : f32 to vector<8x128xf32>
    %468 = arith.addf %467, %466 : vector<8x128xf32>
    %469 = arith.divf %467, %468 : vector<8x128xf32>
    %470 = arith.mulf %461, %441 : vector<8x128xf32>
    %471 = arith.mulf %455, %463 : vector<8x128xf32>
    %472 = arith.addf %470, %471 : vector<8x128xf32>
    %473 = math.tanh %472 : vector<8x128xf32>
    %474 = arith.mulf %469, %473 : vector<8x128xf32>
    %c8_i32 = arith.constant 8 : i32
    %475 = arith.truncf %474 : vector<8x128xf32> to vector<8x128xbf16>
    %c0_259 = arith.constant 0 : index
    %c0_260 = arith.constant 0 : index
    %476 = vector.load %arg4[%c0_259, %c0_260] : memref<128x128xbf16, #tpu.memory_space<vmem>>, vector<128x128xbf16>
    %cst_261 = arith.constant dense<0.000000e+00> : vector<8x128xf32>
    %477 = tpu.matmul %475, %476, %cst_261 {dimension_numbers = #tpu.dot_dimension_numbers<[1], [0], [0], [1], [0, 0, 1, 1], [], []>} : vector<8x128xbf16>, vector<128x128xbf16>, vector<8x128xf32> -> vector<8x128xf32>
    %c0_262 = arith.constant 0 : index
    %c0_263 = arith.constant 0 : index
    %478 = vector.load %arg5[%c0_262, %c0_263] : memref<1x128xf32, #tpu.memory_space<vmem>>, vector<1x128xf32>
    %479 = vector.broadcast %478 : vector<1x128xf32> to vector<8x128xf32>
    %480 = arith.addf %477, %479 : vector<8x128xf32>
    %c0_264 = arith.constant 0 : index
    %c0_265 = arith.constant 0 : index
    %481 = vector.load %arg6[%c0_264, %c0_265] : memref<8x128xf32, #tpu.memory_space<vmem>>, vector<8x128xf32>
    tpu.vector_store %arg6[%c0_264, %c0_265], %480 {strides = array<i32>} : memref<8x128xf32, #tpu.memory_space<vmem>>, vector<8x128xf32>,
    return
  }
  func.func @transform_0(%arg0: i32, %arg1: memref<8x8xi32, #tpu.memory_space<smem>>) -> (i32, i32) {
    %c0_i32 = arith.constant 0 : i32
    %c0_i32_0 = arith.constant 0 : i32
    %c0_i32_1 = arith.constant 0 : i32
    return %c0_i32, %c0_i32_0 : i32, i32
  }
  func.func @transform_1(%arg0: i32, %arg1: memref<8x8xi32, #tpu.memory_space<smem>>) -> (i32, i32) {
    %c0_i32 = arith.constant 0 : i32
    %c0_i32_0 = arith.constant 0 : i32
    %c0_i32_1 = arith.constant 0 : i32
    return %c0_i32, %c0_i32_0 : i32, i32
  }
  func.func @transform_2(%arg0: i32, %arg1: memref<8x8xi32, #tpu.memory_space<smem>>) -> (i32, i32) {
    %c0_i32 = arith.constant 0 : i32
    %c0_i32_0 = arith.constant 0 : i32
    %c0_i32_1 = arith.constant 0 : i32
    return %c0_i32, %c0_i32_0 : i32, i32
  }
  func.func @transform_3(%arg0: i32, %arg1: memref<8x8xi32, #tpu.memory_space<smem>>) -> (i32, i32) {
    %c0_i32 = arith.constant 0 : i32
    %c0_i32_0 = arith.constant 0 : i32
    %c0_i32_1 = arith.constant 0 : i32
    return %c0_i32, %c0_i32_0 : i32, i32
  }
  func.func @transform_4(%arg0: i32, %arg1: memref<8x8xi32, #tpu.memory_space<smem>>) -> (i32, i32) {
    %c0_i32 = arith.constant 0 : i32
    %c0_i32_0 = arith.constant 0 : i32
    %c0_i32_1 = arith.constant 0 : i32
    return %c0_i32, %c0_i32_0 : i32, i32
  }
}

</mosaic_0001>

<bundles_post_ra>
// kernel: lstm_model_forward.1
= control target key start
LH: loop header
LB: loop body
LE: loop exit
PB: predicated region body
PF: predicated region fallthrough
CT: control target
= control target key end

     0   :  { %s5607_s0 = inlined_call_operand.vmem [shape: s32[8,8], index: 0, kind: input, shape index: {}]   ;;  %s5608_s1 = inlined_call_operand.hbm [shape: f32[16,512], index: 1, kind: input, shape index: {}]   ;;  %s5609_s2 = inlined_call_operand.hbm [shape: bf16[128,512], index: 2, kind: input, shape index: {}]   ;;  %s5610_s3 = inlined_call_operand.hbm [shape: bf16[128,128], index: 3, kind: input, shape index: {}]   ;;  %s5611_s4 = inlined_call_operand.vmem [shape: f32[1,128], index: 4, kind: input, shape index: {}]   ;;  %s5612_s5 = inlined_call_operand.vmem [shape: f32[8,128], index: 5, kind: output, shape index: {}]  }
   0x1   :  { %s10_s20 = sshll.u32 %s5607_s0, 4  ;;  %s11_s20 = int_to_ptr.vmem [resolvable:$true] %s10_s20 }
   0x2   :  { %s4352_s21 = scalar_lea.vmem %s11_s20, 128  ;;  %p4357_p1 = scmp.lt.s32.totalorder %s11_s20, %s11_s20 }
   0x3   :  { %p4353_p0 = scmp.ne.s32.totalorder %s11_s20, %s4352_s21  ;;  %p4358_p2 = scmp.lt.s32.totalorder %s4352_s21, %s4352_s21 }
   0x5   :  { %p4359_p3 = por %p4358_p2, %p4357_p1 }
   0x7   :  { %p4360_p4 = pnand %p4359_p3, %p4353_p0 }
   0x9   :  { %4363 = shalt.err (!%p4360_p4)  }
   0xa   :  { %s4436_s22 = smov [#allocation4]  }
   0xb   :  { %13 = dma.vmem_to_smem %s11_s20, 128, %s4436_s22, [#allocation3] }
   0xc   :  { %4430 = dma.done.wait [#allocation3], 128 }
   0xd   :  { %4431 = vsyncadd [#allocation3], 4294967168 }
   0xe   :  { %15 = sfence }
   0xf   :  { %16 = vsyncpa [#allocation6], 0 }
  0x10   :  { %17 = vsyncpa [#allocation8], 0  ;;  %s4437_s23 = smov [#allocation7]   ;;  %s4364_s26 = scalar_lea.hbm %s5609_s2, 4096 }
  0x11   :  { %s35_s24 = sshll.u32 %s4437_s23, 4  ;;  %p4365_p5 = scmp.ne.s32.totalorder %s5609_s2, %s4364_s26  ;;  %s36_s24 = int_to_ptr.vmem [resolvable:$true] %s35_s24 }
  0x12   :  { %p4368_p6 = scmp.lt.u32.totalorder %s4364_s26, %s5609_s2 }
  0x14   :  { %p4370_p7 = pnand %p4368_p6, %p4365_p5 }
  0x16   :  { %4373 = shalt.err (!%p4370_p7)
}
  0x17   :  { %s4374_s6 = scalar_lea.vmem %s36_s24, 4096  ;;  %p4379_p9 = scmp.lt.s32.totalorder %s36_s24, %s36_s24 }
  0x18   :  { %p4375_p8 = scmp.ne.s32.totalorder %s36_s24, %s4374_s6  ;;  %p4380_p10 = scmp.lt.s32.totalorder %s4374_s6, %s4374_s6 }
  0x1a   :  { %p4381_p11 = por %p4380_p10, %p4379_p9 }
  0x1c   :  { %p4382_p12 = pnand %p4381_p11, %p4375_p8 }
  0x1e   :  { %4385 = shalt.err (!%p4382_p12)
}
  0x1f   :  { %s4438_s7 = smov 256   ;;  %s4439_s8 = smov 16  }
  0x20   :  { %41 = dma.hbm_to_vmem [thread:$0]  %s5609_s2, 4096, %s36_s24, [#allocation8], %s4438_s7, %s4438_s7, %s4439_s8  }
  0x21   :  { %s4440_s11 = smov [#allocation5]   ;;  %s4386_s15 = scalar_lea.hbm %s5608_s1, 1024 }
  0x22   :  { %s23_s12 = sshll.u32 %s4440_s11, 4  ;;  %p4387_p13 = scmp.ne.s32.totalorder %s5608_s1, %s4386_s15  ;;  %s24_s12 = int_to_ptr.vmem [resolvable:$true] %s23_s12 }
  0x23   :  { %p4390_p0 = scmp.lt.u32.totalorder %s4386_s15, %s5608_s1 }
  0x25   :  { %p4392_p1 = pnand %p4390_p0, %p4387_p13 }
  0x27   :  { %4395 = shalt.err (!%p4392_p1)
}
  0x28   :  { %s4396_s20 = scalar_lea.vmem %s24_s12, 1024  ;;  %p4401_p3 = scmp.lt.s32.totalorder %s24_s12, %s24_s12 }
  0x29   :  { %p4397_p2 = scmp.ne.s32.totalorder %s24_s12, %s4396_s20  ;;  %p4402_p4 = scmp.lt.s32.totalorder %s4396_s20, %s4396_s20 }
  0x2b   :  { %p4403_p5 = por %p4402_p4, %p4401_p3 }
  0x2d   :  { %p4404_p6 = pnand %p4403_p5, %p4397_p2 }
  0x2f   :  { %4407 = shalt.err (!%p4404_p6)
}
  0x30   :  { %s4441_s2 = smov 512   ;;  %s4442_s21 = smov 32  }
  0x31   :  { %29 = dma.hbm_to_vmem [thread:$0]  %s5608_s1, 1024, %s24_s12, [#allocation6], %s4441_s2, %s4441_s2, %s4442_s21  }
  0x32   :  { %s4443_s24 = smov [#allocation9]   ;;  %s4408_s27 = scalar_lea.hbm %s5610_s3, 1024 }
  0x33   :  { %s47_s25 = sshll.u32 %s4443_s24, 4  ;;  %p4409_p7 = scmp.ne.s32.totalorder %s5610_s3, %s4408_s27  ;;  %s48_s25 = int_to_ptr.vmem [resolvable:$true] %s47_s25 }
  0x34   :  { %p4412_p8 = scmp.lt.u32.totalorder %s4408_s27, %s5610_s3 }
  0x36   :  { %p4414_p9 = pnand %p4412_p8, %p4409_p7 }
  0x38   :  { %4417 = shalt.err (!%p4414_p9)
}
  0x39   :  { %s4418_s7 = scalar_lea.vmem %s48_s25, 1024  ;;  %p4423_p11 = scmp.lt.s32.totalorder %s48_s25, %s48_s25 }
  0x3a   :  { %p4419_p10 = scmp.ne.s32.totalorder %s48_s25, %s4418_s7  ;;  %p4424_p12 = scmp.lt.s32.totalorder %s4418_s7, %s4418_s7 }
  0x3c   :  { %p4425_p13 = por %p4424_p12, %p4423_p11 }
  0x3e   :  { %p4426_p0 = pnand %p4425_p13, %p4419_p10 }
  0x40   :  { %4429 = shalt.err (!%p4426_p0)
}
  0x41   :  { %s4444_s1 = smov 64   ;;  %s4445_s8 = smov 4  }
  0x42   :  { %53 = dma.hbm_to_vmem [thread:$0]  %s5610_s3, 1024, %s48_s25, [#allocation8], %s4444_s1, %s4444_s1, %s4445_s8  }
  0x43   :  { %4432 = dma.done.wait [#allocation6], 1024  }
  0x44   :  { %4433 = vsyncadd [#allocation6], 4294966272 }
  0x45   :  { %4434 = dma.done.wait [#allocation8], 5120  }
  0x46   :  { %4435 = vsyncadd [#allocation8], 4294962176  ;;  %v4446_v0 = vmov 0   ;;  %v4520_v1 = vld [vmem:[#allocation7 + $0x4] ss:$16 sps:$4 sm:$0xff]   ;;  %s66_s3 = sld [smem:[#allocation4]]  ;;  %v147_v33 = vlaneseq }
  0x47   :  { %2548 = vmatprep.mubr.bf16.mxu0 %v4446_v0  ;;  %2589 = vmatprep.mubr.bf16.mxu1 %v4446_v0  ;;  %v4522_v2 = vld [vmem:[#allocation7] ss:$16 sps:$4 sm:$0xff]   ;;  %v4525_v3 = vld [vmem:[#allocation7 + $0x24] ss:$16 sps:$4 sm:$0xff]   ;;  %v4533_v6 = vld [vmem:[#allocation7 + $0xc] ss:$16 sps:$4 sm:$0xff]  }
  0x48   :  { %2516 = vmatprep.subr.bf16.mxu0 %v4520_v1  ;;  %v4528_v4 = vld [vmem:[#allocation7 + $0x20] ss:$16 sps:$4 sm:$0xff]   ;;  %v4531_v5 = vld [vmem:[#allocation7 + $0x44] ss:$16 sps:$4 sm:$0xff]   ;;  %v4535_v7 = vld [vmem:[#allocation7 + $0x8] ss:$16 sps:$4 sm:$0xff]   ;;  %2557 = vmatprep.subr.bf16.mxu1 %v4533_v6 }
  0x49   :  { %2517 = vmatpush1.bf16.msra.mxu0 %v4522_v2  ;;  %v4538_v8 = vld [vmem:[#allocation7 + $0x40] ss:$16 sps:$4 sm:$0xff]   ;;  %v4542_v9 = vld [vmem:[#allocation7 + $0x64] ss:$16 sps:$4 sm:$0xff]   ;;  %2558 = vmatpush1.bf16.msra.mxu1 %v4535_v7  ;;  %v4545_v10 = vld [vmem:[#allocation7 + $0x2c] ss:$16 sps:$4 sm:$0xff]  }
  0x4a   :  { %2518 = vmatprep.subr.bf16.mxu0 %v4525_v3  ;;  %v4547_v11 = vld [vmem:[#allocation7 + $0x28] ss:$16 sps:$4 sm:$0xff]   ;;  %2559 = vmatprep.subr.bf16.mxu1 %v4545_v10  ;;  %v4551_v12 = vld [vmem:[#allocation7 + $0x60] ss:$16 sps:$4 sm:$0xff]   ;;  %v4553_v13 = vld [vmem:[#allocation7 + $0x84] ss:$16 sps:$4 sm:$0xff]  }
  0x4b   :  { %v4555_v14 = vld [vmem:[#allocation7 + $0x4c] ss:$16 sps:$4 sm:$0xff]   ;;  %v4559_v15 = vld [vmem:[#allocation7 + $0x48] ss:$16 sps:$4 sm:$0xff]   ;;  %v4565_v17 = vld [vmem:[#allocation7 + $0x80] ss:$16 sps:$4 sm:$0xff]  }
  0x4c   :  { %v4562_v16 = vld [vmem:[#allocation7 + $0x6c] ss:$16 sps:$4 sm:$0xff]   ;;  %v4568_v18 = vld [vmem:[#allocation7 + $0xa4] ss:$16 sps:$4 sm:$0xff]   ;;  %v4571_v19 = vld [vmem:[#allocation7 + $0x68] ss:$16 sps:$4 sm:$0xff]  }
  0x4d   :  { %2519 = vmatpush1.bf16.msra.mxu0 %v4528_v4  ;;  %2560 = vmatpush1.bf16.msra.mxu1 %v4547_v11  ;;  %v4574_v20 = vld [vmem:[#allocation7 + $0x8c] ss:$16 sps:$4 sm:$0xff]   ;;  %v4577_v21 = vld [vmem:[#allocation7 + $0xa0] ss:$16 sps:$4 sm:$0xff]   ;;  %v4579_v22 = vld [vmem:[#allocation7 + $0xc4] ss:$16 sps:$4 sm:$0xff]  }
  0x4e   :  { %2520 = vmatprep.subr.bf16.mxu0 %v4531_v5  ;;  %2561 = vmatprep.subr.bf16.mxu1 %v4555_v14  ;;  %v4583_v23 = vld [vmem:[#allocation7 + $0x88] ss:$16 sps:$4 sm:$0xff]   ;;  %v4586_v24 = vld [vmem:[#allocation7 + $0xac] ss:$16 sps:$4 sm:$0xff]   ;;  %v4589_v25 = vld [vmem:[#allocation7 + $0xc0] ss:$16 sps:$4 sm:$0xff]  }
  0x4f   :  { %v4592_v26 = vld [vmem:[#allocation7 + $0xe4] ss:$16 sps:$4 sm:$0xff]   ;;  %v4595_v27 = vld [vmem:[#allocation7 + $0xa8] ss:$16 sps:$4 sm:$0xff]   ;;  %v4598_v28 = vld [vmem:[#allocation7 + $0xcc] ss:$16 sps:$4 sm:$0xff]  }
  0x50   :  { %v4600_v29 = vld [vmem:[#allocation7 + $0xe0] ss:$16 sps:$4 sm:$0xff]   ;;  %v4602_v30 = vld [vmem:[#allocation7 + $0xc8] ss:$16 sps:$4 sm:$0xff]   ;;  %v4605_v31 = vld [vmem:[#allocation7 + $0xec] ss:$16 sps:$4 sm:$0xff]  }
  0x51   :  { %2521 = vmatpush1.bf16.msra.mxu0 %v4538_v8  ;;  %2562 = vmatpush1.bf16.msra.mxu1 %v4559_v15  ;;  %v4612_v32 = vld [vmem:[#allocation7 + $0xe8] ss:$16 sps:$4 sm:$0xff]   ;;  %s3744_s11 = sld [smem:[#allocation4 + $0x1]]  ;;  %s3747_s12 = sld [smem:[#allocation4 + $0x2]]  ;;  %v148_v34 = vshrl.u32 %v147_v33, 7  ;;  %vm314_vm0 = vcmask 1040384  }
  0x52   :  { %2522 = vmatprep.subr.bf16.mxu0 %v4542_v9  ;;  %2563 = vmatprep.subr.bf16.mxu1 %v4562_v16  ;;  %s67_s13 = sshra.s32 %s66_s3, 3  ;;  %s3750_s14 = sld [smem:[#allocation4 + $0x3]]  ;;  %vm319_vm1 = vcmask 1041408   ;;  %vm324_vm2 = vcmask 1042432   ;;  %vm329_vm3 = vcmask 1043456   ;;  %vm334_vm4 = vcmask 1044480  }
  0x53   :  { %s70_s15 = sand.u32 7, %s66_s3  ;;  %s3998_s16 = sshll.u32 %s67_s13, 5  ;;  %v4666_v36 = vsub.s32 0, %v148_v34  ;;  %v4671_v38 = vsub.s32 1, %v148_v34  ;;  %v4688_v44 = vsub.s32 3, %v148_v34  ;;  %v4709_v56 = vsub.s32 2, %v148_v34 }
  0x54   :  { %s4654_s19 = sld [smem:[#allocation4 + $0x4]]  ;;  %s73_s20 = sadd.s32 %s3998_s16, %s70_s15  ;;  %vm339_vm5 = vcmask 1045504   ;;  %vm344_vm6 = vcmask 1046528   ;;  %vm4448_vm7 = vmmov 0  }
  0x55   :  { %2523 = vmatpush1.bf16.msra.mxu0 %v4551_v12  ;;  %2564 = vmatpush1.bf16.msra.mxu1 %v4571_v19  ;;  %s4656_s2 = sld [smem:[#allocation4 + $0x5]]  ;;  %s4658_s26 = sld [smem:[#allocation4 + $0x6]] }
  0x56   :  { %2524 = vmatprep.subr.bf16.mxu0 %v4553_v13  ;;  %2565 = vmatprep.subr.bf16.mxu1 %v4574_v20  ;;  %s4662_s7 = sld [smem:[#allocation4 + $0x7]]  ;;  %s74_s1 = scalar_lea.vmem [#allocation5], %s73_s20 }
  0x57   :  { %s77_s17 = sshra.s32 %s3744_s11, 3  ;;  %s87_s18 = sshra.s32 %s3747_s12, 3  ;;  %v4664_v35 = vld [vmem:[%s74_s1] ss:$8 sm:$0xf] }
  0x58   :  { %s80_s21 = sand.u32 7, %s3744_s11  ;;  %s3999_s22 = sshll.u32 %s77_s17, 5  ;;  %v150_v40 = vrot.slane %v4664_v35, %v4666_v36  ;;  %v154_v42 = vrot.slane %v4664_v35, %v4671_v38  ;;  %v162_v52 = vrot.slane %v4664_v35, %v4688_v44  ;;  %v158_v34 = vrot.slane %v4664_v35, %v4709_v56 }
  0x59   :  { %2525 = vmatpush1.bf16.msra.mxu0 %v4565_v17  ;;  %2566 = vmatpush1.bf16.msra.mxu1 %v4583_v23  ;;  %s90_s23 = sand.u32 7, %s3747_s12  ;;  %s4000_s24 = sshll.u32 %s87_s18, 5 }
  0x5a   :  { %2526 = vmatprep.subr.bf16.mxu0 %v4568_v18  ;;  %2567 = vmatprep.subr.bf16.mxu1 %v4586_v24  ;;  %s97_s25 = sshra.s32 %s3750_s14, 3  ;;  %s83_s0 = sadd.s32 %s3999_s22, %s80_s21 }
  0x5b   :  { %s93_s27 = sadd.s32 %s4000_s24, %s90_s23  ;;  %s100_s28 = sand.u32 7, %s3750_s14 }
  0x5c   :  { %s4001_s29 = sshll.u32 %s97_s25, 5  ;;  %s107_s30 = sshra.s32 %s4654_s19, 3 }
  0x5d   :  { %2527 = vmatpush1.bf16.msra.mxu0 %v4577_v21  ;;  %2568 = vmatpush1.bf16.msra.mxu1 %v4595_v27  ;;  %s117_s6 = sshra.s32 %s4656_s2, 3  ;;  %s103_s8 = sadd.s32 %s4001_s29, %s100_s28 }
  0x5e   :  { %2528 = vmatprep.subr.bf16.mxu0 %v4579_v22  ;;  %2569 = vmatprep.subr.bf16.mxu1 %v4598_v28  ;;  %s84_s9 = scalar_lea.vmem [#allocation5], %s83_s0  ;;  %s110_s10 = sand.u32 7, %s4654_s19 }
  0x5f   :  { %v4668_v37 = vld [vmem:[%s84_s9] ss:$8 sm:$0xf]  ;;  %s4002_s3 = sshll.u32 %s107_s30, 5  ;;  %s120_s11 = sand.u32 7, %s4656_s2 }
  0x60   :  { %s4003_s12 = sshll.u32 %s117_s6, 5  ;;  %s127_s13 = sshra.s32 %s4658_s26, 3  ;;  %v171_v41 = vrot.slane %v4668_v37, %v4666_v36  ;;  %v175_v43 = vrot.slane %v4668_v37, %v4671_v38  ;;  %v183_v53 = vrot.slane %v4668_v37, %v4688_v44 }
  0x61   :  { %2529 = vmatpush1.bf16.msra.mxu0 %v4589_v25  ;;  %2570 = vmatpush1.bf16.msra.mxu1 %v4602_v30  ;;  %s94_s14 = scalar_lea.vmem [#allocation5], %s93_s27  ;;  %s113_s15 = sadd.s32 %s4002_s3, %s110_s10 }
  0x62   :  { %2530 = vmatprep.subr.bf16.mxu0 %v4592_v26  ;;  %2571 = vmatprep.subr.bf16.mxu1 %v4605_v31  ;;  %v4675_v39 = vld [vmem:[%s94_s14] ss:$8 sm:$0xf]  ;;  %s4681_s16 = sadd.s32 %s4003_s12, %s120_s11  ;;  %s130_s17 = sand.u32 7, %s4658_s26  ;;  %v315_v47 = vsel %vm314_vm0, %v150_v40, %v171_v41  ;;  %v316_v49 = vsel %vm314_vm0, %v154_v42, %v175_v43  ;;  %v318_v63 = vsel %vm314_vm0, %v162_v52, %v183_v53 }
  0x63   :  { %s4004_s18 = sshll.u32 %s127_s13, 5  ;;  %s104_s19 = scalar_lea.vmem [#allocation5], %s103_s8  ;;  %v192_v46 = vrot.slane %v4675_v39, %v4666_v36  ;;  %v196_v48 = vrot.slane %v4675_v39, %v4671_v38  ;;  %v204_v60 = vrot.slane %v4675_v39, %v4688_v44  ;;  %v179_v40 = vrot.slane %v4668_v37, %v4709_v56 }
  0x64   :  { %v4690_v45 = vld [vmem:[%s104_s19] ss:$8 sm:$0xf]  ;;  %s137_s20 = sshra.s32 %s4662_s7, 3  ;;  %s133_s2 = sadd.s32 %s4004_s18, %s130_s17  ;;  %v200_v35 = vrot.slane %v4675_v39, %v4709_v56 }
  0x65   :  { %2531 = vmatpush1.bf16.msra.mxu0 %v4600_v29  ;;  %2572 = vmatpush1.bf16.msra.mxu1 %v4612_v32  ;;  %s114_s21 = scalar_lea.vmem [#allocation5], %s113_s15  ;;  %s140_s22 = sand.u32 7, %s4662_s7  ;;  %v213_v51 = vrot.slane %v4690_v45, %v4666_v36  ;;  %v320_v54 = vsel %vm319_vm1, %v315_v47, %v192_v46  ;;  %v217_v55 = vrot.slane %v4690_v45, %v4671_v38 }
  0x66   :  { %2631 = vmatprep.subr.bf16.mxu0 %v4520_v1  ;;  %2672 = vmatprep.subr.bf16.mxu1 %v4533_v6  ;;  %v115_v50 = vld [vmem:[%s114_s21] ss:$8 sm:$0xf]  ;;  %s4005_s23 = sshll.u32 %s137_s20, 5  ;;  %v321_v57 = vsel %vm319_vm1, %v316_v49, %v196_v48  ;;  %s124_s24 = scalar_lea.vmem [#allocation5], %s4681_s16  ;;  %v225_v43 = vrot.slane %v4690_v45, %v4688_v44  ;;  %v323_v48 = vsel %vm319_vm1, %v318_v63, %v204_v60 }
  0x67   :  { %v125_v58 = vld [vmem:[%s124_s24] ss:$8 sm:$0xf]  ;;  %s143_s25 = sadd.s32 %s4005_s23, %s140_s22  ;;  %v234_v59 = vrot.slane %v115_v50, %v4666_v36  ;;  %v325_v61 = vsel %vm324_vm2, %v320_v54, %v213_v51  ;;  %v238_v62 = vrot.slane %v115_v50, %v4671_v38  ;;  %v326_v33 = vsel %vm324_vm2, %v321_v57, %v217_v55  ;;  %s134_s0 = scalar_lea.vmem [#allocation5], %s133_s2 }
  0x68   :  { %2549 = vmatmul.mubr.bf16.vlgmr.msra.gmra.mrb[0].mxu0 %v4446_v0  ;;  %2590 = vmatmul.mubr.bf16.vlgmr.msra.gmra.mrb[0].mxu1 %v4446_v0  ;;  %v135_v41 = vld [vmem:[%s134_s0] ss:$8 sm:$0xf]  ;;  %v255_v42 = vrot.slane %v125_v58, %v4666_v36  ;;  %v259_v47 = vrot.slane %v125_v58, %v4671_v38  ;;  %s144_s26 = scalar_lea.vmem [#allocation5], %s143_s25  ;;  %v317_v52 = vsel %vm314_vm0, %v158_v34, %v179_v40  ;;  %s3765_s27 = sld [smem:[#allocation4 + $0x80]] }
  0x69   :  { %2632 = vmatpush1.bf16.msra.mxu0 %v4522_v2  ;;  %2663 = vmatprep.mubr.bf16.mxu0 %v4446_v0  ;;  %v330_v46 = vsel %vm329_vm3, %v325_v61, %v234_v59  ;;  %v331_v49 = vsel %vm329_vm3, %v326_v33, %v238_v62  ;;  %v145_v37 = vld [vmem:[%s144_s26] ss:$8 sm:$0xf]  ;;  %v276_v51 = vrot.slane %v135_v41, %v4666_v36  ;;  %s3768_s28 = sld [smem:[#allocation4 + $0x81]]  ;;  %s3771_s29 = sld [smem:[#allocation4 + $0x82]] }
  0x6a   :  { %2633 = vmatprep.subr.bf16.mxu0 %v4525_v3  ;;  %2673 = vmatpush1.bf16.msra.mxu1 %v4535_v7  ;;  %v246_v53 = vrot.slane %v115_v50, %v4688_v44  ;;  %v335_v54 = vsel %vm334_vm4, %v330_v46, %v255_v42  ;;  %v280_v55 = vrot.slane %v135_v41, %v4671_v38  ;;  %s3774_s6 = sld [smem:[#allocation4 + $0x83]]  ;;  %s4802_s10 = sld [smem:[#allocation4 + $0x84]] }
  0x6b   :  { %2674 = vmatprep.subr.bf16.mxu1 %v4545_v10  ;;  %2704 = vmatprep.mubr.bf16.mxu1 %v4446_v0  ;;  %v328_v57 = vsel %vm324_vm2, %v323_v48, %v225_v43  ;;  %v336_v59 = vsel %vm334_vm4, %v331_v49, %v259_v47  ;;  %v221_v39 = vrot.slane %v4690_v45, %v4709_v56  ;;  %s4804_s11 = sld [smem:[#allocation4 + $0x85]]  ;;  %s4806_s18 = sld [smem:[#allocation4 + $0x86]] }
  0x6c   :  { %v297_v60 = vrot.slane %v145_v37, %v4666_v36  ;;  %v322_v61 = vsel %vm319_vm1, %v317_v52, %v200_v35  ;;  %v267_v62 = vrot.slane %v125_v58, %v4688_v44  ;;  %v340_v63 = vsel %vm339_vm5, %v335_v54, %v276_v51  ;;  %s4810_s23 = sld [smem:[#allocation4 + $0x87]] }
  0x6d   :  { %2634 = vmatpush1.bf16.msra.mxu0 %v4528_v4  ;;  %v301_v33 = vrot.slane %v145_v37, %v4671_v38  ;;  %v333_v34 = vsel %vm329_vm3, %v328_v57, %v246_v53  ;;  %v341_v40 = vsel %vm339_vm5, %v336_v59, %v280_v55  ;;  %v242_v42 = vrot.slane %v115_v50, %v4709_v56 }
  0x6e   :  { %2635 = vmatprep.subr.bf16.mxu0 %v4531_v5  ;;  %2675 = vmatpush1.bf16.msra.mxu1 %v4547_v11  ;;  %v327_v43 = vsel %vm324_vm2, %v322_v61, %v221_v39  ;;  %v288_v45 = vrot.slane %v135_v41, %v4688_v44  ;;  %v345_v46 = vsel %vm344_vm6, %v340_v63, %v297_v60  ;;  %s354_s30 = sshra.s32 %s3765_s27, 3  ;;  %s357_s7 = sand.u32 7, %s3765_s27 }
  0x6f   :  { %2676 = vmatprep.subr.bf16.mxu1 %v4555_v14  ;;  %v338_v47 = vsel %vm334_vm4, %v333_v34, %v267_v62  ;;  %v346_v48 = vsel %vm344_vm6, %v341_v40, %v301_v33  ;;  %v263_v49 = vrot.slane %v125_v58, %v4709_v56  ;;  %v332_v51 = vsel %vm329_vm3, %v327_v43, %v242_v42  ;;  %s4006_s1 = sshll.u32 %s354_s30, 5  ;;  %s364_s8 = sshra.s32 %s3768_s28, 3 }
  0x70   :  { %v309_v52 = vrot.slane %v145_v37, %v4688_v44  ;;  %v343_v50 = vsel %vm339_vm5, %v338_v47, %v288_v45  ;;  %v284_v59 = vrot.slane %v135_v41, %v4709_v56  ;;  %v305_v63 = vrot.slane %v145_v37, %v4709_v56  ;;  %s374_s9 = sshra.s32 %s3771_s29, 3  ;;  %s360_s3 = sadd.s32 %s4006_s1, %s357_s7 }
  0x71   :  { %2636 = vmatpush1.bf16.msra.mxu0 %v4538_v8  ;;  %v337_v61 = vsel %vm334_vm4, %v332_v51, %v263_v49  ;;  %s367_s12 = sand.u32 7, %s3768_s28  ;;  %s4007_s13 = sshll.u32 %s364_s8, 5 }
  0x72   :  { %2637 = vmatprep.subr.bf16.mxu0 %v4542_v9  ;;  %2677 = vmatpush1.bf16.msra.mxu1 %v4559_v15  ;;  %v348_v58 = vsel %vm344_vm6, %v343_v50, %v309_v52  ;;  %v342_v34 = vsel %vm339_vm5, %v337_v61, %v284_v59  ;;  %s377_s14 = sand.u32 7, %s3771_s29  ;;  %s4008_s15 = sshll.u32 %s374_s9, 5 }
  0x73   :  { %2678 = vmatprep.subr.bf16.mxu1 %v4562_v16  ;;  %v347_v41 = vsel %vm344_vm6, %v342_v34, %v305_v63  ;;  %s384_s16 = sshra.s32 %s3774_s6, 3  ;;  %s370_s17 = sadd.s32 %s4007_s13, %s367_s12 }
  0x74   :  { %s380_s19 = sadd.s32 %s4008_s15, %s377_s14  ;;  %s387_s20 = sand.u32 7, %s3774_s6 }
  0x75   :  { %2638 = vmatpush1.bf16.msra.mxu0 %v4551_v12  ;;  %s4009_s2 = sshll.u32 %s384_s16, 5  ;;  %s394_s21 = sshra.s32 %s4802_s10, 3 }
  0x76   :  { %2639 = vmatprep.subr.bf16.mxu0 %v4553_v13  ;;  %2679 = vmatpush1.bf16.msra.mxu1 %v4571_v19  ;;  %s404_s22 = sshra.s32 %s4804_s11, 3  ;;  %s361_s24 = scalar_lea.vmem [#allocation5], %s360_s3 }
  0x77   :  { %2680 = vmatprep.subr.bf16.mxu1 %v4574_v20  ;;  %s390_s25 = sadd.s32 %s4009_s2, %s387_s20  ;;  %s371_s0 = scalar_lea.vmem [#allocation5], %s370_s17 }
  0x78   :  { %s397_s26 = sand.u32 7, %s4802_s10  ;;  %s4010_s27 = sshll.u32 %s394_s21, 5 }
  0x79   :  { %2640 = vmatpush1.bf16.msra.mxu0 %v4565_v17  ;;  %s407_s28 = sand.u32 7, %s4804_s11  ;;  %s4011_s29 = sshll.u32 %s404_s22, 5 }
  0x7a   :  { %2641 = vmatprep.subr.bf16.mxu0 %v4568_v18  ;;  %2681 = vmatpush1.bf16.msra.mxu1 %v4583_v23  ;;  %s414_s30 = sshra.s32 %s4806_s18, 3  ;;  %s381_s7 = scalar_lea.vmem [#allocation5], %s380_s19 }
  0x7b   :  { %2682 = vmatprep.subr.bf16.mxu1 %v4586_v24  ;;  %s400_s6 = sadd.s32 %s4010_s27, %s397_s26  ;;  %s410_s1 = sadd.s32 %s4011_s29, %s407_s28 }
  0x7c   :  { %s417_s8 = sand.u32 7, %s4806_s18  ;;  %s4012_s9 = sshll.u32 %s414_s30, 5 }
  0x7d   :  { %2642 = vmatpush1.bf16.msra.mxu0 %v4577_v21  ;;  %s391_s10 = scalar_lea.vmem [#allocation5], %s390_s25  ;;  %s424_s3 = sshra.s32 %s4810_s23, 3 }
  0x7e   :  { %2643 = vmatprep.subr.bf16.mxu0 %v4579_v22  ;;  %2683 = vmatpush1.bf16.msra.mxu1 %v4595_v27  ;;  %s420_s11 = sadd.s32 %s4012_s9, %s417_s8  ;;  %s401_s12 = scalar_lea.vmem [#allocation5], %s400_s6 }
  0x7f   :  { %2684 = vmatprep.subr.bf16.mxu1 %v4598_v28  ;;  %s427_s13 = sand.u32 7, %s4810_s23  ;;  %s4013_s14 = sshll.u32 %s424_s3, 5 }
  0x80   :  { %s411_s15 = scalar_lea.vmem [#allocation5], %s410_s1  ;;  %s430_s16 = sadd.s32 %s4013_s14, %s427_s13 }
  0x81   :  { %2644 = vmatpush1.bf16.msra.mxu0 %v4589_v25  ;;  %s421_s17 = scalar_lea.vmem [#allocation5], %s420_s11  ;;  %s431_s18 = scalar_lea.vmem [#allocation5], %s430_s16 }
  0x82   :  { %2645 = vmatprep.subr.bf16.mxu0 %v4592_v26  ;;  %2685 = vmatpush1.bf16.msra.mxu1 %v4602_v30  ;;  %s3789_s19 = sld [smem:[#allocation4 + $0x100]]  ;;  %s3792_s20 = sld [smem:[#allocation4 + $0x101]] }
  0x83   :  { %2686 = vmatprep.subr.bf16.mxu1 %v4605_v31  ;;  %s3795_s2 = sld [smem:[#allocation4 + $0x102]]  ;;  %s3798_s22 = sld [smem:[#allocation4 + $0x103]] }
  0x84   :  { %s4926_s26 = sld [smem:[#allocation4 + $0x104]]  ;;  %s4928_s28 = sld [smem:[#allocation4 + $0x105]] }
  0x85   :  { %2646 = vmatpush1.bf16.msra.mxu0 %v4600_v29  ;;  %s4930_s9 = sld [smem:[#allocation4 + $0x106]]  ;;  %s4934_s14 = sld [smem:[#allocation4 + $0x107]] }
  0x86   :  { %2746 = vmatprep.subr.bf16.mxu0 %v4520_v1  ;;  %2687 = vmatpush1.bf16.msra.mxu1 %v4612_v32 }
  0x87   :  { %2787 = vmatprep.subr.bf16.mxu1 %v4533_v6 }
  0x88   :  { %s635_s21 = sshra.s32 %s3789_s19, 3  ;;  %s638_s23 = sand.u32 7, %s3789_s19 }
  0x89   :  { %s645_s25 = sshra.s32 %s3792_s20, 3  ;;  %s648_s29 = sand.u32 7, %s3792_s20 }
  0x8a   :  { %s4015_s30 = sshll.u32 %s645_s25, 5  ;;  %s665_s1 = sshra.s32 %s3798_s22, 3 }
  0x8b   :  { %s651_s8 = sadd.s32 %s4015_s30, %s648_s29  ;;  %s668_s3 = sand.u32 7, %s3798_s22 }
  0x8c   :  { %s4017_s11 = sshll.u32 %s665_s1, 5  ;;  %s685_s13 = sshra.s32 %s4928_s28, 3 }
  0x8d   :  { %s671_s16 = sadd.s32 %s4017_s11, %s668_s3  ;;  %s688_s20 = sand.u32 7, %s4928_s28 }
  0x8e   :  { %s698_s25 = sand.u32 7, %s4930_s9  ;;  %s708_s30 = sand.u32 7, %s4934_s14 }
  0x8f   :  { %s3816_s3 = sld [smem:[#allocation4 + $0x181]]  ;;  %s3819_s11 = sld [smem:[#allocation4 + $0x182]] }
 0x13b   :  { %v2550_v35 = vpop.f32.mrb[0].mxu0  ;;  %v2591_v33 = vpop.f32.mrb[0].mxu1 }
 0x13c   :  { %v2598_v53 = vadd.f32 %v2550_v35, %v345_v46  ;;  %v2552_v54 = vpop.f32.mrb[1].mxu0  ;;  %v2593_v40 = vpop.f32.mrb[1].mxu1  ;;  %v2600_v47 = vadd.f32 %v2591_v33, %v347_v41 }
 0x13d   :  { %v2599_v55 = vadd.f32 %v2552_v54, %v346_v48  ;;  %v2554_v57 = vpop.f32.mrb[2].mxu0  ;;  %v2601_v42 = vadd.f32 %v2593_v40, %v348_v58  ;;  %v2595_v43 = vpop.f32.mrb[2].mxu1  ;;  %v382_v58 = vld [vmem:[%s381_s7] ss:$8 sm:$0xf]  ;;  %s658_s7 = sand.u32 7, %s3795_s2 }
 0x13e   :  { %v3965_v39 = vmul.f32 -1.442695, %v2598_v53  ;;  %v2555_v60 = vpop.f32.mrb[3].mxu0  ;;  %v2596_v45 = vpop.f32.mrb[3].mxu1  ;;  %v479_v43 = vrot.slane %v382_v58, %v4666_v36  ;;  %v483_v41 = vrot.slane %v382_v58, %v4671_v38 }
 0x13f   :  { %v3966_v62 = vmul.f32 -1.442695, %v2599_v55  ;;  %v3967_v46 = vmul.f32 -1.442695, %v2601_v42 }
 0x140   :  { %4160 = vpow2.f32 %v3965_v39  ;;  %v392_v42 = vld [vmem:[%s391_s10] ss:$8 sm:$0xf] }
 0x141   :  { %4162 = vpow2.f32 %v3966_v62 }
 0x142   :  { %4164 = vpow2.f32 %v3967_v46 }
 0x143   :  { %4166 = vtanh.f32 %v2600_v47  ;;  %v402_v47 = vld [vmem:[%s401_s12] ss:$8 sm:$0xf]  ;;  %s675_s12 = sshra.s32 %s4926_s26, 3 }
 0x144   :  { %s4018_s19 = sshll.u32 %s675_s12, 5 }
 0x14a   :  { %v4161_v48 = vpop.eup %4160 }
 0x14b   :  { %v4163_v49 = vpop.eup %4162  ;;  %v2605_v35 = vadd.f32 1.0, %v4161_v48  ;;  %v500_v48 = vrot.slane %v392_v42, %v4666_v36 }
 0x14c   :  { %v2611_v51 = vadd.f32 1.0, %v4163_v49  ;;  %v4165_v37 = vpop.eup %4164 }
 0x14d   :  { %4168 = vrcp.f32 %v2605_v35  ;;  %v4167_v52 = vpop.eup %4166  ;;  %v2618_v54 = vadd.f32 1.0, %v4165_v37  ;;  %v504_v35 = vrot.slane %v392_v42, %v4671_v38 }
 0x14e   :  { %4170 = vrcp.f32 %v2611_v51 }
 0x14f   :  { %4172 = vrcp.f32 %v2618_v54  ;;  %v521_v54 = vrot.slane %v402_v47, %v4666_v36 }
 0x157   :  { %v4169_v53 = vpop.eup %4168 }
 0x158   :  { %v4171_v50 = vpop.eup %4170  ;;  %v2622_v55 = vmul.f32 %v4169_v53, %v4167_v52  ;;  %v412_v53 = vld [vmem:[%s411_s15] ss:$8 sm:$0xf] }
 0x159   :  { %v2621_v57 = vmul.f32 0.0, %v4171_v50  ;;  %v4173_v39 = vpop.eup %4172 }
 0x15b   :  { %v4765_v59 = vadd.f32 %v2622_v55, %v2621_v57  ;;  %v525_v55 = vrot.slane %v402_v47, %v4671_v38  ;;  %v491_v57 = vrot.slane %v382_v58, %v4688_v44 }
 0x15d   :  { %4174 = vtanh.f32 %v4765_v59 }
 0x167   :  { %v4175_v60 = vpop.eup %4174 }
 0x168   :  { %v2625_v61 = vmul.f32 %v4175_v60, %v4173_v39 }
 0x16a   :  { %v2630_v62 = vpack.c.bf16 %v2625_v61, %v2625_v61  ;;  %v422_v61 = vld [vmem:[%s421_s17] ss:$8 sm:$0xf]  ;;  %s652_s17 = scalar_lea.vmem [#allocation5], %s651_s8 }
 0x16c   :  { %2664 = vmatmul.mubr.bf16.vlgmr.msra.gmra.mrb[4].mxu0 %v2630_v62  ;;  %2705 = vmatmul.mubr.bf16.vlgmr.msra.gmra.mrb[4].mxu1 %v2630_v62  ;;  %v542_v62 = vrot.slane %v412_v53, %v4666_v36 }
 0x16d   :  { %2747 = vmatpush1.bf16.msra.mxu0 %v4522_v2  ;;  %2788 = vmatpush1.bf16.msra.mxu1 %v4535_v7 }
 0x16e   :  { %2748 = vmatprep.subr.bf16.mxu0 %v4525_v3  ;;  %2789 = vmatprep.subr.bf16.mxu1 %v4545_v10 }
 0x16f   :  { %2778 = vmatprep.mubr.bf16.mxu0 %v4446_v0  ;;  %2819 = vmatprep.mubr.bf16.mxu1 %v4446_v0 }
 0x171   :  { %2749 = vmatpush1.bf16.msra.mxu0 %v4528_v4  ;;  %2790 = vmatpush1.bf16.msra.mxu1 %v4547_v11 }
 0x172   :  { %2750 = vmatprep.subr.bf16.mxu0 %v4531_v5  ;;  %2791 = vmatprep.subr.bf16.mxu1 %v4555_v14 }
 0x175   :  { %2751 = vmatpush1.bf16.msra.mxu0 %v4538_v8  ;;  %2792 = vmatpush1.bf16.msra.mxu1 %v4559_v15 }
 0x176   :  { %2752 = vmatprep.subr.bf16.mxu0 %v4542_v9  ;;  %2793 = vmatprep.subr.bf16.mxu1 %v4562_v16 }
 0x179   :  { %2753 = vmatpush1.bf16.msra.mxu0 %v4551_v12  ;;  %2794 = vmatpush1.bf16.msra.mxu1 %v4571_v19 }
 0x17a   :  { %2754 = vmatprep.subr.bf16.mxu0 %v4553_v13  ;;  %2795 = vmatprep.subr.bf16.mxu1 %v4574_v20 }
 0x17d   :  { %2755 = vmatpush1.bf16.msra.mxu0 %v4565_v17  ;;  %2796 = vmatpush1.bf16.msra.mxu1 %v4583_v23 }
 0x17e   :  { %2756 = vmatprep.subr.bf16.mxu0 %v4568_v18  ;;  %2797 = vmatprep.subr.bf16.mxu1 %v4586_v24 }
 0x181   :  { %2757 = vmatpush1.bf16.msra.mxu0 %v4577_v21  ;;  %2798 = vmatpush1.bf16.msra.mxu1 %v4595_v27 }
 0x182   :  { %2758 = vmatprep.subr.bf16.mxu0 %v4579_v22  ;;  %2799 = vmatprep.subr.bf16.mxu1 %v4598_v28 }
 0x185   :  { %2759 = vmatpush1.bf16.msra.mxu0 %v4589_v25  ;;  %2800 = vmatpush1.bf16.msra.mxu1 %v4602_v30 }
 0x186   :  { %2760 = vmatprep.subr.bf16.mxu0 %v4592_v26  ;;  %2801 = vmatprep.subr.bf16.mxu1 %v4605_v31 }
 0x189   :  { %2761 = vmatpush1.bf16.msra.mxu0 %v4600_v29  ;;  %2802 = vmatpush1.bf16.msra.mxu1 %v4612_v32 }
 0x18a   :  { %2861 = vmatprep.subr.bf16.mxu0 %v4520_v1  ;;  %2902 = vmatprep.subr.bf16.mxu1 %v4533_v6  ;;  %v4812_v1 = vld [vmem:[%s361_s24] ss:$8 sm:$0xf]  ;;  %s4014_s24 = sshll.u32 %s635_s21, 5  ;;  %s695_s21 = sshra.s32 %s4930_s9, 3 }
 0x18b   :  { %v372_v6 = vld [vmem:[%s371_s0] ss:$8 sm:$0xf]  ;;  %v437_v63 = vrot.slane %v4812_v1, %v4666_v36  ;;  %v441_v34 = vrot.slane %v4812_v1, %v4671_v38  ;;  %v449_v51 = vrot.slane %v4812_v1, %v4688_v44  ;;  %s655_s0 = sshra.s32 %s3795_s2, 3  ;;  %s641_s27 = sadd.s32 %s4014_s24, %s638_s23 }
 0x18c   :  { %v458_v33 = vrot.slane %v372_v6, %v4666_v36  ;;  %v462_v40 = vrot.slane %v372_v6, %v4671_v38  ;;  %v470_v37 = vrot.slane %v372_v6, %v4688_v44  ;;  %s4016_s6 = sshll.u32 %s655_s0, 5  ;;  %s642_s15 = scalar_lea.vmem [#allocation5], %s641_s27 }
 0x18d   :  { %s661_s10 = sadd.s32 %s4016_s6, %s658_s7  ;;  %s4019_s2 = sshll.u32 %s685_s13, 5 }
 0x18e   :  { %v601_v45 = vsel %vm314_vm0, %v437_v63, %v458_v33  ;;  %v602_v46 = vsel %vm314_vm0, %v441_v34, %v462_v40  ;;  %v604_v60 = vsel %vm314_vm0, %v449_v51, %v470_v37  ;;  %v445_v63 = vrot.slane %v4812_v1, %v4709_v56  ;;  %s662_s23 = scalar_lea.vmem [#allocation5], %s661_s10  ;;  %s691_s24 = sadd.s32 %s4019_s2, %s688_s20 }
 0x18f   :  { %v605_v49 = vsel %vm319_vm1, %v601_v45, %v479_v43  ;;  %v606_v52 = vsel %vm319_vm1, %v602_v46, %v483_v41  ;;  %v466_v33 = vrot.slane %v372_v6, %v4709_v56  ;;  %v546_v40 = vrot.slane %v412_v53, %v4671_v38  ;;  %v432_v46 = vld [vmem:[%s431_s18] ss:$8 sm:$0xf]  ;;  %s678_s18 = sand.u32 7, %s4926_s26  ;;  %s4020_s0 = sshll.u32 %s695_s21, 5 }
 0x190   :  { %v609_v50 = vsel %vm324_vm2, %v605_v49, %v500_v48  ;;  %v610_v39 = vsel %vm324_vm2, %v606_v52, %v504_v35  ;;  %v512_v43 = vrot.slane %v392_v42, %v4688_v44  ;;  %v608_v41 = vsel %vm319_vm1, %v604_v60, %v491_v57  ;;  %s681_s22 = sadd.s32 %s4018_s19, %s678_s18  ;;  %s672_s26 = scalar_lea.vmem [#allocation5], %s671_s16 }
 0x191   :  { %v613_v34 = vsel %vm329_vm3, %v609_v50, %v521_v54  ;;  %v614_v45 = vsel %vm329_vm3, %v610_v39, %v525_v55  ;;  %v563_v48 = vrot.slane %v422_v61, %v4666_v36  ;;  %v487_v49 = vrot.slane %v382_v58, %v4709_v56  ;;  %s705_s27 = sshra.s32 %s4934_s14, 3  ;;  %s701_s28 = sadd.s32 %s4020_s0, %s698_s25 }
 0x192   :  { %v617_v1 = vsel %vm334_vm4, %v613_v34, %v542_v62  ;;  %v603_v6 = vsel %vm314_vm0, %v445_v63, %v466_v33  ;;  %v567_v35 = vrot.slane %v422_v61, %v4671_v38  ;;  %v533_v51 = vrot.slane %v402_v47, %v4688_v44  ;;  %s682_s29 = scalar_lea.vmem [#allocation5], %s681_s22  ;;  %s4021_s7 = sshll.u32 %s705_s27, 5 }
 0x193   :  { %v618_v37 = vsel %vm334_vm4, %v614_v45, %v546_v40  ;;  %v612_v52 = vsel %vm324_vm2, %v608_v41, %v512_v43  ;;  %v584_v54 = vrot.slane %v432_v46, %v4666_v36  ;;  %v508_v50 = vrot.slane %v392_v42, %v4709_v56  ;;  %s692_s6 = scalar_lea.vmem [#allocation5], %s691_s24  ;;  %s711_s1 = sadd.s32 %s4021_s7, %s708_s30 }
 0x194   :  { %v621_v55 = vsel %vm339_vm5, %v617_v1, %v563_v48  ;;  %v607_v58 = vsel %vm319_vm1, %v603_v6, %v487_v49  ;;  %v588_v57 = vrot.slane %v432_v46, %v4671_v38  ;;  %v554_v39 = vrot.slane %v412_v53, %v4688_v44  ;;  %s702_s8 = scalar_lea.vmem [#allocation5], %s701_s28  ;;  %s712_s9 = scalar_lea.vmem [#allocation5], %s711_s1 }
 0x195   :  { %v622_v60 = vsel %vm339_vm5, %v618_v37, %v567_v35  ;;  %v616_v62 = vsel %vm329_vm3, %v612_v52, %v533_v51  ;;  %v529_v63 = vrot.slane %v402_v47, %v4709_v56  ;;  %v625_v33 = vsel %vm344_vm6, %v621_v55, %v584_v54  ;;  %s3813_s10 = sld [smem:[#allocation4 + $0x180]]  ;;  %s3822_s13 = sld [smem:[#allocation4 + $0x183]] }
 0x196   :  { %v611_v34 = vsel %vm324_vm2, %v607_v58, %v508_v50  ;;  %v575_v42 = vrot.slane %v422_v61, %v4688_v44  ;;  %v626_v40 = vsel %vm344_vm6, %v622_v60, %v588_v57  ;;  %v620_v43 = vsel %vm334_vm4, %v616_v62, %v554_v39  ;;  %s926_s16 = sshra.s32 %s3816_s3, 3  ;;  %s5106_s18 = sld [smem:[#allocation4 + $0x184]] }
 0x197   :  { %v550_v41 = vrot.slane %v412_v53, %v4709_v56  ;;  %v615_v1 = vsel %vm329_vm3, %v611_v34, %v529_v63  ;;  %v596_v47 = vrot.slane %v432_v46, %v4688_v44  ;;  %v571_v55 = vrot.slane %v422_v61, %v4709_v56  ;;  %s5108_s20 = sld [smem:[#allocation4 + $0x185]]  ;;  %s929_s2 = sand.u32 7, %s3816_s3 }
 0x198   :  { %v624_v37 = vsel %vm339_vm5, %v620_v43, %v575_v42  ;;  %v592_v62 = vrot.slane %v432_v46, %v4709_v56  ;;  %s4023_s21 = sshll.u32 %s926_s16, 5  ;;  %s5110_s0 = sld [smem:[#allocation4 + $0x186]] }
 0x199   :  { %v619_v53 = vsel %vm334_vm4, %v615_v1, %v550_v41  ;;  %v628_v60 = vsel %vm344_vm6, %v624_v37, %v596_v47  ;;  %s932_s25 = sadd.s32 %s4023_s21, %s929_s2  ;;  %s5114_s7 = sld [smem:[#allocation4 + $0x187]] }
 0x19a   :  { %v623_v63 = vsel %vm339_vm5, %v619_v53, %v571_v55 }
 0x19b   :  { %v627_v34 = vsel %vm344_vm6, %v623_v63, %v592_v62  ;;  %v713_v62 = vld [vmem:[%s712_s9] ss:$8 sm:$0xf]  ;;  %s916_s12 = sshra.s32 %s3813_s10, 3  ;;  %s919_s14 = sand.u32 7, %s3813_s10 }
 0x19c   :  { %s946_s24 = sshra.s32 %s3822_s13, 3  ;;  %s949_s27 = sand.u32 7, %s3822_s13 }
 0x19d   :  { %s4025_s28 = sshll.u32 %s946_s24, 5  ;;  %s966_s30 = sshra.s32 %s5108_s20, 3 }
 0x19e   :  { %s952_s1 = sadd.s32 %s4025_s28, %s949_s27  ;;  %s959_s9 = sand.u32 7, %s5106_s18 }
 0x19f   :  { %s969_s3 = sand.u32 7, %s5108_s20  ;;  %s979_s16 = sand.u32 7, %s5110_s0 }
 0x1a0   :  { %s989_s21 = sand.u32 7, %s5114_s7  ;;  %s3840_s27 = sld [smem:[#allocation4 + $0x201]] }
 0x1a1   :  { %s3843_s28 = sld [smem:[#allocation4 + $0x202]] }
 0x23f   :  { %v2665_v45 = vpop.f32.mrb[4].mxu0  ;;  %v2706_v48 = vpop.f32.mrb[4].mxu1 }
 0x240   :  { %v2713_v49 = vadd.f32 %v2665_v45, %v625_v33  ;;  %v2667_v6 = vpop.f32.mrb[5].mxu0  ;;  %v2708_v35 = vpop.f32.mrb[5].mxu1 }
 0x241   :  { %v2714_v51 = vadd.f32 %v2667_v6, %v626_v40  ;;  %v2669_v52 = vpop.f32.mrb[6].mxu0  ;;  %v2710_v54 = vpop.f32.mrb[6].mxu1  ;;  %v2716_v33 = vadd.f32 %v2708_v35, %v628_v60  ;;  %v2715_v40 = vadd.f32 %v2706_v48, %v627_v34 }
 0x242   :  { %v3968_v50 = vmul.f32 -1.442695, %v2713_v49  ;;  %v2670_v58 = vpop.f32.mrb[7].mxu0  ;;  %v2711_v57 = vpop.f32.mrb[7].mxu1 }
 0x243   :  { %v3969_v39 = vmul.f32 -1.442695, %v2714_v51  ;;  %v3970_v42 = vmul.f32 -1.442695, %v2716_v33 }
 0x244   :  { %4176 = vpow2.f32 %v3968_v50 }
 0x245   :  { %4178 = vpow2.f32 %v3969_v39 }
 0x246   :  { %4180 = vpow2.f32 %v3970_v42 }
 0x247   :  { %4182 = vtanh.f32 %v2715_v40 }
 0x24e   :  { %v4177_v43 = vpop.eup %4176 }
 0x24f   :  { %v4179_v61 = vpop.eup %4178  ;;  %v2720_v45 = vadd.f32 1.0, %v4177_v43 }
 0x250   :  { %v2726_v41 = vadd.f32 1.0, %v4179_v61  ;;  %v4181_v49 = vpop.eup %4180 }
 0x251   :  { %4184 = vrcp.f32 %v2720_v45  ;;  %v4183_v1 = vpop.eup %4182  ;;  %v2733_v51 = vadd.f32 1.0, %v4181_v49 }
 0x252   :  { %4186 = vrcp.f32 %v2726_v41  ;;  %v865_v41 = vrot.slane %v713_v62, %v4666_v36 }
 0x253   :  { %4188 = vrcp.f32 %v2733_v51 }
 0x25b   :  { %v4185_v6 = vpop.eup %4184 }
 0x25c   :  { %v4187_v46 = vpop.eup %4186  ;;  %v2737_v47 = vmul.f32 %v4185_v6, %v4183_v1 }
 0x25d   :  { %v2736_v35 = vmul.f32 %v4187_v46, %v4765_v59  ;;  %v4189_v48 = vpop.eup %4188  ;;  %v869_v46 = vrot.slane %v713_v62, %v4671_v38 }
 0x25f   :  { %v4885_v37 = vadd.f32 %v2737_v47, %v2736_v35 }
 0x261   :  { %4190 = vtanh.f32 %v4885_v37 }
 0x26b   :  { %v4191_v52 = vpop.eup %4190 }
 0x26c   :  { %v2740_v54 = vmul.f32 %v4191_v52, %v4189_v48 }
 0x26e   :  { %v2745_v50 = vpack.c.bf16 %v2740_v54, %v2740_v54 }
 0x270   :  { %2779 = vmatmul.mubr.bf16.vlgmr.msra.gmra.mrb[8].mxu0 %v2745_v50  ;;  %2820 = vmatmul.mubr.bf16.vlgmr.msra.gmra.mrb[8].mxu1 %v2745_v50 }
 0x271   :  { %2862 = vmatpush1.bf16.msra.mxu0 %v4522_v2  ;;  %2903 = vmatpush1.bf16.msra.mxu1 %v4535_v7  ;;  %v4920_v2 = vld [vmem:[#allocation7 + $0x4] ss:$16 sps:$4 sm:$0xff]   ;;  %v663_v7 = vld [vmem:[%s662_s23] ss:$8 sm:$0xf]  ;;  %s939_s23 = sand.u32 7, %s3819_s11 }
 0x272   :  { %2863 = vmatprep.subr.bf16.mxu0 %v4525_v3  ;;  %2904 = vmatprep.subr.bf16.mxu1 %v4545_v10  ;;  %v4923_v3 = vld [vmem:[#allocation7 + $0xc] ss:$16 sps:$4 sm:$0xff]   ;;  %v768_v33 = vrot.slane %v663_v7, %v4709_v56 }
 0x273   :  { %2893 = vmatprep.mubr.bf16.mxu0 %v4446_v0  ;;  %2934 = vmatprep.mubr.bf16.mxu1 %v4446_v0 }
 0x275   :  { %2864 = vmatpush1.bf16.msra.mxu0 %v4528_v4  ;;  %2905 = vmatpush1.bf16.msra.mxu1 %v4547_v11  ;;  %v4936_v4 = vld [vmem:[%s642_s15] ss:$8 sm:$0xf]  ;;  %s4022_s15 = sshll.u32 %s916_s12, 5  ;;  %s976_s12 = sshra.s32 %s5110_s0, 3 }
 0x276   :  { %2865 = vmatprep.subr.bf16.mxu0 %v4531_v5  ;;  %2906 = vmatprep.subr.bf16.mxu1 %v4555_v14  ;;  %v653_v5 = vld [vmem:[%s652_s17] ss:$8 sm:$0xf]  ;;  %v722_v10 = vrot.slane %v4936_v4, %v4671_v38  ;;  %v726_v59 = vrot.slane %v4936_v4, %v4709_v56  ;;  %s936_s17 = sshra.s32 %s3819_s11, 3  ;;  %s922_s19 = sadd.s32 %s4022_s15, %s919_s14 }
 0x277   :  { %v743_v11 = vrot.slane %v653_v5, %v4671_v38  ;;  %v747_v55 = vrot.slane %v653_v5, %v4709_v56  ;;  %s4024_s22 = sshll.u32 %s936_s17, 5  ;;  %s4027_s11 = sshll.u32 %s966_s30, 5 }
 0x278   :  { %s972_s15 = sadd.s32 %s4027_s11, %s969_s3  ;;  %s4028_s17 = sshll.u32 %s976_s12, 5 }
 0x279   :  { %2866 = vmatpush1.bf16.msra.mxu0 %v4538_v8  ;;  %2907 = vmatpush1.bf16.msra.mxu1 %v4559_v15  ;;  %v718_v8 = vrot.slane %v4936_v4, %v4666_v36  ;;  %v764_v15 = vrot.slane %v663_v7, %v4671_v38  ;;  %v884_v42 = vsel %vm314_vm0, %v726_v59, %v747_v55  ;;  %s982_s20 = sadd.s32 %s4028_s17, %s979_s16  ;;  %s3846_s30 = sld [smem:[#allocation4 + $0x203]] }
 0x27a   :  { %2867 = vmatprep.subr.bf16.mxu0 %v4542_v9  ;;  %2908 = vmatprep.subr.bf16.mxu1 %v4562_v16  ;;  %v739_v9 = vrot.slane %v653_v5, %v4666_v36  ;;  %v883_v16 = vsel %vm314_vm0, %v722_v10, %v743_v11  ;;  %v888_v6 = vsel %vm319_vm1, %v884_v42, %v768_v33  ;;  %s5228_s3 = sld [smem:[#allocation4 + $0x205]]  ;;  %s1210_s11 = sand.u32 7, %s3840_s27 }
 0x27b   :  { %s5230_s17 = sld [smem:[#allocation4 + $0x206]] }
 0x27c   :  { %v882_v14 = vsel %vm314_vm0, %v718_v8, %v739_v9 }
 0x27d   :  { %2868 = vmatpush1.bf16.msra.mxu0 %v4551_v12  ;;  %2909 = vmatpush1.bf16.msra.mxu1 %v4571_v19  ;;  %v673_v12 = vld [vmem:[%s672_s26] ss:$8 sm:$0xf]  ;;  %s942_s26 = sadd.s32 %s4024_s22, %s939_s23  ;;  %s973_s22 = scalar_lea.vmem [#allocation5], %s972_s15 }
 0x27e   :  { %2869 = vmatprep.subr.bf16.mxu0 %v4553_v13  ;;  %2910 = vmatprep.subr.bf16.mxu1 %v4574_v20  ;;  %v760_v13 = vrot.slane %v663_v7, %v4666_v36  ;;  %v785_v20 = vrot.slane %v673_v12, %v4671_v38  ;;  %v793_v53 = vrot.slane %v673_v12, %v4688_v44  ;;  %s943_s14 = scalar_lea.vmem [#allocation5], %s942_s26  ;;  %s3837_s26 = sld [smem:[#allocation4 + $0x200]] }
 0x27f   :  { %v789_v49 = vrot.slane %v673_v12, %v4709_v56  ;;  %s1227_s15 = sshra.s32 %s3846_s30, 3 }
 0x280   :  { %v886_v19 = vsel %vm319_vm1, %v882_v14, %v760_v13  ;;  %v877_v13 = vrot.slane %v713_v62, %v4688_v44 }
 0x281   :  { %2870 = vmatpush1.bf16.msra.mxu0 %v4565_v17  ;;  %2911 = vmatpush1.bf16.msra.mxu1 %v4583_v23  ;;  %v683_v17 = vld [vmem:[%s682_s29] ss:$8 sm:$0xf]  ;;  %v887_v23 = vsel %vm319_vm1, %v883_v16, %v764_v15  ;;  %v892_v54 = vsel %vm324_vm2, %v888_v6, %v789_v49  ;;  %v5021_v49 = vld [vmem:[#allocation7 + $0x2c] ss:$16 sps:$4 sm:$0xff]   ;;  %s956_s29 = sshra.s32 %s5106_s18, 3 }
 0x282   :  { %2871 = vmatprep.subr.bf16.mxu0 %v4568_v18  ;;  %2912 = vmatprep.subr.bf16.mxu1 %v4586_v24  ;;  %v781_v18 = vrot.slane %v673_v12, %v4666_v36  ;;  %v693_v24 = vld [vmem:[%s692_s6] ss:$8 sm:$0xf]  ;;  %v814_v43 = vrot.slane %v683_v17, %v4688_v44  ;;  %v810_v48 = vrot.slane %v683_v17, %v4709_v56  ;;  %s923_s6 = scalar_lea.vmem [#allocation5], %s922_s19  ;;  %s4026_s10 = sshll.u32 %s956_s29, 5 }
 0x283   :  { %v827_v57 = vrot.slane %v693_v24, %v4671_v38  ;;  %v835_v47 = vrot.slane %v693_v24, %v4688_v44  ;;  %v831_v8 = vrot.slane %v693_v24, %v4709_v56  ;;  %v5029_v6 = vld [vmem:[#allocation7 + $0x28] ss:$16 sps:$4 sm:$0xff]   ;;  %s962_s13 = sadd.s32 %s4026_s10, %s959_s9  ;;  %s953_s18 = scalar_lea.vmem [#allocation5], %s952_s1 }
 0x284   :  { %v896_v11 = vsel %vm329_vm3, %v892_v54, %v810_v48  ;;  %v5044_v48 = vld [vmem:[#allocation7 + $0x64] ss:$16 sps:$4 sm:$0xff]   ;;  %v5050_v54 = vld [vmem:[#allocation7 + $0x60] ss:$16 sps:$4 sm:$0xff]   ;;  %s986_s19 = sshra.s32 %s5114_s7, 3  ;;  %s963_s2 = scalar_lea.vmem [#allocation5], %s962_s13 }
 0x285   :  { %2872 = vmatpush1.bf16.msra.mxu0 %v4577_v21  ;;  %2913 = vmatpush1.bf16.msra.mxu1 %v4595_v27  ;;  %v730_v21 = vrot.slane %v4936_v4, %v4688_v44  ;;  %v806_v27 = vrot.slane %v683_v17, %v4671_v38  ;;  %s4029_s23 = sshll.u32 %s986_s19, 5  ;;  %s1197_s29 = sshra.s32 %s3837_s26, 3 }
 0x286   :  { %2873 = vmatprep.subr.bf16.mxu0 %v4579_v22  ;;  %2914 = vmatprep.subr.bf16.mxu1 %v4598_v28  ;;  %v751_v22 = vrot.slane %v653_v5, %v4688_v44  ;;  %v772_v28 = vrot.slane %v663_v7, %v4688_v44  ;;  %s992_s24 = sadd.s32 %s4029_s23, %s989_s21  ;;  %s1200_s7 = sand.u32 7, %s3837_s26 }
 0x287   :  { %s993_s0 = scalar_lea.vmem [#allocation5], %s992_s24  ;;  %s1207_s1 = sshra.s32 %s3840_s27, 3 }
 0x288   :  { %s5226_s9 = sld [smem:[#allocation4 + $0x204]]  ;;  %s4031_s12 = sshll.u32 %s1207_s1, 5 }
 0x289   :  { %2874 = vmatpush1.bf16.msra.mxu0 %v4589_v25  ;;  %2915 = vmatpush1.bf16.msra.mxu1 %v4602_v30  ;;  %v802_v25 = vrot.slane %v683_v17, %v4666_v36  ;;  %v885_v30 = vsel %vm314_vm0, %v730_v21, %v751_v22  ;;  %s1213_s16 = sadd.s32 %s4031_s12, %s1210_s11  ;;  %s1230_s19 = sand.u32 7, %s3846_s30 }
 0x28a   :  { %2875 = vmatprep.subr.bf16.mxu0 %v4592_v26  ;;  %2916 = vmatprep.subr.bf16.mxu1 %v4605_v31  ;;  %v890_v26 = vsel %vm324_vm2, %v886_v19, %v781_v18  ;;  %v703_v31 = vld [vmem:[%s702_s8] ss:$8 sm:$0xf]  ;;  %v889_v60 = vsel %vm319_vm1, %v885_v30, %v772_v28  ;;  %s933_s8 = scalar_lea.vmem [#allocation5], %s932_s25  ;;  %s983_s25 = scalar_lea.vmem [#allocation5], %s982_s20 }
 0x28b   :  { %v894_v58 = vsel %vm329_vm3, %v890_v26, %v802_v25  ;;  %v844_v63 = vrot.slane %v703_v31, %v4666_v36  ;;  %v848_v40 = vrot.slane %v703_v31, %v4671_v38  ;;  %v893_v45 = vsel %vm324_vm2, %v889_v60, %v793_v53  ;;  %s4033_s20 = sshll.u32 %s1227_s15, 5  ;;  %s1247_s21 = sshra.s32 %s5228_s3, 3 }
 0x28c   :  { %v897_v35 = vsel %vm329_vm3, %v893_v45, %v814_v43  ;;  %v856_v50 = vrot.slane %v703_v31, %v4688_v44  ;;  %v873_v26 = vrot.slane %v713_v62, %v4709_v56  ;;  %v5012_v45 = vld [vmem:[#allocation7] ss:$16 sps:$4 sm:$0xff]   ;;  %s5234_s23 = sld [smem:[#allocation4 + $0x207]]  ;;  %s1233_s24 = sadd.s32 %s4033_s20, %s1230_s19 }
 0x28d   :  { %2876 = vmatpush1.bf16.msra.mxu0 %v4600_v29  ;;  %2917 = vmatpush1.bf16.msra.mxu1 %v4612_v32  ;;  %v891_v29 = vsel %vm324_vm2, %v887_v23, %v785_v20  ;;  %v823_v32 = vrot.slane %v693_v24, %v4666_v36  ;;  %v901_v5 = vsel %vm334_vm4, %v897_v35, %v835_v47  ;;  %v5035_v47 = vld [vmem:[#allocation7 + $0x4c] ss:$16 sps:$4 sm:$0xff]   ;;  %v5041_v35 = vld [vmem:[#allocation7 + $0x48] ss:$16 sps:$4 sm:$0xff]   ;;  %s1250_s27 = sand.u32 7, %s5228_s3  ;;  %s1260_s1 = sand.u32 7, %s5230_s17 }
 0x28e   :  { %2976 = vmatprep.subr.bf16.mxu0 %v4920_v2  ;;  %3017 = vmatprep.subr.bf16.mxu1 %v4923_v3  ;;  %v895_v39 = vsel %vm329_vm3, %v891_v29, %v806_v27  ;;  %v905_v16 = vsel %vm339_vm5, %v901_v5, %v856_v50  ;;  %v852_v20 = vrot.slane %v703_v31, %v4709_v56  ;;  %v5053_v50 = vld [vmem:[#allocation7 + $0x68] ss:$16 sps:$4 sm:$0xff]   ;;  %v5059_v5 = vld [vmem:[#allocation7 + $0x8c] ss:$16 sps:$4 sm:$0xff]   ;;  %s3864_s19 = sld [smem:[#allocation4 + $0x281]]  ;;  %s3867_s20 = sld [smem:[#allocation4 + $0x282]] }
 0x28f   :  { %v898_v34 = vsel %vm334_vm4, %v894_v58, %v823_v32  ;;  %v899_v61 = vsel %vm334_vm4, %v895_v39, %v827_v57  ;;  %v900_v23 = vsel %vm334_vm4, %v896_v11, %v831_v8  ;;  %v909_v25 = vsel %vm344_vm6, %v905_v16, %v877_v13  ;;  %v5065_v8 = vld [vmem:[#allocation7 + $0x88] ss:$16 sps:$4 sm:$0xff]   ;;  %v5074_v11 = vld [vmem:[#allocation7 + $0xa0] ss:$16 sps:$4 sm:$0xff]   ;;  %v5080_v13 = vld [vmem:[#allocation7 + $0xc4] ss:$16 sps:$4 sm:$0xff]  }
 0x290   :  { %v902_v1 = vsel %vm339_vm5, %v898_v34, %v844_v63  ;;  %v903_v51 = vsel %vm339_vm5, %v899_v61, %v848_v40  ;;  %v904_v27 = vsel %vm339_vm5, %v900_v23, %v852_v20  ;;  %v5089_v16 = vld [vmem:[#allocation7 + $0xc8] ss:$16 sps:$4 sm:$0xff]  }
 0x291   :  { %v906_v52 = vsel %vm344_vm6, %v902_v1, %v865_v41  ;;  %v907_v4 = vsel %vm344_vm6, %v903_v51, %v869_v46  ;;  %v908_v29 = vsel %vm344_vm6, %v904_v27, %v873_v26  ;;  %v5015_v41 = vld [vmem:[#allocation7 + $0x8] ss:$16 sps:$4 sm:$0xff]   ;;  %v5026_v1 = vld [vmem:[#allocation7 + $0x20] ss:$16 sps:$4 sm:$0xff]   ;;  %v5032_v46 = vld [vmem:[#allocation7 + $0x44] ss:$16 sps:$4 sm:$0xff]  }
 0x292   :  { %v5038_v51 = vld [vmem:[#allocation7 + $0x40] ss:$16 sps:$4 sm:$0xff]   ;;  %v5101_v20 = vld [vmem:[#allocation7 + $0xe8] ss:$16 sps:$4 sm:$0xff]   ;;  %s1270_s12 = sand.u32 7, %s5234_s23 }
 0x293   :  { %v944_v23 = vld [vmem:[%s943_s14] ss:$8 sm:$0xf]  ;;  %s1220_s14 = sand.u32 7, %s3843_s28 }
 0x343   :  { %v2780_v7 = vpop.f32.mrb[8].mxu0  ;;  %v2821_v9 = vpop.f32.mrb[8].mxu1 }
 0x344   :  { %v2828_v10 = vadd.f32 %v2780_v7, %v906_v52  ;;  %v2782_v12 = vpop.f32.mrb[9].mxu0  ;;  %v2823_v14 = vpop.f32.mrb[9].mxu1  ;;  %v2830_v32 = vadd.f32 %v2821_v9, %v908_v29  ;;  %v5047_v52 = vld [vmem:[#allocation7 + $0x6c] ss:$16 sps:$4 sm:$0xff]   ;;  %v5062_v7 = vld [vmem:[#allocation7 + $0x80] ss:$16 sps:$4 sm:$0xff]   ;;  %v1041_v29 = vrot.slane %v944_v23, %v4666_v36 }
 0x345   :  { %v2829_v15 = vadd.f32 %v2782_v12, %v907_v4  ;;  %v2784_v17 = vpop.f32.mrb[10].mxu0  ;;  %v2825_v18 = vpop.f32.mrb[10].mxu1  ;;  %v2831_v28 = vadd.f32 %v2823_v14, %v909_v25  ;;  %v5056_v4 = vld [vmem:[#allocation7 + $0x84] ss:$16 sps:$4 sm:$0xff]   ;;  %v5077_v12 = vld [vmem:[#allocation7 + $0xa8] ss:$16 sps:$4 sm:$0xff]  }
 0x346   :  { %v3971_v19 = vmul.f32 -1.442695, %v2828_v10  ;;  %v2785_v21 = vpop.f32.mrb[11].mxu0  ;;  %v2826_v22 = vpop.f32.mrb[11].mxu1  ;;  %v5068_v9 = vld [vmem:[#allocation7 + $0xa4] ss:$16 sps:$4 sm:$0xff]  }
 0x347   :  { %v3972_v24 = vmul.f32 -1.442695, %v2829_v15  ;;  %v3973_v30 = vmul.f32 -1.442695, %v2831_v28  ;;  %v5071_v10 = vld [vmem:[#allocation7 + $0xac] ss:$16 sps:$4 sm:$0xff]  }
 0x348   :  { %4192 = vpow2.f32 %v3971_v19  ;;  %v5083_v14 = vld [vmem:[#allocation7 + $0xcc] ss:$16 sps:$4 sm:$0xff]   ;;  %v5086_v15 = vld [vmem:[#allocation7 + $0xc0] ss:$16 sps:$4 sm:$0xff]   ;;  %v5092_v17 = vld [vmem:[#allocation7 + $0xe4] ss:$16 sps:$4 sm:$0xff]  }
 0x349   :  { %4194 = vpow2.f32 %v3972_v24  ;;  %v5095_v18 = vld [vmem:[#allocation7 + $0xec] ss:$16 sps:$4 sm:$0xff]   ;;  %v5098_v19 = vld [vmem:[#allocation7 + $0xe0] ss:$16 sps:$4 sm:$0xff]  }
 0x34a   :  { %4196 = vpow2.f32 %v3973_v30  ;;  %v5116_v21 = vld [vmem:[%s923_s6] ss:$8 sm:$0xf]  ;;  %s4030_s6 = sshll.u32 %s1197_s29, 5  ;;  %s1257_s29 = sshra.s32 %s5230_s17, 3 }
 0x34b   :  { %4198 = vtanh.f32 %v2830_v32  ;;  %v934_v22 = vld [vmem:[%s933_s8] ss:$8 sm:$0xf]  ;;  %v999_v24 = vrot.slane %v5116_v21, %v4666_v36  ;;  %v1003_v26 = vrot.slane %v5116_v21, %v4671_v38  ;;  %v1045_v32 = vrot.slane %v944_v23, %v4671_v38  ;;  %s1217_s8 = sshra.s32 %s3843_s28, 3  ;;  %s1203_s10 = sadd.s32 %s4030_s6, %s1200_s7 }
 0x34c   :  { %v1020_v25 = vrot.slane %v934_v22, %v4666_v36  ;;  %v1024_v27 = vrot.slane %v934_v22, %v4671_v38  ;;  %v954_v28 = vld [vmem:[%s953_s18] ss:$8 sm:$0xf]  ;;  %s4032_s13 = sshll.u32 %s1217_s8, 5  ;;  %s4035_s28 = sshll.u32 %s1247_s21, 5 }
 0x34d   :  { %s1223_s18 = sadd.s32 %s4032_s13, %s1220_s14  ;;  %s1253_s6 = sadd.s32 %s4035_s28, %s1250_s27 }
 0x34e   :  { %v1163_v30 = vsel %vm314_vm0, %v999_v24, %v1020_v25  ;;  %v984_v24 = vld [vmem:[%s983_s25] ss:$8 sm:$0xf]  ;;  %s1214_s25 = scalar_lea.vmem [#allocation5], %s1213_s16  ;;  %s1224_s7 = scalar_lea.vmem [#allocation5], %s1223_s18 }
 0x34f   :  { %s4036_s8 = sshll.u32 %s1257_s29, 5  ;;  %s1254_s13 = scalar_lea.vmem [#allocation5], %s1253_s6 }
 0x350   :  { %s1263_s3 = sadd.s32 %s4036_s8, %s1260_s1  ;;  %s3861_s18 = sld [smem:[#allocation4 + $0x280]] }
 0x351   :  { %s1264_s16 = scalar_lea.vmem [#allocation5], %s1263_s3  ;;  %s3870_s21 = sld [smem:[#allocation4 + $0x283]] }
 0x352   :  { %v4193_v59 = vpop.eup %4192  ;;  %s5346_s27 = sld [smem:[#allocation4 + $0x285]]  ;;  %s1491_s28 = sand.u32 7, %s3864_s19 }
 0x353   :  { %v4195_v31 = vpop.eup %4194  ;;  %v2835_v55 = vadd.f32 1.0, %v4193_v59  ;;  %v1164_v59 = vsel %vm314_vm0, %v1003_v26, %v1024_v27  ;;  %v1007_v26 = vrot.slane %v5116_v21, %v4709_v56  ;;  %v1028_v27 = vrot.slane %v934_v22, %v4709_v56  ;;  %s5348_s8 = sld [smem:[#allocation4 + $0x286]] }
 0x354   :  { %v2841_v58 = vadd.f32 1.0, %v4195_v31  ;;  %v4197_v57 = vpop.eup %4196  ;;  %v964_v31 = vld [vmem:[%s963_s2] ss:$8 sm:$0xf]  ;;  %s1237_s2 = sshra.s32 %s5226_s9, 3 }
 0x355   :  { %4200 = vrcp.f32 %v2835_v55  ;;  %v4199_v53 = vpop.eup %4198  ;;  %v2848_v63 = vadd.f32 1.0, %v4197_v57  ;;  %v1062_v55 = vrot.slane %v954_v28, %v4666_v36  ;;  %v1066_v57 = vrot.slane %v954_v28, %v4671_v38  ;;  %s4034_s26 = sshll.u32 %s1237_s2, 5 }
 0x356   :  { %4202 = vrcp.f32 %v2841_v58  ;;  %v1167_v58 = vsel %vm319_vm1, %v1163_v30, %v1041_v29  ;;  %s1478_s2 = sshra.s32 %s3861_s18, 3 }
 0x357   :  { %4204 = vrcp.f32 %v2848_v63  ;;  %v1083_v63 = vrot.slane %v964_v31, %v4666_v36  ;;  %s1508_s6 = sshra.s32 %s3870_s21, 3 }
 0x358   :  { %s4041_s3 = sshll.u32 %s1508_s6, 5 }
 0x35f   :  { %v4201_v39 = vpop.eup %4200 }
 0x360   :  { %v4203_v60 = vpop.eup %4202  ;;  %v2852_v62 = vmul.f32 %v4201_v39, %v4199_v53  ;;  %v1011_v53 = vrot.slane %v5116_v21, %v4688_v44  ;;  %v1032_v39 = vrot.slane %v934_v22, %v4688_v44  ;;  %v1165_v22 = vsel %vm314_vm0, %v1007_v26, %v1028_v27 }
 0x361   :  { %v2851_v33 = vmul.f32 %v4203_v60, %v4885_v37  ;;  %v4205_v42 = vpop.eup %4204  ;;  %v5018_v37 = vld [vmem:[#allocation7 + $0x24] ss:$16 sps:$4 sm:$0xff]   ;;  %v1168_v60 = vsel %vm319_vm1, %v1164_v59, %v1045_v32  ;;  %v1074_v32 = vrot.slane %v954_v28, %v4688_v44 }
 0x363   :  { %v5009_v34 = vadd.f32 %v2852_v62, %v2851_v33  ;;  %v974_v62 = vld [vmem:[%s973_s22] ss:$8 sm:$0xf]  ;;  %v1171_v33 = vsel %vm324_vm2, %v1167_v58, %v1062_v55  ;;  %s1204_s22 = scalar_lea.vmem [#allocation5], %s1203_s10  ;;  %s1267_s10 = sshra.s32 %s5234_s23, 3 }
 0x364   :  { %v1104_v25 = vrot.slane %v974_v62, %v4666_v36  ;;  %v1175_v29 = vsel %vm329_vm3, %v1171_v33, %v1083_v63  ;;  %v1108_v30 = vrot.slane %v974_v62, %v4671_v38  ;;  %v994_v58 = vld [vmem:[%s993_s0] ss:$8 sm:$0xf]  ;;  %s1240_s0 = sand.u32 7, %s5226_s9  ;;  %s1234_s9 = scalar_lea.vmem [#allocation5], %s1233_s24 }
 0x365   :  { %4206 = vtanh.f32 %v5009_v34  ;;  %s1243_s30 = sadd.s32 %s4034_s26, %s1240_s0  ;;  %s4037_s14 = sshll.u32 %s1267_s10, 5 }
 0x366   :  { %v1179_v21 = vsel %vm334_vm4, %v1175_v29, %v1104_v25  ;;  %v1116_v25 = vrot.slane %v974_v62, %v4688_v44  ;;  %v1091_v29 = vrot.slane %v964_v31, %v4709_v56  ;;  %s1244_s11 = scalar_lea.vmem [#allocation5], %s1243_s30  ;;  %s1273_s15 = sadd.s32 %s4037_s14, %s1270_s12 }
 0x367   :  { %s1274_s17 = scalar_lea.vmem [#allocation5], %s1273_s15  ;;  %s1481_s23 = sand.u32 7, %s3861_s18 }
 0x368   :  { %s1488_s24 = sshra.s32 %s3864_s19, 3  ;;  %s5344_s0 = sld [smem:[#allocation4 + $0x284]] }
 0x369   :  { %s4039_s29 = sshll.u32 %s1488_s24, 5  ;;  %s1511_s10 = sand.u32 7, %s3870_s21 }
 0x36a   :  { %s1494_s1 = sadd.s32 %s4039_s29, %s1491_s28  ;;  %s1528_s12 = sshra.s32 %s5346_s27, 3 }
 0x36b   :  { %s5352_s14 = sld [smem:[#allocation4 + $0x287]]  ;;  %s1514_s15 = sadd.s32 %s4041_s3, %s1511_s10 }
 0x36c   :  { %s1531_s19 = sand.u32 7, %s5346_s27  ;;  %s1541_s24 = sand.u32 7, %s5348_s8 }
 0x36d   :  { %s3888_s10 = sld [smem:[#allocation4 + $0x301]]  ;;  %s3891_s3 = sld [smem:[#allocation4 + $0x302]] }
 0x36f   :  { %v4207_v40 = vpop.eup %4206 }
 0x370   :  { %v2855_v43 = vmul.f32 %v4207_v40, %v4205_v42  ;;  %v1087_v42 = vrot.slane %v964_v31, %v4671_v38  ;;  %v1053_v40 = vrot.slane %v944_v23, %v4688_v44 }
 0x371   :  { %s1551_s29 = sand.u32 7, %s5352_s14 }
 0x372   :  { %v2860_v61 = vpack.c.bf16 %v2855_v43, %v2855_v43  ;;  %v1172_v43 = vsel %vm324_vm2, %v1168_v60, %v1066_v57  ;;  %v1125_v57 = vrot.slane %v984_v24, %v4666_v36  ;;  %v1095_v60 = vrot.slane %v964_v31, %v4688_v44 }
 0x373   :  { %v1176_v59 = vsel %vm329_vm3, %v1172_v43, %v1087_v42  ;;  %v1146_v42 = vrot.slane %v994_v58, %v4666_v36  ;;  %v1158_v31 = vrot.slane %v994_v58, %v4688_v44 }
 0x374   :  { %2894 = vmatmul.mubr.bf16.vlgmr.msra.gmra.mrb[12].mxu0 %v2860_v61  ;;  %2935 = vmatmul.mubr.bf16.vlgmr.msra.gmra.mrb[12].mxu1 %v2860_v61  ;;  %v1166_v61 = vsel %vm314_vm0, %v1011_v53, %v1032_v39  ;;  %v1049_v53 = vrot.slane %v944_v23, %v4709_v56  ;;  %v1129_v39 = vrot.slane %v984_v24, %v4671_v38 }
 0x375   :  { %2977 = vmatpush1.bf16.msra.mxu0 %v5012_v45  ;;  %3018 = vmatpush1.bf16.msra.mxu1 %v5015_v41  ;;  %v1170_v55 = vsel %vm319_vm1, %v1166_v61, %v1053_v40  ;;  %v1180_v63 = vsel %vm334_vm4, %v1176_v59, %v1108_v30  ;;  %v1070_v40 = vrot.slane %v954_v28, %v4709_v56 }
 0x376   :  { %2978 = vmatprep.subr.bf16.mxu0 %v5018_v37  ;;  %3019 = vmatprep.subr.bf16.mxu1 %v5021_v49  ;;  %v1174_v33 = vsel %vm324_vm2, %v1170_v55, %v1074_v32  ;;  %v1183_v43 = vsel %vm339_vm5, %v1179_v21, %v1125_v57  ;;  %v1169_v23 = vsel %vm319_vm1, %v1165_v22, %v1049_v53 }
 0x377   :  { %3008 = vmatprep.mubr.bf16.mxu0 %v4446_v0  ;;  %3049 = vmatprep.mubr.bf16.mxu1 %v4446_v0  ;;  %v1150_v61 = vrot.slane %v994_v58, %v4671_v38  ;;  %v1184_v26 = vsel %vm339_vm5, %v1180_v63, %v1129_v39  ;;  %v1178_v27 = vsel %vm329_vm3, %v1174_v33, %v1095_v60 }
 0x378   :  { %v1187_v30 = vsel %vm344_vm6, %v1183_v43, %v1146_v42  ;;  %v1173_v32 = vsel %vm324_vm2, %v1169_v23, %v1070_v40  ;;  %v1137_v28 = vrot.slane %v984_v24, %v4688_v44  ;;  %v1182_v55 = vsel %vm334_vm4, %v1178_v27, %v1116_v25 }
 0x379   :  { %2979 = vmatpush1.bf16.msra.mxu0 %v5026_v1  ;;  %3020 = vmatpush1.bf16.msra.mxu1 %v5029_v6  ;;  %v1188_v59 = vsel %vm344_vm6, %v1184_v26, %v1150_v61  ;;  %v1112_v53 = vrot.slane %v974_v62, %v4709_v56  ;;  %v1177_v39 = vsel %vm329_vm3, %v1173_v32, %v1091_v29 }
 0x37a   :  { %2980 = vmatprep.subr.bf16.mxu0 %v5032_v46  ;;  %3021 = vmatprep.subr.bf16.mxu1 %v5035_v47  ;;  %v1186_v42 = vsel %vm339_vm5, %v1182_v55, %v1137_v28  ;;  %v1133_v61 = vrot.slane %v984_v24, %v4709_v56 }
 0x37b   :  { %v1181_v62 = vsel %vm334_vm4, %v1177_v39, %v1112_v53  ;;  %v1190_v29 = vsel %vm344_vm6, %v1186_v42, %v1158_v31 }
 0x37c   :  { %v1185_v32 = vsel %vm339_vm5, %v1181_v62, %v1133_v61 }
 0x37d   :  { %2981 = vmatpush1.bf16.msra.mxu0 %v5038_v51  ;;  %3022 = vmatpush1.bf16.msra.mxu1 %v5041_v35 }
 0x37e   :  { %2982 = vmatprep.subr.bf16.mxu0 %v5044_v48  ;;  %3023 = vmatprep.subr.bf16.mxu1 %v5047_v52 }
 0x381   :  { %2983 = vmatpush1.bf16.msra.mxu0 %v5050_v54  ;;  %3024 = vmatpush1.bf16.msra.mxu1 %v5053_v50 }
 0x382   :  { %2984 = vmatprep.subr.bf16.mxu0 %v5056_v4  ;;  %3025 = vmatprep.subr.bf16.mxu1 %v5059_v5 }
 0x385   :  { %2985 = vmatpush1.bf16.msra.mxu0 %v5062_v7  ;;  %3026 = vmatpush1.bf16.msra.mxu1 %v5065_v8 }
 0x386   :  { %2986 = vmatprep.subr.bf16.mxu0 %v5068_v9  ;;  %3027 = vmatprep.subr.bf16.mxu1 %v5071_v10 }
 0x389   :  { %2987 = vmatpush1.bf16.msra.mxu0 %v5074_v11  ;;  %3028 = vmatpush1.bf16.msra.mxu1 %v5077_v12 }
 0x38a   :  { %2988 = vmatprep.subr.bf16.mxu0 %v5080_v13  ;;  %3029 = vmatprep.subr.bf16.mxu1 %v5083_v14 }
 0x38d   :  { %2989 = vmatpush1.bf16.msra.mxu0 %v5086_v15  ;;  %3030 = vmatpush1.bf16.msra.mxu1 %v5089_v16 }
 0x38e   :  { %2990 = vmatprep.subr.bf16.mxu0 %v5092_v17  ;;  %3031 = vmatprep.subr.bf16.mxu1 %v5095_v18 }
 0x391   :  { %2991 = vmatpush1.bf16.msra.mxu0 %v5098_v19  ;;  %3032 = vmatpush1.bf16.msra.mxu1 %v5101_v20 }
 0x392   :  { %3091 = vmatprep.subr.bf16.mxu0 %v4920_v2  ;;  %3132 = vmatprep.subr.bf16.mxu1 %v4923_v3 }
 0x447   :  { %v2895_v57 = vpop.f32.mrb[12].mxu0  ;;  %v2936_v21 = vpop.f32.mrb[12].mxu1 }
 0x448   :  { %v2943_v22 = vadd.f32 %v2895_v57, %v1187_v30  ;;  %v2897_v60 = vpop.f32.mrb[13].mxu0  ;;  %v2938_v63 = vpop.f32.mrb[13].mxu1  ;;  %v1154_v30 = vrot.slane %v994_v58, %v4709_v56 }
 0x449   :  { %v2944_v33 = vadd.f32 %v2897_v60, %v1188_v59  ;;  %v2899_v40 = vpop.f32.mrb[14].mxu0  ;;  %v2940_v43 = vpop.f32.mrb[14].mxu1  ;;  %v2946_v59 = vadd.f32 %v2938_v63, %v1190_v29 }
 0x44a   :  { %v3974_v23 = vmul.f32 -1.442695, %v2943_v22  ;;  %v2900_v25 = vpop.f32.mrb[15].mxu0  ;;  %v2941_v26 = vpop.f32.mrb[15].mxu1  ;;  %v1189_v28 = vsel %vm344_vm6, %v1185_v32, %v1154_v30 }
 0x44b   :  { %v3975_v27 = vmul.f32 -1.442695, %v2944_v33  ;;  %v3976_v55 = vmul.f32 -1.442695, %v2946_v59  ;;  %v2945_v57 = vadd.f32 %v2936_v21, %v1189_v28 }
 0x44c   :  { %4208 = vpow2.f32 %v3974_v23  ;;  %v1235_v30 = vld [vmem:[%s1234_s9] ss:$8 sm:$0xf] }
 0x44d   :  { %4210 = vpow2.f32 %v3975_v27 }
 0x44e   :  { %4212 = vpow2.f32 %v3976_v55 }
 0x44f   :  { %4214 = vtanh.f32 %v2945_v57  ;;  %v1245_v57 = vld [vmem:[%s1244_s11] ss:$8 sm:$0xf]  ;;  %s1518_s11 = sshra.s32 %s5344_s0, 3 }
 0x450   :  { %s4042_s18 = sshll.u32 %s1518_s11, 5 }
 0x456   :  { %v4209_v22 = vpop.eup %4208 }
 0x457   :  { %v4211_v24 = vpop.eup %4210  ;;  %v2950_v60 = vadd.f32 1.0, %v4209_v22  ;;  %v1343_v22 = vrot.slane %v1235_v30, %v4666_v36 }
 0x458   :  { %v2956_v53 = vadd.f32 1.0, %v4211_v24  ;;  %v4213_v39 = vpop.eup %4212 }
 0x459   :  { %4216 = vrcp.f32 %v2950_v60  ;;  %v4215_v31 = vpop.eup %4214  ;;  %v2963_v40 = vadd.f32 1.0, %v4213_v39  ;;  %v1347_v60 = vrot.slane %v1235_v30, %v4671_v38 }
 0x45a   :  { %4218 = vrcp.f32 %v2956_v53 }
 0x45b   :  { %4220 = vrcp.f32 %v2963_v40  ;;  %v1368_v40 = vrot.slane %v1245_v57, %v4671_v38 }
 0x463   :  { %v4217_v33 = vpop.eup %4216 }
 0x464   :  { %v4219_v58 = vpop.eup %4218  ;;  %v2967_v42 = vmul.f32 %v4217_v33, %v4215_v31  ;;  %v1255_v33 = vld [vmem:[%s1254_s13] ss:$8 sm:$0xf] }
 0x465   :  { %v2966_v63 = vmul.f32 %v4219_v58, %v5009_v34  ;;  %v4221_v21 = vpop.eup %4220  ;;  %v1225_v34 = vld [vmem:[%s1224_s7] ss:$8 sm:$0xf]  ;;  %v1364_v58 = vrot.slane %v1245_v57, %v4666_v36  ;;  %s1501_s7 = sand.u32 7, %s3867_s20 }
 0x466   :  { %v1322_v32 = vrot.slane %v1225_v34, %v4666_v36  ;;  %v1326_v28 = vrot.slane %v1225_v34, %v4671_v38 }
 0x467   :  { %v5189_v43 = vadd.f32 %v2967_v42, %v2966_v63  ;;  %v1334_v63 = vrot.slane %v1225_v34, %v4688_v44 }
 0x469   :  { %4222 = vtanh.f32 %v5189_v43 }
 0x473   :  { %v4223_v23 = vpop.eup %4222 }
 0x474   :  { %v2970_v61 = vmul.f32 %v4223_v23, %v4221_v21 }
 0x476   :  { %v2975_v25 = vpack.c.bf16 %v2970_v61, %v2970_v61  ;;  %v1265_v61 = vld [vmem:[%s1264_s16] ss:$8 sm:$0xf]  ;;  %s1495_s16 = scalar_lea.vmem [#allocation5], %s1494_s1 }
 0x478   :  { %3009 = vmatmul.mubr.bf16.vlgmr.msra.gmra.mrb[16].mxu0 %v2975_v25  ;;  %3050 = vmatmul.mubr.bf16.vlgmr.msra.gmra.mrb[16].mxu1 %v2975_v25  ;;  %v1385_v25 = vrot.slane %v1255_v33, %v4666_v36 }
 0x479   :  { %3092 = vmatpush1.bf16.msra.mxu0 %v5012_v45  ;;  %3133 = vmatpush1.bf16.msra.mxu1 %v5015_v41 }
 0x47a   :  { %3093 = vmatprep.subr.bf16.mxu0 %v5018_v37  ;;  %3134 = vmatprep.subr.bf16.mxu1 %v5021_v49 }
 0x47b   :  { %3123 = vmatprep.mubr.bf16.mxu0 %v4446_v0  ;;  %3164 = vmatprep.mubr.bf16.mxu1 %v4446_v0 }
 0x47d   :  { %3094 = vmatpush1.bf16.msra.mxu0 %v5026_v1  ;;  %3135 = vmatpush1.bf16.msra.mxu1 %v5029_v6 }
 0x47e   :  { %3095 = vmatprep.subr.bf16.mxu0 %v5032_v46  ;;  %3136 = vmatprep.subr.bf16.mxu1 %v5035_v47 }
 0x481   :  { %3096 = vmatpush1.bf16.msra.mxu0 %v5038_v51  ;;  %3137 = vmatpush1.bf16.msra.mxu1 %v5041_v35 }
 0x482   :  { %3097 = vmatprep.subr.bf16.mxu0 %v5044_v48  ;;  %3138 = vmatprep.subr.bf16.mxu1 %v5047_v52 }
 0x485   :  { %3098 = vmatpush1.bf16.msra.mxu0 %v5050_v54  ;;  %3139 = vmatpush1.bf16.msra.mxu1 %v5053_v50 }
 0x486   :  { %3099 = vmatprep.subr.bf16.mxu0 %v5056_v4  ;;  %3140 = vmatprep.subr.bf16.mxu1 %v5059_v5 }
 0x489   :  { %3100 = vmatpush1.bf16.msra.mxu0 %v5062_v7  ;;  %3141 = vmatpush1.bf16.msra.mxu1 %v5065_v8 }
 0x48a   :  { %3101 = vmatprep.subr.bf16.mxu0 %v5068_v9  ;;  %3142 = vmatprep.subr.bf16.mxu1 %v5071_v10 }
 0x48d   :  { %3102 = vmatpush1.bf16.msra.mxu0 %v5074_v11  ;;  %3143 = vmatpush1.bf16.msra.mxu1 %v5077_v12 }
 0x48e   :  { %3103 = vmatprep.subr.bf16.mxu0 %v5080_v13  ;;  %3144 = vmatprep.subr.bf16.mxu1 %v5083_v14 }
 0x491   :  { %3104 = vmatpush1.bf16.msra.mxu0 %v5086_v15  ;;  %3145 = vmatpush1.bf16.msra.mxu1 %v5089_v16 }
 0x492   :  { %3105 = vmatprep.subr.bf16.mxu0 %v5092_v17  ;;  %3146 = vmatprep.subr.bf16.mxu1 %v5095_v18 }
 0x495   :  { %3106 = vmatpush1.bf16.msra.mxu0 %v5098_v19  ;;  %3147 = vmatpush1.bf16.msra.mxu1 %v5101_v20 }
 0x496   :  { %3206 = vmatprep.subr.bf16.mxu0 %v4920_v2  ;;  %3247 = vmatprep.subr.bf16.mxu1 %v4923_v3  ;;  %v5236_v2 = vld [vmem:[%s1204_s22] ss:$8 sm:$0xf]  ;;  %s4038_s22 = sshll.u32 %s1478_s2, 5  ;;  %s1538_s2 = sshra.s32 %s5348_s8, 3 }
 0x497   :  { %v1215_v3 = vld [vmem:[%s1214_s25] ss:$8 sm:$0xf]  ;;  %v1280_v26 = vrot.slane %v5236_v2, %v4666_v36  ;;  %v1284_v27 = vrot.slane %v5236_v2, %v4671_v38  ;;  %v1292_v53 = vrot.slane %v5236_v2, %v4688_v44  ;;  %s1498_s25 = sshra.s32 %s3867_s20, 3  ;;  %s1484_s26 = sadd.s32 %s4038_s22, %s1481_s23 }
 0x498   :  { %v1301_v62 = vrot.slane %v1215_v3, %v4666_v36  ;;  %v1305_v29 = vrot.slane %v1215_v3, %v4671_v38  ;;  %v1313_v39 = vrot.slane %v1215_v3, %v4688_v44  ;;  %s4040_s30 = sshll.u32 %s1498_s25, 5  ;;  %s1485_s13 = scalar_lea.vmem [#allocation5], %s1484_s26 }
 0x499   :  { %s1504_s9 = sadd.s32 %s4040_s30, %s1501_s7  ;;  %s4043_s20 = sshll.u32 %s1528_s12, 5 }
 0x49a   :  { %v1444_v59 = vsel %vm314_vm0, %v1280_v26, %v1301_v62  ;;  %v1445_v55 = vsel %vm314_vm0, %v1284_v27, %v1305_v29  ;;  %v1447_v23 = vsel %vm314_vm0, %v1292_v53, %v1313_v39  ;;  %v1288_v26 = vrot.slane %v5236_v2, %v4709_v56  ;;  %s1505_s23 = scalar_lea.vmem [#allocation5], %s1504_s9  ;;  %s1534_s22 = sadd.s32 %s4043_s20, %s1531_s19 }
 0x49b   :  { %v1448_v24 = vsel %vm319_vm1, %v1444_v59, %v1322_v32  ;;  %v1449_v31 = vsel %vm319_vm1, %v1445_v55, %v1326_v28  ;;  %v1309_v62 = vrot.slane %v1215_v3, %v4709_v56  ;;  %v1389_v29 = vrot.slane %v1255_v33, %v4671_v38  ;;  %v1275_v55 = vld [vmem:[%s1274_s17] ss:$8 sm:$0xf]  ;;  %s1521_s17 = sand.u32 7, %s5344_s0  ;;  %s4044_s25 = sshll.u32 %s1538_s2, 5 }
 0x49c   :  { %v1452_v42 = vsel %vm324_vm2, %v1448_v24, %v1343_v22  ;;  %v1453_v21 = vsel %vm324_vm2, %v1449_v31, %v1347_v60  ;;  %v1355_v32 = vrot.slane %v1235_v30, %v4688_v44  ;;  %v1451_v28 = vsel %vm319_vm1, %v1447_v23, %v1334_v63  ;;  %s1524_s21 = sadd.s32 %s4042_s18, %s1521_s17  ;;  %s1515_s0 = scalar_lea.vmem [#allocation5], %s1514_s15 }
 0x49d   :  { %v1456_v27 = vsel %vm329_vm3, %v1452_v42, %v1364_v58  ;;  %v1457_v59 = vsel %vm329_vm3, %v1453_v21, %v1368_v40  ;;  %v1406_v22 = vrot.slane %v1265_v61, %v4666_v36  ;;  %v1330_v24 = vrot.slane %v1225_v34, %v4709_v56  ;;  %s1548_s26 = sshra.s32 %s5352_s14, 3  ;;  %s1544_s27 = sadd.s32 %s4044_s25, %s1541_s24 }
 0x49e   :  { %v1460_v2 = vsel %vm334_vm4, %v1456_v27, %v1385_v25  ;;  %v1446_v3 = vsel %vm314_vm0, %v1288_v26, %v1309_v62  ;;  %v1410_v60 = vrot.slane %v1265_v61, %v4671_v38  ;;  %v1376_v53 = vrot.slane %v1245_v57, %v4688_v44  ;;  %s1525_s28 = scalar_lea.vmem [#allocation5], %s1524_s21  ;;  %s4045_s7 = sshll.u32 %s1548_s26, 5 }
 0x49f   :  { %v1461_v39 = vsel %vm334_vm4, %v1457_v59, %v1389_v29  ;;  %v1455_v31 = vsel %vm324_vm2, %v1451_v28, %v1355_v32  ;;  %v1427_v58 = vrot.slane %v1275_v55, %v4666_v36  ;;  %v1351_v42 = vrot.slane %v1235_v30, %v4709_v56  ;;  %s1535_s30 = scalar_lea.vmem [#allocation5], %s1534_s22  ;;  %s1554_s6 = sadd.s32 %s4045_s7, %s1551_s29 }
 0x4a0   :  { %v1464_v40 = vsel %vm339_vm5, %v1460_v2, %v1406_v22  ;;  %v1450_v34 = vsel %vm319_vm1, %v1446_v3, %v1330_v24  ;;  %v1431_v63 = vrot.slane %v1275_v55, %v4671_v38  ;;  %v1397_v21 = vrot.slane %v1255_v33, %v4688_v44  ;;  %s1545_s1 = scalar_lea.vmem [#allocation5], %s1544_s27  ;;  %s1555_s8 = scalar_lea.vmem [#allocation5], %s1554_s6 }
 0x4a1   :  { %v1465_v23 = vsel %vm339_vm5, %v1461_v39, %v1410_v60  ;;  %v1459_v25 = vsel %vm329_vm3, %v1455_v31, %v1376_v53  ;;  %v1372_v26 = vrot.slane %v1245_v57, %v4709_v56  ;;  %v1468_v62 = vsel %vm344_vm6, %v1464_v40, %v1427_v58  ;;  %s3885_s9 = sld [smem:[#allocation4 + $0x300]]  ;;  %s3894_s12 = sld [smem:[#allocation4 + $0x303]] }
 0x4a2   :  { %v1454_v27 = vsel %vm324_vm2, %v1450_v34, %v1351_v42  ;;  %v1418_v30 = vrot.slane %v1265_v61, %v4688_v44  ;;  %v1469_v29 = vsel %vm344_vm6, %v1465_v23, %v1431_v63  ;;  %v1463_v32 = vsel %vm334_vm4, %v1459_v25, %v1397_v21  ;;  %s1769_s15 = sshra.s32 %s3888_s10, 3  ;;  %s5432_s17 = sld [smem:[#allocation4 + $0x304]] }
 0x4a3   :  { %v1393_v28 = vrot.slane %v1255_v33, %v4709_v56  ;;  %v1458_v2 = vsel %vm329_vm3, %v1454_v27, %v1372_v26  ;;  %v1439_v57 = vrot.slane %v1275_v55, %v4688_v44  ;;  %v1414_v40 = vrot.slane %v1265_v61, %v4709_v56  ;;  %s5434_s19 = sld [smem:[#allocation4 + $0x305]]  ;;  %s1772_s20 = sand.u32 7, %s3888_s10 }
 0x4a4   :  { %v1467_v39 = vsel %vm339_vm5, %v1463_v32, %v1418_v30  ;;  %v1435_v25 = vrot.slane %v1275_v55, %v4709_v56  ;;  %s4047_s2 = sshll.u32 %s1769_s15, 5  ;;  %s5436_s25 = sld [smem:[#allocation4 + $0x306]] }
 0x4a5   :  { %v1462_v33 = vsel %vm334_vm4, %v1458_v2, %v1393_v28  ;;  %v1471_v23 = vsel %vm344_vm6, %v1467_v39, %v1439_v57  ;;  %s1775_s24 = sadd.s32 %s4047_s2, %s1772_s20  ;;  %s5440_s7 = sld [smem:[#allocation4 + $0x307]] }
 0x4a6   :  { %v1466_v26 = vsel %vm339_vm5, %v1462_v33, %v1414_v40 }
 0x4a7   :  { %v1470_v27 = vsel %vm344_vm6, %v1466_v26, %v1435_v25  ;;  %v1556_v25 = vld [vmem:[%s1555_s8] ss:$8 sm:$0xf]  ;;  %s1759_s11 = sshra.s32 %s3885_s9, 3  ;;  %s1762_s14 = sand.u32 7, %s3885_s9 }
 0x4a8   :  { %s1789_s22 = sshra.s32 %s3894_s12, 3  ;;  %s1792_s26 = sand.u32 7, %s3894_s12 }
 0x4a9   :  { %s4049_s27 = sshll.u32 %s1789_s22, 5  ;;  %s1809_s29 = sshra.s32 %s5434_s19, 3 }
 0x4aa   :  { %s1795_s6 = sadd.s32 %s4049_s27, %s1792_s26  ;;  %s1802_s8 = sand.u32 7, %s5432_s17 }
 0x4ab   :  { %s1812_s10 = sand.u32 7, %s5434_s19  ;;  %s1822_s15 = sand.u32 7, %s5436_s25 }
 0x4ac   :  { %s1832_s2 = sand.u32 7, %s5440_s7  ;;  %s3912_s26 = sld [smem:[#allocation4 + $0x381]] }
 0x4ad   :  { %s3915_s27 = sld [smem:[#allocation4 + $0x382]] }
 0x54b   :  { %v3010_v59 = vpop.f32.mrb[16].mxu0  ;;  %v3051_v22 = vpop.f32.mrb[16].mxu1 }
 0x54c   :  { %v3058_v24 = vadd.f32 %v3010_v59, %v1468_v62  ;;  %v3012_v3 = vpop.f32.mrb[17].mxu0  ;;  %v3053_v60 = vpop.f32.mrb[17].mxu1 }
 0x54d   :  { %v3059_v53 = vadd.f32 %v3012_v3, %v1469_v29  ;;  %v3014_v31 = vpop.f32.mrb[18].mxu0  ;;  %v3055_v58 = vpop.f32.mrb[18].mxu1  ;;  %v3061_v62 = vadd.f32 %v3053_v60, %v1471_v23  ;;  %v3060_v29 = vadd.f32 %v3051_v22, %v1470_v27 }
 0x54e   :  { %v3977_v42 = vmul.f32 -1.442695, %v3058_v24  ;;  %v3015_v34 = vpop.f32.mrb[19].mxu0  ;;  %v3056_v63 = vpop.f32.mrb[19].mxu1 }
 0x54f   :  { %v3978_v21 = vmul.f32 -1.442695, %v3059_v53  ;;  %v3979_v30 = vmul.f32 -1.442695, %v3061_v62 }
 0x550   :  { %4224 = vpow2.f32 %v3977_v42 }
 0x551   :  { %4226 = vpow2.f32 %v3978_v21 }
 0x552   :  { %4228 = vpow2.f32 %v3979_v30 }
 0x553   :  { %4230 = vtanh.f32 %v3060_v29 }
 0x55a   :  { %v4225_v32 = vpop.eup %4224 }
 0x55b   :  { %v4227_v61 = vpop.eup %4226  ;;  %v3065_v59 = vadd.f32 1.0, %v4225_v32 }
 0x55c   :  { %v3071_v28 = vadd.f32 1.0, %v4227_v61  ;;  %v4229_v24 = vpop.eup %4228 }
 0x55d   :  { %4232 = vrcp.f32 %v3065_v59  ;;  %v4231_v2 = vpop.eup %4230  ;;  %v3078_v53 = vadd.f32 1.0, %v4229_v24 }
 0x55e   :  { %4234 = vrcp.f32 %v3071_v28  ;;  %v1708_v28 = vrot.slane %v1556_v25, %v4666_v36 }
 0x55f   :  { %4236 = vrcp.f32 %v3078_v53 }
 0x567   :  { %v4233_v3 = vpop.eup %4232 }
 0x568   :  { %v4235_v55 = vpop.eup %4234  ;;  %v3082_v57 = vmul.f32 %v4233_v3, %v4231_v2 }
 0x569   :  { %v3081_v60 = vmul.f32 %v4235_v55, %v5189_v43  ;;  %v4237_v22 = vpop.eup %4236  ;;  %v1712_v55 = vrot.slane %v1556_v25, %v4671_v38 }
 0x56b   :  { %v5309_v39 = vadd.f32 %v3082_v57, %v3081_v60 }
 0x56d   :  { %4238 = vtanh.f32 %v5309_v39 }
 0x577   :  { %v4239_v31 = vpop.eup %4238 }
 0x578   :  { %v3085_v58 = vmul.f32 %v4239_v31, %v4237_v22 }
 0x57a   :  { %v3090_v42 = vpack.c.bf16 %v3085_v58, %v3085_v58 }
 0x57c   :  { %3124 = vmatmul.mubr.bf16.vlgmr.msra.gmra.mrb[20].mxu0 %v3090_v42  ;;  %3165 = vmatmul.mubr.bf16.vlgmr.msra.gmra.mrb[20].mxu1 %v3090_v42 }
 0x57d   :  { %3207 = vmatpush1.bf16.msra.mxu0 %v5012_v45  ;;  %3248 = vmatpush1.bf16.msra.mxu1 %v5015_v41  ;;  %v4320_v45 = vld [vmem:[#allocation7 + $0x4] ss:$16 sps:$4 sm:$0xff]   ;;  %v4321_v41 = vld [vmem:[#allocation7 + $0xc] ss:$16 sps:$4 sm:$0xff]  }
 0x57e   :  { %3208 = vmatprep.subr.bf16.mxu0 %v5018_v37  ;;  %3249 = vmatprep.subr.bf16.mxu1 %v5021_v49  ;;  %v5354_v37 = vld [vmem:[%s1485_s13] ss:$8 sm:$0xf]  ;;  %s4046_s13 = sshll.u32 %s1759_s11, 5  ;;  %s1819_s11 = sshra.s32 %s5436_s25, 3 }
 0x57f   :  { %3238 = vmatprep.mubr.bf16.mxu0 %v4446_v0  ;;  %3279 = vmatprep.mubr.bf16.mxu1 %v4446_v0  ;;  %v1496_v49 = vld [vmem:[%s1495_s16] ss:$8 sm:$0xf]  ;;  %v1569_v43 = vrot.slane %v5354_v37, %v4709_v56  ;;  %s1779_s16 = sshra.s32 %s3891_s3, 3  ;;  %s1765_s18 = sadd.s32 %s4046_s13, %s1762_s14 }
 0x580   :  { %v1590_v40 = vrot.slane %v1496_v49, %v4709_v56  ;;  %s4048_s21 = sshll.u32 %s1779_s16, 5  ;;  %s4052_s16 = sshll.u32 %s1819_s11, 5 }
 0x581   :  { %3209 = vmatpush1.bf16.msra.mxu0 %v5026_v1  ;;  %3250 = vmatpush1.bf16.msra.mxu1 %v5029_v6  ;;  %v1506_v1 = vld [vmem:[%s1505_s23] ss:$8 sm:$0xf]  ;;  %v1561_v6 = vrot.slane %v5354_v37, %v4666_v36  ;;  %s1782_s23 = sand.u32 7, %s3891_s3  ;;  %s4051_s3 = sshll.u32 %s1809_s29, 5 }
 0x582   :  { %3210 = vmatprep.subr.bf16.mxu0 %v5032_v46  ;;  %3251 = vmatprep.subr.bf16.mxu1 %v5035_v47  ;;  %v1582_v46 = vrot.slane %v1496_v49, %v4666_v36  ;;  %v1565_v47 = vrot.slane %v5354_v37, %v4671_v38  ;;  %v1611_v62 = vrot.slane %v1506_v1, %v4709_v56  ;;  %s1815_s13 = sadd.s32 %s4051_s3, %s1812_s10  ;;  %s1825_s19 = sadd.s32 %s4052_s16, %s1822_s15 }
 0x583   :  { %v1727_v30 = vsel %vm314_vm0, %v1569_v43, %v1590_v40  ;;  %s3918_s29 = sld [smem:[#allocation4 + $0x383]]  ;;  %s5520_s10 = sld [smem:[#allocation4 + $0x385]] }
 0x584   :  { %v1731_v3 = vsel %vm319_vm1, %v1727_v30, %v1611_v62  ;;  %s2053_s3 = sand.u32 7, %s3912_s26  ;;  %s5522_s16 = sld [smem:[#allocation4 + $0x386]] }
 0x585   :  { %3211 = vmatpush1.bf16.msra.mxu0 %v5038_v51  ;;  %3252 = vmatpush1.bf16.msra.mxu1 %v5041_v35  ;;  %v1586_v51 = vrot.slane %v1496_v49, %v4671_v38  ;;  %v1516_v35 = vld [vmem:[%s1515_s0] ss:$8 sm:$0xf]  ;;  %s1785_s0 = sadd.s32 %s4048_s21, %s1782_s23  ;;  %s1816_s21 = scalar_lea.vmem [#allocation5], %s1815_s13 }
 0x586   :  { %3212 = vmatprep.subr.bf16.mxu0 %v5044_v48  ;;  %3253 = vmatprep.subr.bf16.mxu1 %v5047_v52  ;;  %v1603_v48 = vrot.slane %v1506_v1, %v4666_v36  ;;  %v1725_v52 = vsel %vm314_vm0, %v1561_v6, %v1582_v46  ;;  %v1636_v33 = vrot.slane %v1516_v35, %v4688_v44  ;;  %s1786_s14 = scalar_lea.vmem [#allocation5], %s1785_s0  ;;  %s3909_s0 = sld [smem:[#allocation4 + $0x380]] }
 0x587   :  { %v1632_v24 = vrot.slane %v1516_v35, %v4709_v56 }
 0x589   :  { %3213 = vmatpush1.bf16.msra.mxu0 %v5050_v54  ;;  %3254 = vmatpush1.bf16.msra.mxu1 %v5053_v50  ;;  %v1607_v54 = vrot.slane %v1506_v1, %v4671_v38  ;;  %v1726_v50 = vsel %vm314_vm0, %v1565_v47, %v1586_v51  ;;  %v1735_v58 = vsel %vm324_vm2, %v1731_v3, %v1632_v24  ;;  %v4327_v24 = vld [vmem:[#allocation7 + $0x28] ss:$16 sps:$4 sm:$0xff]   ;;  %v4329_v3 = vld [vmem:[#allocation7 + $0x4c] ss:$16 sps:$4 sm:$0xff]   ;;  %s2070_s13 = sshra.s32 %s3918_s29, 3 }
 0x58a   :  { %3214 = vmatprep.subr.bf16.mxu0 %v5056_v4  ;;  %3255 = vmatprep.subr.bf16.mxu1 %v5059_v5  ;;  %v1526_v4 = vld [vmem:[%s1525_s28] ss:$8 sm:$0xf]  ;;  %v1624_v5 = vrot.slane %v1516_v35, %v4666_v36  ;;  %v1720_v51 = vrot.slane %v1556_v25, %v4688_v44  ;;  %s1799_s28 = sshra.s32 %s5432_s17, 3  ;;  %s1796_s17 = scalar_lea.vmem [#allocation5], %s1795_s6 }
 0x58b   :  { %v1657_v32 = vrot.slane %v1526_v4, %v4688_v44  ;;  %v1653_v22 = vrot.slane %v1526_v4, %v4709_v56  ;;  %s4050_s9 = sshll.u32 %s1799_s28, 5  ;;  %s2050_s6 = sshra.s32 %s3912_s26, 3 }
 0x58c   :  { %s1805_s12 = sadd.s32 %s4050_s9, %s1802_s8  ;;  %s2040_s28 = sshra.s32 %s3909_s0, 3 }
 0x58d   :  { %3215 = vmatpush1.bf16.msra.mxu0 %v5062_v7  ;;  %3256 = vmatpush1.bf16.msra.mxu1 %v5065_v8  ;;  %v1729_v7 = vsel %vm319_vm1, %v1725_v52, %v1603_v48  ;;  %v1628_v8 = vrot.slane %v1516_v35, %v4671_v38  ;;  %v1739_v46 = vsel %vm329_vm3, %v1735_v58, %v1653_v22  ;;  %v4334_v22 = vld [vmem:[#allocation7 + $0x60] ss:$16 sps:$4 sm:$0xff]   ;;  %v4337_v58 = vld [vmem:[#allocation7 + $0x8c] ss:$16 sps:$4 sm:$0xff]   ;;  %s1806_s20 = scalar_lea.vmem [#allocation5], %s1805_s12  ;;  %s5518_s8 = sld [smem:[#allocation4 + $0x384]] }
 0x58e   :  { %3216 = vmatprep.subr.bf16.mxu0 %v5068_v9  ;;  %3257 = vmatprep.subr.bf16.mxu1 %v5071_v10  ;;  %v1573_v9 = vrot.slane %v5354_v37, %v4688_v44  ;;  %v1594_v10 = vrot.slane %v1496_v49, %v4688_v44  ;;  %s4055_s11 = sshll.u32 %s2050_s6, 5  ;;  %s2093_s26 = sand.u32 7, %s5520_s10 }
 0x58f   :  { %s2056_s15 = sadd.s32 %s4055_s11, %s2053_s3  ;;  %s2103_s6 = sand.u32 7, %s5522_s16 }
 0x591   :  { %3217 = vmatpush1.bf16.msra.mxu0 %v5074_v11  ;;  %3258 = vmatpush1.bf16.msra.mxu1 %v5077_v12  ;;  %v1730_v11 = vsel %vm319_vm1, %v1726_v50, %v1607_v54  ;;  %v1536_v12 = vld [vmem:[%s1535_s30] ss:$8 sm:$0xf]  ;;  %s1766_s30 = scalar_lea.vmem [#allocation5], %s1765_s18  ;;  %s1829_s18 = sshra.s32 %s5440_s7, 3 }
 0x592   :  { %3218 = vmatprep.subr.bf16.mxu0 %v5080_v13  ;;  %3259 = vmatprep.subr.bf16.mxu1 %v5083_v14  ;;  %v1645_v13 = vrot.slane %v1526_v4, %v4666_v36  ;;  %v1733_v14 = vsel %vm324_vm2, %v1729_v7, %v1624_v5  ;;  %v1670_v63 = vrot.slane %v1536_v12, %v4671_v38  ;;  %s4053_s23 = sshll.u32 %s1829_s18, 5  ;;  %s2043_s7 = sand.u32 7, %s3909_s0 }
 0x593   :  { %v1678_v57 = vrot.slane %v1536_v12, %v4688_v44  ;;  %v1674_v49 = vrot.slane %v1536_v12, %v4709_v56  ;;  %s1835_s22 = sadd.s32 %s4053_s23, %s1832_s2  ;;  %s2073_s18 = sand.u32 7, %s3918_s29 }
 0x594   :  { %v1737_v34 = vsel %vm329_vm3, %v1733_v14, %v1645_v13  ;;  %s1836_s25 = scalar_lea.vmem [#allocation5], %s1835_s22  ;;  %s2090_s2 = sshra.s32 %s5520_s10, 3 }
 0x595   :  { %3219 = vmatpush1.bf16.msra.mxu0 %v5086_v15  ;;  %3260 = vmatpush1.bf16.msra.mxu1 %v5089_v16  ;;  %v1649_v15 = vrot.slane %v1526_v4, %v4671_v38  ;;  %v1615_v16 = vrot.slane %v1506_v1, %v4688_v44  ;;  %s5526_s23 = sld [smem:[#allocation4 + $0x387]] }
 0x596   :  { %3220 = vmatprep.subr.bf16.mxu0 %v5092_v17  ;;  %3261 = vmatprep.subr.bf16.mxu1 %v5095_v18  ;;  %v1734_v17 = vsel %vm324_vm2, %v1730_v11, %v1628_v8  ;;  %v1728_v18 = vsel %vm314_vm0, %v1573_v9, %v1594_v10  ;;  %v1743_v9 = vsel %vm334_vm4, %v1739_v46, %v1674_v49  ;;  %v4342_v49 = vld [vmem:[#allocation7 + $0xa0] ss:$16 sps:$4 sm:$0xff]   ;;  %v4345_v46 = vld [vmem:[#allocation7 + $0xcc] ss:$16 sps:$4 sm:$0xff]  }
 0x597   :  { %v1738_v21 = vsel %vm329_vm3, %v1734_v17, %v1649_v15  ;;  %v1732_v23 = vsel %vm319_vm1, %v1728_v18, %v1615_v16 }
 0x598   :  { %v1742_v61 = vsel %vm334_vm4, %v1738_v21, %v1670_v63  ;;  %v1736_v59 = vsel %vm324_vm2, %v1732_v23, %v1636_v33 }
 0x599   :  { %3221 = vmatpush1.bf16.msra.mxu0 %v5098_v19  ;;  %3262 = vmatpush1.bf16.msra.mxu1 %v5101_v20  ;;  %v1546_v19 = vld [vmem:[%s1545_s1] ss:$8 sm:$0xf]  ;;  %v1666_v20 = vrot.slane %v1536_v12, %v4666_v36  ;;  %v1740_v60 = vsel %vm329_vm3, %v1736_v59, %v1657_v32  ;;  %v1716_v12 = vrot.slane %v1556_v25, %v4709_v56  ;;  %v4324_v59 = vld [vmem:[#allocation7 + $0x24] ss:$16 sps:$4 sm:$0xff]   ;;  %s1776_s1 = scalar_lea.vmem [#allocation5], %s1775_s24 }
 0x59a   :  { %3321 = vmatprep.subr.bf16.mxu0 %v4320_v45  ;;  %3362 = vmatprep.subr.bf16.mxu1 %v4321_v41  ;;  %v1687_v26 = vrot.slane %v1546_v19, %v4666_v36  ;;  %v1691_v29 = vrot.slane %v1546_v19, %v4671_v38  ;;  %v1699_v42 = vrot.slane %v1546_v19, %v4688_v44  ;;  %v4322_v32 = vld [vmem:[#allocation7] ss:$16 sps:$4 sm:$0xff]   ;;  %s1826_s24 = scalar_lea.vmem [#allocation5], %s1825_s19  ;;  %s4057_s19 = sshll.u32 %s2070_s13, 5 }
 0x59b   :  { %v1741_v27 = vsel %vm334_vm4, %v1737_v34, %v1666_v20  ;;  %v1744_v41 = vsel %vm334_vm4, %v1740_v60, %v1678_v57  ;;  %v1695_v5 = vrot.slane %v1546_v19, %v4709_v56  ;;  %v4331_v57 = vld [vmem:[#allocation7 + $0x48] ss:$16 sps:$4 sm:$0xff]   ;;  %v4333_v60 = vld [vmem:[#allocation7 + $0x6c] ss:$16 sps:$4 sm:$0xff]   ;;  %s2076_s22 = sadd.s32 %s4057_s19, %s2073_s18  ;;  %s2113_s11 = sand.u32 7, %s5526_s23 }
 0x59c   :  { %v1745_v2 = vsel %vm339_vm5, %v1741_v27, %v1687_v26  ;;  %v1746_v53 = vsel %vm339_vm5, %v1742_v61, %v1691_v29  ;;  %v1748_v52 = vsel %vm339_vm5, %v1744_v41, %v1699_v42  ;;  %v4323_v61 = vld [vmem:[#allocation7 + $0x8] ss:$16 sps:$4 sm:$0xff]   ;;  %v4338_v42 = vld [vmem:[#allocation7 + $0x80] ss:$16 sps:$4 sm:$0xff]   ;;  %v4340_v41 = vld [vmem:[#allocation7 + $0xa4] ss:$16 sps:$4 sm:$0xff]  }
 0x59d   :  { %v1749_v31 = vsel %vm344_vm6, %v1745_v2, %v1708_v28  ;;  %v1750_v45 = vsel %vm344_vm6, %v1746_v53, %v1712_v55  ;;  %v1752_v11 = vsel %vm344_vm6, %v1748_v52, %v1720_v51  ;;  %v1747_v13 = vsel %vm339_vm5, %v1743_v9, %v1695_v5  ;;  %v4325_v28 = vld [vmem:[#allocation7 + $0x2c] ss:$16 sps:$4 sm:$0xff]   ;;  %v4328_v2 = vld [vmem:[#allocation7 + $0x44] ss:$16 sps:$4 sm:$0xff]   ;;  %v4330_v55 = vld [vmem:[#allocation7 + $0x40] ss:$16 sps:$4 sm:$0xff]  }
 0x59e   :  { %v1751_v15 = vsel %vm344_vm6, %v1747_v13, %v1716_v12  ;;  %v4332_v53 = vld [vmem:[#allocation7 + $0x64] ss:$16 sps:$4 sm:$0xff]   ;;  %v4347_v51 = vld [vmem:[#allocation7 + $0xc8] ss:$16 sps:$4 sm:$0xff]   ;;  %v4350_v52 = vld [vmem:[#allocation7 + $0xe0] ss:$16 sps:$4 sm:$0xff]  }
 0x59f   :  { %v1787_v5 = vld [vmem:[%s1786_s14] ss:$8 sm:$0xf]  ;;  %s2063_s14 = sand.u32 7, %s3915_s27 }
 0x5a0   :  { %v1884_v12 = vrot.slane %v1787_v5, %v4666_v36 }
 0x64f   :  { %v3125_v37 = vpop.f32.mrb[20].mxu0  ;;  %v3166_v1 = vpop.f32.mrb[20].mxu1 }
 0x650   :  { %v3173_v6 = vadd.f32 %v3125_v37, %v1749_v31  ;;  %v3127_v47 = vpop.f32.mrb[21].mxu0  ;;  %v3168_v35 = vpop.f32.mrb[21].mxu1  ;;  %v3175_v17 = vadd.f32 %v3166_v1, %v1751_v15  ;;  %v4335_v31 = vld [vmem:[#allocation7 + $0x68] ss:$16 sps:$4 sm:$0xff]   ;;  %v4341_v37 = vld [vmem:[#allocation7 + $0xac] ss:$16 sps:$4 sm:$0xff]  }
 0x651   :  { %v3174_v48 = vadd.f32 %v3127_v47, %v1750_v45  ;;  %v3129_v54 = vpop.f32.mrb[22].mxu0  ;;  %v3170_v50 = vpop.f32.mrb[22].mxu1  ;;  %v3176_v14 = vadd.f32 %v3168_v35, %v1752_v11  ;;  %v4339_v45 = vld [vmem:[#allocation7 + $0x88] ss:$16 sps:$4 sm:$0xff]   ;;  %v4346_v47 = vld [vmem:[#allocation7 + $0xc0] ss:$16 sps:$4 sm:$0xff]  }
 0x652   :  { %v3980_v4 = vmul.f32 -1.442695, %v3173_v6  ;;  %v3130_v7 = vpop.f32.mrb[23].mxu0  ;;  %v3171_v8 = vpop.f32.mrb[23].mxu1  ;;  %v4343_v1 = vld [vmem:[#allocation7 + $0xa8] ss:$16 sps:$4 sm:$0xff]  }
 0x653   :  { %v3981_v10 = vmul.f32 -1.442695, %v3174_v48  ;;  %v3982_v16 = vmul.f32 -1.442695, %v3176_v14  ;;  %v4344_v6 = vld [vmem:[#allocation7 + $0xc4] ss:$16 sps:$4 sm:$0xff]   ;;  %v1888_v14 = vrot.slane %v1787_v5, %v4671_v38 }
 0x654   :  { %4240 = vpow2.f32 %v3980_v4  ;;  %v4348_v35 = vld [vmem:[#allocation7 + $0xe4] ss:$16 sps:$4 sm:$0xff]   ;;  %v4349_v48 = vld [vmem:[#allocation7 + $0xec] ss:$16 sps:$4 sm:$0xff]   ;;  %v4351_v54 = vld [vmem:[#allocation7 + $0xe8] ss:$16 sps:$4 sm:$0xff]  }
 0x655   :  { %4242 = vpow2.f32 %v3981_v10  ;;  %v5442_v50 = vld [vmem:[%s1766_s30] ss:$8 sm:$0xf]  ;;  %s4054_s30 = sshll.u32 %s2040_s28, 5  ;;  %s2100_s28 = sshra.s32 %s5522_s16, 3 }
 0x656   :  { %4244 = vpow2.f32 %v3982_v16  ;;  %v1777_v4 = vld [vmem:[%s1776_s1] ss:$8 sm:$0xf]  ;;  %v1842_v7 = vrot.slane %v5442_v50, %v4666_v36  ;;  %v1846_v9 = vrot.slane %v5442_v50, %v4671_v38  ;;  %s2060_s1 = sshra.s32 %s3915_s27, 3  ;;  %s2046_s9 = sadd.s32 %s4054_s30, %s2043_s7 }
 0x657   :  { %4246 = vtanh.f32 %v3175_v17  ;;  %v1863_v8 = vrot.slane %v1777_v4, %v4666_v36  ;;  %v1867_v10 = vrot.slane %v1777_v4, %v4671_v38  ;;  %v1797_v11 = vld [vmem:[%s1796_s17] ss:$8 sm:$0xf]  ;;  %s4056_s12 = sshll.u32 %s2060_s1, 5  ;;  %s4059_s27 = sshll.u32 %s2090_s2, 5 }
 0x658   :  { %v1807_v16 = vld [vmem:[%s1806_s20] ss:$8 sm:$0xf]  ;;  %v1905_v17 = vrot.slane %v1797_v11, %v4666_v36  ;;  %s2066_s17 = sadd.s32 %s4056_s12, %s2063_s14  ;;  %s2080_s20 = sshra.s32 %s5518_s8, 3 }
 0x659   :  { %v2006_v13 = vsel %vm314_vm0, %v1842_v7, %v1863_v8  ;;  %v2007_v15 = vsel %vm314_vm0, %v1846_v9, %v1867_v10  ;;  %s4058_s0 = sshll.u32 %s2080_s20, 5  ;;  %s2067_s7 = scalar_lea.vmem [#allocation5], %s2066_s17 }
 0x65a   :  { %s2096_s30 = sadd.s32 %s4059_s27, %s2093_s26  ;;  %s4060_s1 = sshll.u32 %s2100_s28, 5 }
 0x65b   :  { %s2106_s10 = sadd.s32 %s4060_s1, %s2103_s6  ;;  %s2097_s12 = scalar_lea.vmem [#allocation5], %s2096_s30 }
 0x65e   :  { %v4241_v18 = vpop.eup %4240 }
 0x65f   :  { %v4243_v19 = vpop.eup %4242  ;;  %v3180_v20 = vadd.f32 1.0, %v4241_v18  ;;  %v2010_v18 = vsel %vm319_vm1, %v2006_v13, %v1884_v12 }
 0x660   :  { %v3186_v43 = vadd.f32 1.0, %v4243_v19  ;;  %v4245_v40 = vpop.eup %4244  ;;  %v1909_v19 = vrot.slane %v1797_v11, %v4671_v38 }
 0x661   :  { %4248 = vrcp.f32 %v3180_v20  ;;  %v4247_v34 = vpop.eup %4246  ;;  %v3193_v23 = vadd.f32 1.0, %v4245_v40  ;;  %v1854_v20 = vrot.slane %v5442_v50, %v4688_v44  ;;  %v2011_v40 = vsel %vm319_vm1, %v2007_v15, %v1888_v14 }
 0x662   :  { %4250 = vrcp.f32 %v3186_v43  ;;  %v1875_v43 = vrot.slane %v1777_v4, %v4688_v44 }
 0x663   :  { %4252 = vrcp.f32 %v3193_v23  ;;  %v1896_v23 = vrot.slane %v1787_v5, %v4688_v44 }
 0x66b   :  { %v4249_v63 = vpop.eup %4248 }
 0x66c   :  { %v4251_v33 = vpop.eup %4250  ;;  %v3197_v21 = vmul.f32 %v4249_v63, %v4247_v34  ;;  %v1817_v34 = vld [vmem:[%s1816_s21] ss:$8 sm:$0xf]  ;;  %v1926_v63 = vrot.slane %v1807_v16, %v4666_v36  ;;  %s2047_s21 = scalar_lea.vmem [#allocation5], %s2046_s9  ;;  %s2110_s9 = sshra.s32 %s5526_s23, 3 }
 0x66d   :  { %v3196_v25 = vmul.f32 %v4251_v33, %v5309_v39  ;;  %v4253_v62 = vpop.eup %4252  ;;  %v4326_v39 = vld [vmem:[#allocation7 + $0x20] ss:$16 sps:$4 sm:$0xff]   ;;  %v2014_v33 = vsel %vm324_vm2, %v2010_v18, %v1905_v17  ;;  %s4061_s14 = sshll.u32 %s2110_s9, 5 }
 0x66e   :  { %s2116_s13 = sadd.s32 %s4061_s14, %s2113_s11 }
 0x66f   :  { %v5427_v26 = vadd.f32 %v3197_v21, %v3196_v25  ;;  %v1930_v21 = vrot.slane %v1807_v16, %v4671_v38  ;;  %v2015_v25 = vsel %vm324_vm2, %v2011_v40, %v1909_v19  ;;  %s2117_s16 = scalar_lea.vmem [#allocation5], %s2116_s13 }
 0x671   :  { %4254 = vtanh.f32 %v5427_v26 }
 0x67b   :  { %v4255_v27 = vpop.eup %4254 }
 0x67c   :  { %v3200_v30 = vmul.f32 %v4255_v27, %v4253_v62  ;;  %v2009_v62 = vsel %vm314_vm0, %v1854_v20, %v1875_v43  ;;  %v1827_v27 = vld [vmem:[%s1826_s24] ss:$8 sm:$0xf]  ;;  %s2057_s24 = scalar_lea.vmem [#allocation5], %s2056_s15  ;;  %s2107_s15 = scalar_lea.vmem [#allocation5], %s2106_s10 }
 0x67e   :  { %v3205_v29 = vpack.c.bf16 %v3200_v30, %v3200_v30  ;;  %v1947_v30 = vrot.slane %v1817_v34, %v4666_v36 }
 0x680   :  { %3239 = vmatmul.mubr.bf16.vlgmr.msra.gmra.mrb[24].mxu0 %v3205_v29  ;;  %3280 = vmatmul.mubr.bf16.vlgmr.msra.gmra.mrb[24].mxu1 %v3205_v29  ;;  %v1850_v29 = vrot.slane %v5442_v50, %v4709_v56  ;;  %v1955_v50 = vrot.slane %v1817_v34, %v4709_v56 }
 0x681   :  { %3322 = vmatpush1.bf16.msra.mxu0 %v4322_v32  ;;  %3363 = vmatpush1.bf16.msra.mxu1 %v4323_v61  ;;  %v1871_v32 = vrot.slane %v1777_v4, %v4709_v56  ;;  %v2018_v61 = vsel %vm329_vm3, %v2014_v33, %v1926_v63 }
 0x682   :  { %3323 = vmatprep.subr.bf16.mxu0 %v4324_v59  ;;  %3364 = vmatprep.subr.bf16.mxu1 %v4325_v28  ;;  %v1951_v59 = vrot.slane %v1817_v34, %v4671_v38  ;;  %v1917_v28 = vrot.slane %v1797_v11, %v4688_v44 }
 0x683   :  { %3353 = vmatprep.mubr.bf16.mxu0 %v4446_v0  ;;  %3394 = vmatprep.mubr.bf16.mxu1 %v4446_v0  ;;  %v4336_v0 = vld [vmem:[#allocation7 + $0x84] ss:$16 sps:$4 sm:$0xff]  }
 0x685   :  { %3324 = vmatpush1.bf16.msra.mxu0 %v4326_v39  ;;  %3365 = vmatpush1.bf16.msra.mxu1 %v4327_v24  ;;  %v2019_v39 = vsel %vm329_vm3, %v2015_v25, %v1930_v21  ;;  %v2013_v24 = vsel %vm319_vm1, %v2009_v62, %v1896_v23 }
 0x686   :  { %3325 = vmatprep.subr.bf16.mxu0 %v4328_v2  ;;  %3366 = vmatprep.subr.bf16.mxu1 %v4329_v3  ;;  %v1837_v2 = vld [vmem:[%s1836_s25] ss:$8 sm:$0xf]  ;;  %v1968_v3 = vrot.slane %v1827_v27, %v4666_v36  ;;  %s2083_s25 = sand.u32 7, %s5518_s8  ;;  %s2077_s8 = scalar_lea.vmem [#allocation5], %s2076_s22 }
 0x687   :  { %v2001_v9 = vrot.slane %v1837_v2, %v4688_v44  ;;  %v1997_v40 = vrot.slane %v1837_v2, %v4709_v56  ;;  %s2086_s29 = sadd.s32 %s4058_s0, %s2083_s25 }
 0x688   :  { %s2087_s3 = scalar_lea.vmem [#allocation5], %s2086_s29 }
 0x689   :  { %3326 = vmatpush1.bf16.msra.mxu0 %v4330_v55  ;;  %3367 = vmatpush1.bf16.msra.mxu1 %v4331_v57  ;;  %v1892_v55 = vrot.slane %v1787_v5, %v4709_v56  ;;  %v2022_v57 = vsel %vm334_vm4, %v2018_v61, %v1947_v30 }
 0x68a   :  { %3327 = vmatprep.subr.bf16.mxu0 %v4332_v53  ;;  %3368 = vmatprep.subr.bf16.mxu1 %v4333_v60  ;;  %v2008_v53 = vsel %vm314_vm0, %v1850_v29, %v1871_v32  ;;  %v1972_v60 = vrot.slane %v1827_v27, %v4671_v38 }
 0x68d   :  { %3328 = vmatpush1.bf16.msra.mxu0 %v4334_v22  ;;  %3369 = vmatpush1.bf16.msra.mxu1 %v4335_v31  ;;  %v1938_v22 = vrot.slane %v1807_v16, %v4688_v44  ;;  %v2023_v31 = vsel %vm334_vm4, %v2019_v39, %v1951_v59 }
 0x68e   :  { %3329 = vmatprep.subr.bf16.mxu0 %v4336_v0  ;;  %3370 = vmatprep.subr.bf16.mxu1 %v4337_v58  ;;  %v2017_v0 = vsel %vm324_vm2, %v2013_v24, %v1917_v28  ;;  %v1989_v58 = vrot.slane %v1837_v2, %v4666_v36 }
 0x691   :  { %3330 = vmatpush1.bf16.msra.mxu0 %v4338_v42  ;;  %3371 = vmatpush1.bf16.msra.mxu1 %v4339_v45  ;;  %v1913_v42 = vrot.slane %v1797_v11, %v4709_v56  ;;  %v2026_v45 = vsel %vm339_vm5, %v2022_v57, %v1968_v3 }
 0x692   :  { %3331 = vmatprep.subr.bf16.mxu0 %v4340_v41  ;;  %3372 = vmatprep.subr.bf16.mxu1 %v4341_v37  ;;  %v2012_v41 = vsel %vm319_vm1, %v2008_v53, %v1892_v55  ;;  %v1993_v37 = vrot.slane %v1837_v2, %v4671_v38 }
 0x695   :  { %3332 = vmatpush1.bf16.msra.mxu0 %v4342_v49  ;;  %3373 = vmatpush1.bf16.msra.mxu1 %v4343_v1  ;;  %v1959_v49 = vrot.slane %v1817_v34, %v4688_v44  ;;  %v2027_v1 = vsel %vm339_vm5, %v2023_v31, %v1972_v60  ;;  %v4152_v60 = vld [vmem:[#allocation9] sm:$0xff]   ;;  %v4153_v31 = vld [vmem:[#allocation9 + $0x8] sm:$0xff]  }
 0x696   :  { %3333 = vmatprep.subr.bf16.mxu0 %v4344_v6  ;;  %3374 = vmatprep.subr.bf16.mxu1 %v4345_v46  ;;  %v2021_v6 = vsel %vm329_vm3, %v2017_v0, %v1938_v22  ;;  %v1934_v46 = vrot.slane %v1807_v16, %v4709_v56  ;;  %v1976_v16 = vrot.slane %v1827_v27, %v4709_v56  ;;  %v4447_v22 = vmov 0.0   ;;  %v4155_v0 = vld [vmem:[#allocation9 + $0x18] sm:$0xff]  }
 0x699   :  { %3334 = vmatpush1.bf16.msra.mxu0 %v4346_v47  ;;  %3375 = vmatpush1.bf16.msra.mxu1 %v4347_v51  ;;  %v2030_v47 = vsel %vm344_vm6, %v2026_v45, %v1989_v58  ;;  %v2016_v51 = vsel %vm324_vm2, %v2012_v41, %v1913_v42  ;;  %v4156_v58 = vld [vmem:[#allocation9 + $0x20] sm:$0xff]   ;;  %v4157_v42 = vld [vmem:[#allocation9 + $0x28] sm:$0xff]   ;;  %v4158_v45 = vld [vmem:[#allocation9 + $0x30] sm:$0xff]  }
 0x69a   :  { %3335 = vmatprep.subr.bf16.mxu0 %v4348_v35  ;;  %3376 = vmatprep.subr.bf16.mxu1 %v4349_v48  ;;  %v1980_v35 = vrot.slane %v1827_v27, %v4688_v44  ;;  %v2031_v48 = vsel %vm344_vm6, %v2027_v1, %v1993_v37  ;;  %v2020_v7 = vsel %vm329_vm3, %v2016_v51, %v1934_v46  ;;  %v4159_v41 = vld [vmem:[#allocation9 + $0x38] sm:$0xff]  }
 0x69b   :  { %v2024_v19 = vsel %vm334_vm4, %v2020_v7, %v1955_v50  ;;  %v5528_v37 = vld [vmem:[%s2047_s21] ss:$8 sm:$0xf] }
 0x69c   :  { %v2028_v34 = vsel %vm339_vm5, %v2024_v19, %v1976_v16  ;;  %v2068_v1 = vld [vmem:[%s2067_s7] ss:$8 sm:$0xf] }
 0x69d   :  { %3336 = vmatpush1.bf16.msra.mxu0 %v4350_v52  ;;  %3377 = vmatpush1.bf16.msra.mxu1 %v4351_v54  ;;  %v2025_v52 = vsel %vm334_vm4, %v2021_v6, %v1959_v49  ;;  %v2032_v33 = vsel %vm344_vm6, %v2028_v34, %v1997_v40  ;;  %v2058_v49 = vld [vmem:[%s2057_s24] ss:$8 sm:$0xf]  ;;  %v2123_v6 = vrot.slane %v5528_v37, %v4666_v36 }
 0x69e   :  { %v2029_v12 = vsel %vm339_vm5, %v2025_v52, %v1980_v35  ;;  %4071 = vmatprep.subr.bf16.mxu0 %v4447_v22  ;;  %v2144_v46 = vrot.slane %v2058_v49, %v4666_v36  ;;  %v2148_v51 = vrot.slane %v2058_v49, %v4671_v38  ;;  %v2078_v35 = vld [vmem:[%s2077_s8] ss:$8 sm:$0xf]  ;;  %v2177_v16 = vrot.slane %v2068_v1, %v4688_v44 }
 0x69f   :  { %v2033_v43 = vsel %vm344_vm6, %v2029_v12, %v2001_v9  ;;  %v2135_v9 = vrot.slane %v5528_v37, %v4688_v44  ;;  %v2098_v12 = vld [vmem:[%s2097_s12] ss:$8 sm:$0xf]  ;;  %v2152_v40 = vrot.slane %v2058_v49, %v4709_v56 }
 0x6a0   :  { %v2287_v52 = vsel %vm314_vm0, %v2123_v6, %v2144_v46  ;;  %v2108_v19 = vld [vmem:[%s2107_s15] ss:$8 sm:$0xf] }
 0x753   :  { %v3240_v54 = vpop.f32.mrb[24].mxu0  ;;  %v3281_v4 = vpop.f32.mrb[24].mxu1 }
 0x754   :  { %v3288_v5 = vadd.f32 %v3240_v54, %v2030_v47  ;;  %v3242_v8 = vpop.f32.mrb[25].mxu0  ;;  %v3283_v10 = vpop.f32.mrb[25].mxu1  ;;  %v3290_v23 = vadd.f32 %v3281_v4, %v2032_v33  ;;  %v2127_v47 = vrot.slane %v5528_v37, %v4671_v38  ;;  %v2169_v54 = vrot.slane %v2068_v1, %v4671_v38  ;;  %v2088_v4 = vld [vmem:[%s2087_s3] ss:$8 sm:$0xf] }
 0x755   :  { %v3289_v11 = vadd.f32 %v3242_v8, %v2031_v48  ;;  %v3244_v13 = vpop.f32.mrb[26].mxu0  ;;  %v3285_v14 = vpop.f32.mrb[26].mxu1  ;;  %v3291_v63 = vadd.f32 %v3283_v10, %v2033_v43  ;;  %v2165_v48 = vrot.slane %v2068_v1, %v4666_v36  ;;  %v2190_v8 = vrot.slane %v2078_v35, %v4671_v38 }
 0x756   :  { %v3983_v15 = vmul.f32 -1.442695, %v3288_v5  ;;  %v3245_v17 = vpop.f32.mrb[27].mxu0  ;;  %v3286_v18 = vpop.f32.mrb[27].mxu1  ;;  %v2288_v50 = vsel %vm314_vm0, %v2127_v47, %v2148_v51  ;;  %v2186_v5 = vrot.slane %v2078_v35, %v4666_v36  ;;  %v2156_v10 = vrot.slane %v2058_v49, %v4688_v44 }
 0x757   :  { %v3984_v20 = vmul.f32 -1.442695, %v3289_v11  ;;  %v3985_v21 = vmul.f32 -1.442695, %v3291_v63  ;;  %v2291_v7 = vsel %vm319_vm1, %v2287_v52, %v2165_v48  ;;  %v2292_v11 = vsel %vm319_vm1, %v2288_v50, %v2169_v54 }
 0x758   :  { %4256 = vpow2.f32 %v3983_v15  ;;  %v2207_v13 = vrot.slane %v2088_v4, %v4666_v36  ;;  %v2295_v14 = vsel %vm324_vm2, %v2291_v7, %v2186_v5  ;;  %v2211_v15 = vrot.slane %v2088_v4, %v4671_v38 }
 0x759   :  { %4258 = vpow2.f32 %v3984_v20  ;;  %v2296_v17 = vsel %vm324_vm2, %v2292_v11, %v2190_v8  ;;  %v2290_v18 = vsel %vm314_vm0, %v2135_v9, %v2156_v10  ;;  %v2228_v20 = vrot.slane %v2098_v12, %v4666_v36 }
 0x75a   :  { %4260 = vpow2.f32 %v3985_v21  ;;  %v2131_v43 = vrot.slane %v5528_v37, %v4709_v56  ;;  %v2299_v34 = vsel %vm329_vm3, %v2295_v14, %v2207_v13  ;;  %v2232_v63 = vrot.slane %v2098_v12, %v4671_v38 }
 0x75b   :  { %4262 = vtanh.f32 %v3290_v23  ;;  %v2198_v33 = vrot.slane %v2078_v35, %v4688_v44  ;;  %v2300_v21 = vsel %vm329_vm3, %v2296_v17, %v2211_v15  ;;  %v2294_v23 = vsel %vm319_vm1, %v2290_v18, %v2177_v16 }
 0x75c   :  { %v2257_v54 = vrot.slane %v2108_v19, %v4709_v56 }
 0x762   :  { %v4257_v25 = vpop.eup %4256 }
 0x763   :  { %v4259_v62 = vpop.eup %4258  ;;  %v3295_v27 = vadd.f32 1.0, %v4257_v25  ;;  %v2118_v25 = vld [vmem:[%s2117_s16] ss:$8 sm:$0xf] }
 0x764   :  { %v3301_v30 = vadd.f32 1.0, %v4259_v62  ;;  %v4261_v29 = vpop.eup %4260  ;;  %v2249_v62 = vrot.slane %v2108_v19, %v4666_v36  ;;  %v2282_v6 = vrot.slane %v2118_v25, %v4688_v44  ;;  %v2278_v9 = vrot.slane %v2118_v25, %v4709_v56 }
 0x765   :  { %4264 = vrcp.f32 %v3295_v27  ;;  %v4263_v32 = vpop.eup %4262  ;;  %v3308_v39 = vadd.f32 1.0, %v4261_v29  ;;  %v2173_v27 = vrot.slane %v2068_v1, %v4709_v56  ;;  %v2289_v29 = vsel %vm314_vm0, %v2131_v43, %v2152_v40 }
 0x766   :  { %4266 = vrcp.f32 %v3301_v30  ;;  %v2303_v30 = vsel %vm334_vm4, %v2299_v34, %v2228_v20 }
 0x767   :  { %4268 = vrcp.f32 %v3308_v39  ;;  %v2270_v39 = vrot.slane %v2118_v25, %v4666_v36 }
 0x76f   :  { %v4265_v61 = vpop.eup %4264 }
 0x770   :  { %v4267_v59 = vpop.eup %4266  ;;  %v3312_v28 = vmul.f32 %v4265_v61, %v4263_v32  ;;  %v2253_v32 = vrot.slane %v2108_v19, %v4671_v38  ;;  %v2219_v61 = vrot.slane %v2088_v4, %v4688_v44 }
 0x771   :  { %v3311_v24 = vmul.f32 %v4267_v59, %v5427_v26  ;;  %v4269_v3 = vpop.eup %4268  ;;  %v4154_v26 = vld [vmem:[#allocation9 + $0x10] sm:$0xff]   ;;  %v2304_v59 = vsel %vm334_vm4, %v2300_v21, %v2232_v63 }
 0x773   :  { %v5515_v2 = vadd.f32 %v3312_v28, %v3311_v24  ;;  %v2298_v28 = vsel %vm324_vm2, %v2294_v23, %v2198_v33  ;;  %v2194_v24 = vrot.slane %v2078_v35, %v4709_v56 }
 0x775   :  { %4270 = vtanh.f32 %v5515_v2 }
 0x77f   :  { %v4271_v55 = vpop.eup %4270 }
 0x780   :  { %v3315_v57 = vmul.f32 %v4271_v55, %v4269_v3  ;;  %v2307_v3 = vsel %vm339_vm5, %v2303_v30, %v2249_v62  ;;  %v2293_v55 = vsel %vm319_vm1, %v2289_v29, %v2173_v27  ;;  %v3989_v62 = vld [vmem:[%s5611_s4] ss:$0 sm:$0xff] }
 0x781   :  { %v2297_v36 = vsel %vm324_vm2, %v2293_v55, %v2194_v24 }
 0x782   :  { %v3320_v53 = vpack.c.bf16 %v3315_v57, %v3315_v57  ;;  %v2274_v57 = vrot.slane %v2118_v25, %v4671_v38  ;;  %v2236_v38 = vrot.slane %v2098_v12, %v4709_v56 }
 0x784   :  { %3354 = vmatmul.mubr.bf16.vlgmr.msra.gmra.mrb[28].mxu0 %v3320_v53  ;;  %3395 = vmatmul.mubr.bf16.vlgmr.msra.gmra.mrb[28].mxu1 %v3320_v53  ;;  %v2240_v53 = vrot.slane %v2098_v12, %v4688_v44 }
 0x785   :  { %4072 = vmatpush3.bf16.msra.mxu0 %v4152_v60  ;;  %4087 = vmatprep.mubr.msk.bf16.mxu0 %vm4448_vm7, %v4447_v22  ;;  %v2308_v60 = vsel %vm339_vm5, %v2304_v59, %v2253_v32 }
 0x786   :  { %4073 = vmatprep.subr.bf16.mxu0 %v4447_v22 }
 0x789   :  { %4074 = vmatpush3.bf16.msra.mxu0 %v4153_v31  ;;  %v2215_v31 = vrot.slane %v2088_v4, %v4709_v56 }
 0x78a   :  { %4075 = vmatprep.subr.bf16.mxu0 %v4447_v22 }
 0x78b   :  { %v2301_v49 = vsel %vm329_vm3, %v2297_v36, %v2215_v31 }
 0x78c   :  { %v2305_v5 = vsel %vm334_vm4, %v2301_v49, %v2236_v38 }
 0x78d   :  { %4076 = vmatpush3.bf16.msra.mxu0 %v4154_v26  ;;  %v2311_v26 = vsel %vm344_vm6, %v2307_v3, %v2270_v39 }
 0x78e   :  { %4077 = vmatprep.subr.bf16.mxu0 %v4447_v22 }
 0x791   :  { %4078 = vmatpush3.bf16.msra.mxu0 %v4155_v0  ;;  %v2261_v0 = vrot.slane %v2108_v19, %v4688_v44  ;;  %v2309_v44 = vsel %vm339_vm5, %v2305_v5, %v2257_v54 }
 0x792   :  { %4079 = vmatprep.subr.bf16.mxu0 %v4447_v22  ;;  %v2313_v11 = vsel %vm344_vm6, %v2309_v44, %v2278_v9 }
 0x795   :  { %4080 = vmatpush3.bf16.msra.mxu0 %v4156_v58  ;;  %v2312_v58 = vsel %vm344_vm6, %v2308_v60, %v2274_v57 }
 0x796   :  { %4081 = vmatprep.subr.bf16.mxu0 %v4447_v22 }
 0x799   :  { %4082 = vmatpush3.bf16.msra.mxu0 %v4157_v42 }
 0x79a   :  { %4083 = vmatprep.subr.bf16.mxu0 %v4447_v22 }
 0x79d   :  { %4084 = vmatpush3.bf16.msra.mxu0 %v4158_v45 }
 0x79e   :  { %4085 = vmatprep.subr.bf16.mxu0 %v4447_v22  ;;  %v2302_v22 = vsel %vm329_vm3, %v2298_v28, %v2219_v61 }
 0x79f   :  { %v2306_v42 = vsel %vm334_vm4, %v2302_v22, %v2240_v53 }
 0x7a0   :  { %v2310_v51 = vsel %vm339_vm5, %v2306_v42, %v2261_v0 }
 0x7a1   :  { %4086 = vmatpush3.bf16.msra.mxu0 %v4159_v41  ;;  %v2314_v8 = vsel %vm344_vm6, %v2310_v51, %v2282_v6 }
 0x857   :  { %v3355_v45 = vpop.f32.mrb[28].mxu0  ;;  %v3396_v41 = vpop.f32.mrb[28].mxu1 }
 0x858   :  { %v3403_v37 = vadd.f32 %v3355_v45, %v2311_v26  ;;  %v3357_v1 = vpop.f32.mrb[29].mxu0  ;;  %v3398_v46 = vpop.f32.mrb[29].mxu1  ;;  %v3405_v13 = vadd.f32 %v3396_v41, %v2313_v11 }
 0x859   :  { %v3404_v47 = vadd.f32 %v3357_v1, %v2312_v58  ;;  %v3359_v35 = vpop.f32.mrb[30].mxu0  ;;  %v3400_v48 = vpop.f32.mrb[30].mxu1  ;;  %v3406_v10 = vadd.f32 %v3398_v46, %v2314_v8 }
 0x85a   :  { %v3986_v52 = vmul.f32 -1.442695, %v3403_v37  ;;  %v3360_v50 = vpop.f32.mrb[31].mxu0  ;;  %v3401_v4 = vpop.f32.mrb[31].mxu1 }
 0x85b   :  { %v3987_v7 = vmul.f32 -1.442695, %v3404_v47  ;;  %v3988_v12 = vmul.f32 -1.442695, %v3406_v10 }
 0x85c   :  { %4272 = vpow2.f32 %v3986_v52 }
 0x85d   :  { %4274 = vpow2.f32 %v3987_v7 }
 0x85e   :  { %4276 = vpow2.f32 %v3988_v12 }
 0x85f   :  { %4278 = vtanh.f32 %v3405_v13 }
 0x866   :  { %v4273_v14 = vpop.eup %4272 }
 0x867   :  { %v4275_v15 = vpop.eup %4274  ;;  %v3410_v16 = vadd.f32 1.0, %v4273_v14 }
 0x868   :  { %v3416_v17 = vadd.f32 1.0, %v4275_v15  ;;  %v4277_v18 = vpop.eup %4276 }
 0x869   :  { %4280 = vrcp.f32 %v3410_v16  ;;  %v4279_v19 = vpop.eup %4278  ;;  %v3423_v40 = vadd.f32 1.0, %v4277_v18 }
 0x86a   :  { %4282 = vrcp.f32 %v3416_v17 }
 0x86b   :  { %4284 = vrcp.f32 %v3423_v40 }
 0x873   :  { %v4281_v20 = vpop.eup %4280 }
 0x874   :  { %v4283_v56 = vpop.eup %4282  ;;  %v3427_v43 = vmul.f32 %v4281_v20, %v4279_v19 }
 0x875   :  { %v3426_v34 = vmul.f32 %v4283_v56, %v5515_v2  ;;  %v4285_v33 = vpop.eup %4284 }
 0x877   :  { %v3428_v63 = vadd.f32 %v3427_v43, %v3426_v34 }
 0x879   :  { %4286 = vtanh.f32 %v3428_v63 }
 0x883   :  { %v4287_v21 = vpop.eup %4286 }
 0x884   :  { %v3430_v23 = vmul.f32 %v4287_v21, %v4285_v33 }
 0x886   :  { %v3431_v25 = vpack.c.bf16 %v3430_v23, %v3430_v23 }
 0x888   :  { %4088 = vmatmul.mubr.bf16.vlgmr.msra.gmra.mrb[32].mxu0 %v3431_v25 }
 0x95b   :  { %v3537_v27 = vpop.f32.mrb[32].mxu0 }
 0x95c   :  { %v3538_v30 = vadd.f32 %v3989_v62, %v3537_v27  ;;  %v4089_v29 = vpop.f32.mrb[33].mxu0 }
 0x95d   :  { %v3540_v32 = vpop.f32.mrb[34].mxu0 }
 0x95e   :  { %3543 = vst [vmem:[%s5612_s5] sm:$0xff] %v3538_v30  ;;  %v4090_v2 = vpop.f32.mrb[35].mxu0 }
 0x95f   :  { %3548 = vsyncpa [#allocation6], 1 }
 0x960   :  { %3549 = vsyncpa [#allocation8], 1 }

</bundles_post_ra>
